<compile_context>
chip_gen: v7x
topology: tpu7x:2x2x1
jax: 0.10.0
libtpu: 0.0.40
codegen_flags: <defaults>
</compile_context>

<pallas_src>
import math
import functools

import numpy as np
import jax
import jax.numpy as jnp
from jax import lax
from jax.experimental import pallas as pl
from jax.experimental.pallas import tpu as pltpu


_INV_SQRT2 = 1.0 / math.sqrt(2.0)


def _gelu_exact(x):
    # torch.nn.GELU(approximate='none')
    return 0.5 * x * (1.0 + lax.erf(x * _INV_SQRT2))


# ----------------------------- fused encoder kernel -----------------------------

def _encoder_kernel(*refs, layers):
    """One grid step pushes one image through every encoder layer.

    refs layout: [x_ref, (w_ref, b_ref[, sel_ref]) per layer ..., o_ref, pad_ref]
      x_ref   : (1, H0*W0, C0)  input image, flattened spatial x channels
      w_ref   : (9*Cin, Cout)   im2col-ordered conv weights ((dy, dx, cin) rows)
      b_ref   : (1, Cout)       bias
      sel_ref : (HoWo, HW)      0/1 stride-2 output-selection matrix (stride-2 layers only)
      o_ref   : (1, Mo, Clat)   final latent, flattened spatial x channels
      pad_ref : VMEM scratch holding the zero-padded activation of the current layer
    """
    pad_ref = refs[-1]
    o_ref = refs[-2]
    in_refs = refs[:-2]

    act = in_refs[0][0, :, :].astype(jnp.float32)        # (H*W, Cin) of the current layer
    ref_idx = 1

    for lyr in layers:                                   # unrolled at trace time (static)
        h, w, cin, cout = lyr["h"], lyr["w"], lyr["cin"], lyr["cout"]
        hw = h * w
        pad = w + 1                                      # zero rows above/below in flat layout

        w_ref = in_refs[ref_idx]
        b_ref = in_refs[ref_idx + 1]
        ref_idx += 2
        sel_ref = None
        if lyr["stride"] == 2:
            sel_ref = in_refs[ref_idx]
            ref_idx += 1

        # Zero-padded activation in VMEM scratch: scratch row r holds flat spatial index r - pad.
        pad_ref[...] = jnp.zeros(pad_ref.shape, pad_ref.dtype)
        pad_ref[pad:pad + hw, 0:cin] = act

        # Horizontal border masks over output rows (flat output index p -> x = p % w).
        col = lax.broadcasted_iota(jnp.int32, (hw, 1), 0) % w
        mask_left = (col > 0).astype(jnp.float32)        # dx == 0 taps invalid at x == 0
        mask_right = (col < w - 1).astype(jnp.float32)   # dx == 2 taps invalid at x == w-1

        # 3x3 conv (stride 1, pad 1) as 9 accumulated MXU dots over shifted slices.
        # Tap (dy, dx) for output p reads padded row p + dy*w + dx (zero rows absorb the
        # vertical out-of-bounds taps, masks kill the horizontal wrap-around rows).
        acc = jnp.zeros((hw, cout), jnp.float32)
        for dy in range(3):
            for dx in range(3):
                start = dy * w + dx
                tap = pad_ref[start:start + hw, 0:cin]
                if dx == 0:
                    tap = tap * mask_left
                elif dx == 2:
                    tap = tap * mask_right
                t = dy * 3 + dx
                tap_w = w_ref[t * cin:(t + 1) * cin, :]
                acc = acc + jnp.dot(tap, tap_w, preferred_element_type=jnp.float32)

        # Stride-2 Downsample: select output rows (2*oy, 2*ox) with one small matmul.
        if sel_ref is not None:
            acc = jnp.dot(sel_ref[...], acc, preferred_element_type=jnp.float32)

        acc = acc + b_ref[...]
        if lyr["gelu"]:
            acc = _gelu_exact(acc)
        act = acc

    o_ref[0, :, :] = act.astype(o_ref.dtype)


# ----------------------------- wrapper -----------------------------

def _selection_matrix(h, w):
    """0/1 matrix picking the stride-2 conv outputs out of the stride-1 (full-res) output rows."""
    ho = (h - 1) // 2 + 1
    wo = (w - 1) // 2 + 1
    rows = np.arange(ho * wo)
    src = 2 * (rows // wo) * w + 2 * (rows % wo)
    sel = np.zeros((ho * wo, h * w), np.float32)
    sel[rows, src] = 1.0
    return sel, ho, wo


def encoder_forward(params, x_nchw):
    """params: list of {"w": (9*Cin, Cout), "b": (1, Cout)}; x: (N,C,H,W) -> (N, Clat, Ho, Wo)."""
    n, c0, h0, w0 = x_nchw.shape
    x = jnp.transpose(x_nchw, (0, 2, 3, 1)).reshape(n, h0 * w0, c0).astype(jnp.float32)

    n_layers = len(params)
    inputs = [x]
    in_specs = [pl.BlockSpec((1, h0 * w0, c0), lambda i: (i, 0, 0))]
    layers = []
    max_rows, max_cin = 8, 1
    h, w = h0, w0
    for idx, layer in enumerate(params):
        stride = 1 if idx == 0 else 2                    # stem is stride 1, everything else 2
        gelu = idx != n_layers - 1                       # no activation after to_latent
        cin = layer["w"].shape[0] // 9
        cout = layer["w"].shape[1]
        layers.append(dict(h=h, w=w, cin=cin, cout=cout, stride=stride, gelu=gelu))
        max_rows = max(max_rows, h * w + 2 * (w + 1))
        max_cin = max(max_cin, cin)

        inputs.append(layer["w"])
        in_specs.append(pl.BlockSpec(layer["w"].shape, lambda i: (0, 0)))
        inputs.append(layer["b"])
        in_specs.append(pl.BlockSpec(layer["b"].shape, lambda i: (0, 0)))
        if stride == 2:
            sel, ho, wo = _selection_matrix(h, w)        # numpy -> constant under jit
            inputs.append(jnp.asarray(sel))
            in_specs.append(pl.BlockSpec(sel.shape, lambda i: (0, 0)))
            h, w = ho, wo

    clat = layers[-1]["cout"]
    mo = h * w

    kernel = functools.partial(_encoder_kernel, layers=tuple(layers))
    out = pl.pallas_call(
        kernel,
        out_shape=jax.ShapeDtypeStruct((n, mo, clat), jnp.float32),
        grid_spec=pltpu.PrefetchScalarGridSpec(
            num_scalar_prefetch=0,
            grid=(n,),
            in_specs=in_specs,
            out_specs=pl.BlockSpec((1, mo, clat), lambda i: (i, 0, 0)),
            scratch_shapes=[pltpu.VMEM((max_rows, max_cin), jnp.float32)],
        ),
        compiler_params=pltpu.CompilerParams(
            dimension_semantics=("parallel",),
        ),
    )(*inputs)

    out = out.reshape(n, h, w, clat)
    return jnp.transpose(out, (0, 3, 1, 2))


# ----------------------------- init & reference -----------------------------

def init_encoder_params(key, in_channels, channels_list, latent_channels):
    """Weights stored kernel-ready: w as (9*Cin, Cout) in (dy, dx, cin) row order, b as (1, Cout)."""
    layer_io = [(in_channels, channels_list[0])]
    layer_io += list(zip(channels_list, channels_list[1:]))
    layer_io += [(channels_list[-1], latent_channels)]

    params = []
    keys = jax.random.split(key, len(layer_io))
    for k, (cin, cout) in zip(keys, layer_io):
        kw_, kb_ = jax.random.split(k)
        w = jax.random.normal(kw_, (9 * cin, cout), jnp.float32) * 0.05
        b = jax.random.normal(kb_, (1, cout), jnp.float32) * 0.01
        params.append({"w": w, "b": b})
    return params


def encoder_reference(params, x_nchw):
    """Pure-XLA reference (lax.conv) used to validate the fused Pallas kernel."""
    x = x_nchw.astype(jnp.float32)
    n_layers = len(params)
    for idx, layer in enumerate(params):
        stride = 1 if idx == 0 else 2
        gelu = idx != n_layers - 1
        w_mat, b = layer["w"], layer["b"]
        cin, cout = w_mat.shape[0] // 9, w_mat.shape[1]
        w_oihw = jnp.transpose(w_mat.reshape(3, 3, cin, cout), (3, 2, 0, 1))
        x = lax.conv_general_dilated(
            x, w_oihw, window_strides=(stride, stride), padding=((1, 1), (1, 1)),
            dimension_numbers=("NCHW", "OIHW", "NCHW"),
            precision=lax.Precision.HIGHEST)
        x = x + b.reshape(1, cout, 1, 1)
        if gelu:
            x = _gelu_exact(x)
    return x


# ----------------------------- main -----------------------------

if __name__ == "__main__":
    key = jax.random.PRNGKey(0)
    k_x, k_p = jax.random.split(key)

    in_channels = 4
    channels_list = [8, 16, 16]
    latent_channels = 32
    x = jax.random.normal(k_x, (2, in_channels, 16, 16), jnp.float32)   # NCHW

    params = init_encoder_params(k_p, in_channels, channels_list, latent_channels)

    fwd = jax.jit(encoder_forward)
    out = jax.block_until_ready(fwd(params, x))

    # stem keeps 16x16, two downsample blocks -> 8x8 -> 4x4, to_latent -> 2x2
    assert out.shape == (2, latent_channels, 2, 2), out.shape
    assert out.dtype == jnp.float32

    ref = encoder_reference(params, x)
    err = float(jnp.max(jnp.abs(out - ref)))
    assert err < 3e-3, f"max abs error vs XLA conv reference: {err}"

    print("KERNEL_OK")
</pallas_src>

<mosaic_0001>
module attributes {stable_mosaic.version = 11 : i64} {
  func.func @_encoder_kernel(%arg0: i32, %arg1: memref<1x256x4xf32, #tpu.memory_space<vmem>>, %arg2: memref<36x8xf32, #tpu.memory_space<vmem>>, %arg3: memref<1x8xf32, #tpu.memory_space<vmem>>, %arg4: memref<72x16xf32, #tpu.memory_space<vmem>>, %arg5: memref<1x16xf32, #tpu.memory_space<vmem>>, %arg6: memref<64x256xf32, #tpu.memory_space<vmem>>, %arg7: memref<144x16xf32, #tpu.memory_space<vmem>>, %arg8: memref<1x16xf32, #tpu.memory_space<vmem>>, %arg9: memref<16x64xf32, #tpu.memory_space<vmem>>, %arg10: memref<144x32xf32, #tpu.memory_space<vmem>>, %arg11: memref<1x32xf32, #tpu.memory_space<vmem>>, %arg12: memref<4x16xf32, #tpu.memory_space<vmem>>, %arg13: memref<1x4x32xf32, #tpu.memory_space<vmem>>, %arg14: memref<290x16xf32, #tpu.memory_space<vmem>>) attributes {dimension_semantics = [#tpu.dimension_semantics<parallel>], iteration_bounds = array<i64: 2>, scalar_prefetch = 0 : i64, scratch_operands = 1 : i64, tpu.core_type = #tpu.core_type<tc>, window_params = [{transform_indices = @transform_0, window_bounds = array<i64: 1, 256, 4>}, {pipeline_mode = #tpu.pipeline_mode<synchronous>, transform_indices = @transform_1, window_bounds = array<i64: 36, 8>}, {pipeline_mode = #tpu.pipeline_mode<synchronous>, transform_indices = @transform_2, window_bounds = array<i64: 1, 8>}, {pipeline_mode = #tpu.pipeline_mode<synchronous>, transform_indices = @transform_3, window_bounds = array<i64: 72, 16>}, {pipeline_mode = #tpu.pipeline_mode<synchronous>, transform_indices = @transform_4, window_bounds = array<i64: 1, 16>}, {pipeline_mode = #tpu.pipeline_mode<synchronous>, transform_indices = @transform_5, window_bounds = array<i64: 64, 256>}, {pipeline_mode = #tpu.pipeline_mode<synchronous>, transform_indices = @transform_6, window_bounds = array<i64: 144, 16>}, {pipeline_mode = #tpu.pipeline_mode<synchronous>, transform_indices = @transform_7, window_bounds = array<i64: 1, 16>}, {pipeline_mode = #tpu.pipeline_mode<synchronous>, transform_indices = @transform_8, window_bounds = array<i64: 16, 64>}, {pipeline_mode = #tpu.pipeline_mode<synchronous>, transform_indices = @transform_9, window_bounds = array<i64: 144, 32>}, {pipeline_mode = #tpu.pipeline_mode<synchronous>, transform_indices = @transform_10, window_bounds = array<i64: 1, 32>}, {pipeline_mode = #tpu.pipeline_mode<synchronous>, transform_indices = @transform_11, window_bounds = array<i64: 4, 16>}, {transform_indices = @transform_12, window_bounds = array<i64: 1, 4, 32>}]} {
    %c0 = arith.constant 0 : index
    %c0_0 = arith.constant 0 : index
    %c0_1 = arith.constant 0 : index
    %0 = vector.load %arg1[%c0, %c0_0, %c0_1] : memref<1x256x4xf32, #tpu.memory_space<vmem>>, vector<1x256x4xf32>
    %1 = vector.shape_cast %0 : vector<1x256x4xf32> to vector<256x4xf32>
    %cst = arith.constant 0.000000e+00 : f32
    %2 = vector.broadcast %cst : f32 to vector<290x16xf32>
    %c0_2 = arith.constant 0 : index
    %c0_3 = arith.constant 0 : index
    %3 = vector.load %arg14[%c0_2, %c0_3] : memref<290x16xf32, #tpu.memory_space<vmem>>, vector<290x16xf32>
    tpu.vector_store %arg14[%c0_2, %c0_3], %2 {strides = array<i32>} : memref<290x16xf32, #tpu.memory_space<vmem>>, vector<290x16xf32>,
    %c17 = arith.constant 17 : index
    %c0_4 = arith.constant 0 : index
    %4 = vector.load %arg14[%c17, %c0_4] : memref<290x16xf32, #tpu.memory_space<vmem>>, vector<256x4xf32>
    tpu.vector_store %arg14[%c17, %c0_4], %1 {strides = array<i32>} : memref<290x16xf32, #tpu.memory_space<vmem>>, vector<256x4xf32>,
    %5 = tpu.iota {dimensions = array<i32: 0>} : vector<256x1xi32>
    %c16_i32 = arith.constant 16 : i32
    %c0_i32 = arith.constant 0 : i32
    %6 = arith.cmpi eq, %c16_i32, %c0_i32 : i32
    %c1_i32 = arith.constant 1 : i32
    %7 = arith.select %6, %c1_i32, %c16_i32 : i32
    %8 = vector.broadcast %7 : i32 to vector<256x1xi32>
    %9 = arith.remsi %5, %8 : vector<256x1xi32>
    %c0_i32_5 = arith.constant 0 : i32
    %10 = vector.broadcast %c0_i32_5 : i32 to vector<256x1xi32>
    %11 = arith.cmpi ne, %9, %10 : vector<256x1xi32>
    %c0_i32_6 = arith.constant 0 : i32
    %12 = vector.broadcast %c0_i32_6 : i32 to vector<256x1xi32>
    %13 = arith.cmpi slt, %9, %12 : vector<256x1xi32>
    %c0_i32_7 = arith.constant 0 : i32
    %14 = arith.cmpi slt, %7, %c0_i32_7 : i32
    %15 = vector.broadcast %14 : i1 to vector<256x1xi1>
    %16 = vector.broadcast %15 : vector<256x1xi1> to vector<256x1xi1>
    %17 = arith.xori %13, %16 : vector<256x1xi1>
    %18 = arith.andi %17, %11 : vector<256x1xi1>
    %19 = vector.broadcast %7 : i32 to vector<256x1xi32>
    %20 = arith.addi %9, %19 : vector<256x1xi32>
    %21 = arith.select %18, %20, %9 : vector<256x1xi1>, vector<256x1xi32>
    %c0_i32_8 = arith.constant 0 : i32
    %22 = vector.broadcast %c0_i32_8 : i32 to vector<256x1xi32>
    %23 = arith.cmpi sgt, %21, %22 : vector<256x1xi32>
    %24 = arith.extui %23 : vector<256x1xi1> to vector<256x1xi32>
    %25 = arith.sitofp %24 : vector<256x1xi32> to vector<256x1xf32>
    %c15_i32 = arith.constant 15 : i32
    %26 = vector.broadcast %c15_i32 : i32 to vector<256x1xi32>
    %27 = arith.cmpi slt, %21, %26 : vector<256x1xi32>
    %28 = arith.extui %27 : vector<256x1xi1> to vector<256x1xi32>
    %29 = arith.sitofp %28 : vector<256x1xi32> to vector<256x1xf32>
    %cst_9 = arith.constant 0.000000e+00 : f32
    %30 = vector.broadcast %cst_9 : f32 to vector<256x8xf32>
    %c0_10 = arith.constant 0 : index
    %c0_11 = arith.constant 0 : index
    %31 = vector.load %arg14[%c0_10, %c0_11] : memref<290x16xf32, #tpu.memory_space<vmem>>, vector<256x4xf32>
    %32 = vector.broadcast %25 : vector<256x1xf32> to vector<256x4xf32>
    %33 = arith.mulf %31, %32 : vector<256x4xf32>
    %c0_12 = arith.constant 0 : index
    %c0_13 = arith.constant 0 : index
    %34 = vector.load %arg2[%c0_12, %c0_13] : memref<36x8xf32, #tpu.memory_space<vmem>>, vector<4x8xf32>
    %cst_14 = arith.constant dense<0.000000e+00> : vector<256x8xf32>
    %35 = tpu.matmul %33, %34, %cst_14 {dimension_numbers = #tpu.dot_dimension_numbers<[1], [0], [0], [1], [0, 0, 1, 1], [], []>} : vector<256x4xf32>, vector<4x8xf32>, vector<256x8xf32> -> vector<256x8xf32>
    %36 = arith.addf %30, %35 : vector<256x8xf32>
    %c1 = arith.constant 1 : index
    %c0_15 = arith.constant 0 : index
    %37 = vector.load %arg14[%c1, %c0_15] : memref<290x16xf32, #tpu.memory_space<vmem>>, vector<256x4xf32>
    %c4 = arith.constant 4 : index
    %c0_16 = arith.constant 0 : index
    %38 = vector.load %arg2[%c4, %c0_16] : memref<36x8xf32, #tpu.memory_space<vmem>>, vector<4x8xf32>
    %cst_17 = arith.constant dense<0.000000e+00> : vector<256x8xf32>
    %39 = tpu.matmul %37, %38, %cst_17 {dimension_numbers = #tpu.dot_dimension_numbers<[1], [0], [0], [1], [0, 0, 1, 1], [], []>} : vector<256x4xf32>, vector<4x8xf32>, vector<256x8xf32> -> vector<256x8xf32>
    %40 = arith.addf %36, %39 : vector<256x8xf32>
    %c2 = arith.constant 2 : index
    %c0_18 = arith.constant 0 : index
    %41 = vector.load %arg14[%c2, %c0_18] : memref<290x16xf32, #tpu.memory_space<vmem>>, vector<256x4xf32>
    %42 = vector.broadcast %29 : vector<256x1xf32> to vector<256x4xf32>
    %43 = arith.mulf %41, %42 : vector<256x4xf32>
    %c8 = arith.constant 8 : index
    %c0_19 = arith.constant 0 : index
    %44 = vector.load %arg2[%c8, %c0_19] : memref<36x8xf32, #tpu.memory_space<vmem>>, vector<4x8xf32>
    %cst_20 = arith.constant dense<0.000000e+00> : vector<256x8xf32>
    %45 = tpu.matmul %43, %44, %cst_20 {dimension_numbers = #tpu.dot_dimension_numbers<[1], [0], [0], [1], [0, 0, 1, 1], [], []>} : vector<256x4xf32>, vector<4x8xf32>, vector<256x8xf32> -> vector<256x8xf32>
    %46 = arith.addf %40, %45 : vector<256x8xf32>
    %c16 = arith.constant 16 : index
    %c0_21 = arith.constant 0 : index
    %47 = vector.load %arg14[%c16, %c0_21] : memref<290x16xf32, #tpu.memory_space<vmem>>, vector<256x4xf32>
    %48 = vector.broadcast %25 : vector<256x1xf32> to vector<256x4xf32>
    %49 = arith.mulf %47, %48 : vector<256x4xf32>
    %c12 = arith.constant 12 : index
    %c0_22 = arith.constant 0 : index
    %50 = vector.load %arg2[%c12, %c0_22] : memref<36x8xf32, #tpu.memory_space<vmem>>, vector<4x8xf32>
    %cst_23 = arith.constant dense<0.000000e+00> : vector<256x8xf32>
    %51 = tpu.matmul %49, %50, %cst_23 {dimension_numbers = #tpu.dot_dimension_numbers<[1], [0], [0], [1], [0, 0, 1, 1], [], []>} : vector<256x4xf32>, vector<4x8xf32>, vector<256x8xf32> -> vector<256x8xf32>
    %52 = arith.addf %46, %51 : vector<256x8xf32>
    %c17_24 = arith.constant 17 : index
    %c0_25 = arith.constant 0 : index
    %53 = vector.load %arg14[%c17_24, %c0_25] : memref<290x16xf32, #tpu.memory_space<vmem>>, vector<256x4xf32>
    %c16_26 = arith.constant 16 : index
    %c0_27 = arith.constant 0 : index
    %54 = vector.load %arg2[%c16_26, %c0_27] : memref<36x8xf32, #tpu.memory_space<vmem>>, vector<4x8xf32>
    %cst_28 = arith.constant dense<0.000000e+00> : vector<256x8xf32>
    %55 = tpu.matmul %53, %54, %cst_28 {dimension_numbers = #tpu.dot_dimension_numbers<[1], [0], [0], [1], [0, 0, 1, 1], [], []>} : vector<256x4xf32>, vector<4x8xf32>, vector<256x8xf32> -> vector<256x8xf32>
    %56 = arith.addf %52, %55 : vector<256x8xf32>
    %c18 = arith.constant 18 : index
    %c0_29 = arith.constant 0 : index
    %57 = vector.load %arg14[%c18, %c0_29] : memref<290x16xf32, #tpu.memory_space<vmem>>, vector<256x4xf32>
    %58 = vector.broadcast %29 : vector<256x1xf32> to vector<256x4xf32>
    %59 = arith.mulf %57, %58 : vector<256x4xf32>
    %c20 = arith.constant 20 : index
    %c0_30 = arith.constant 0 : index
    %60 = vector.load %arg2[%c20, %c0_30] : memref<36x8xf32, #tpu.memory_space<vmem>>, vector<4x8xf32>
    %cst_31 = arith.constant dense<0.000000e+00> : vector<256x8xf32>
    %61 = tpu.matmul %59, %60, %cst_31 {dimension_numbers = #tpu.dot_dimension_numbers<[1], [0], [0], [1], [0, 0, 1, 1], [], []>} : vector<256x4xf32>, vector<4x8xf32>, vector<256x8xf32> -> vector<256x8xf32>
    %62 = arith.addf %56, %61 : vector<256x8xf32>
    %c32 = arith.constant 32 : index
    %c0_32 = arith.constant 0 : index
    %63 = vector.load %arg14[%c32, %c0_32] : memref<290x16xf32, #tpu.memory_space<vmem>>, vector<256x4xf32>
    %64 = vector.broadcast %25 : vector<256x1xf32> to vector<256x4xf32>
    %65 = arith.mulf %63, %64 : vector<256x4xf32>
    %c24 = arith.constant 24 : index
    %c0_33 = arith.constant 0 : index
    %66 = vector.load %arg2[%c24, %c0_33] : memref<36x8xf32, #tpu.memory_space<vmem>>, vector<4x8xf32>
    %cst_34 = arith.constant dense<0.000000e+00> : vector<256x8xf32>
    %67 = tpu.matmul %65, %66, %cst_34 {dimension_numbers = #tpu.dot_dimension_numbers<[1], [0], [0], [1], [0, 0, 1, 1], [], []>} : vector<256x4xf32>, vector<4x8xf32>, vector<256x8xf32> -> vector<256x8xf32>
    %68 = arith.addf %62, %67 : vector<256x8xf32>
    %c33 = arith.constant 33 : index
    %c0_35 = arith.constant 0 : index
    %69 = vector.load %arg14[%c33, %c0_35] : memref<290x16xf32, #tpu.memory_space<vmem>>, vector<256x4xf32>
    %c28 = arith.constant 28 : index
    %c0_36 = arith.constant 0 : index
    %70 = vector.load %arg2[%c28, %c0_36] : memref<36x8xf32, #tpu.memory_space<vmem>>, vector<4x8xf32>
    %cst_37 = arith.constant dense<0.000000e+00> : vector<256x8xf32>
    %71 = tpu.matmul %69, %70, %cst_37 {dimension_numbers = #tpu.dot_dimension_numbers<[1], [0], [0], [1], [0, 0, 1, 1], [], []>} : vector<256x4xf32>, vector<4x8xf32>, vector<256x8xf32> -> vector<256x8xf32>
    %72 = arith.addf %68, %71 : vector<256x8xf32>
    %c34 = arith.constant 34 : index
    %c0_38 = arith.constant 0 : index
    %73 = vector.load %arg14[%c34, %c0_38] : memref<290x16xf32, #tpu.memory_space<vmem>>, vector<256x4xf32>
    %74 = vector.broadcast %29 : vector<256x1xf32> to vector<256x4xf32>
    %75 = arith.mulf %73, %74 : vector<256x4xf32>
    %c32_39 = arith.constant 32 : index
    %c0_40 = arith.constant 0 : index
    %76 = vector.load %arg2[%c32_39, %c0_40] : memref<36x8xf32, #tpu.memory_space<vmem>>, vector<4x8xf32>
    %cst_41 = arith.constant dense<0.000000e+00> : vector<256x8xf32>
    %77 = tpu.matmul %75, %76, %cst_41 {dimension_numbers = #tpu.dot_dimension_numbers<[1], [0], [0], [1], [0, 0, 1, 1], [], []>} : vector<256x4xf32>, vector<4x8xf32>, vector<256x8xf32> -> vector<256x8xf32>
    %78 = arith.addf %72, %77 : vector<256x8xf32>
    %c0_42 = arith.constant 0 : index
    %c0_43 = arith.constant 0 : index
    %79 = vector.load %arg3[%c0_42, %c0_43] : memref<1x8xf32, #tpu.memory_space<vmem>>, vector<1x8xf32>
    %80 = vector.broadcast %79 : vector<1x8xf32> to vector<256x8xf32>
    %81 = arith.addf %78, %80 : vector<256x8xf32>
    %cst_44 = arith.constant 5.000000e-01 : f32
    %82 = vector.broadcast %cst_44 : f32 to vector<256x8xf32>
    %83 = arith.mulf %82, %81 : vector<256x8xf32>
    %cst_45 = arith.constant 0.707106769 : f32
    %84 = vector.broadcast %cst_45 : f32 to vector<256x8xf32>
    %85 = arith.mulf %81, %84 : vector<256x8xf32>
    %86 = math.erf %85 : vector<256x8xf32>
    %cst_46 = arith.constant 1.000000e+00 : f32
    %87 = vector.broadcast %cst_46 : f32 to vector<256x8xf32>
    %88 = arith.addf %87, %86 : vector<256x8xf32>
    %89 = arith.mulf %83, %88 : vector<256x8xf32>
    %cst_47 = arith.constant 0.000000e+00 : f32
    %90 = vector.broadcast %cst_47 : f32 to vector<290x16xf32>
    %c0_48 = arith.constant 0 : index
    %c0_49 = arith.constant 0 : index
    %91 = vector.load %arg14[%c0_48, %c0_49] : memref<290x16xf32, #tpu.memory_space<vmem>>, vector<290x16xf32>
    tpu.vector_store %arg14[%c0_48, %c0_49], %90 {strides = array<i32>} : memref<290x16xf32, #tpu.memory_space<vmem>>, vector<290x16xf32>,
    %c17_50 = arith.constant 17 : index
    %c0_51 = arith.constant 0 : index
    %92 = vector.load %arg14[%c17_50, %c0_51] : memref<290x16xf32, #tpu.memory_space<vmem>>, vector<256x8xf32>
    tpu.vector_store %arg14[%c17_50, %c0_51], %89 {strides = array<i32>} : memref<290x16xf32, #tpu.memory_space<vmem>>, vector<256x8xf32>,
    %93 = tpu.iota {dimensions = array<i32: 0>} : vector<256x1xi32>
    %c16_i32_52 = arith.constant 16 : i32
    %c0_i32_53 = arith.constant 0 : i32
    %94 = arith.cmpi eq, %c16_i32_52, %c0_i32_53 : i32
    %c1_i32_54 = arith.constant 1 : i32
    %95 = arith.select %94, %c1_i32_54, %c16_i32_52 : i32
    %96 = vector.broadcast %95 : i32 to vector<256x1xi32>
    %97 = arith.remsi %93, %96 : vector<256x1xi32>
    %c0_i32_55 = arith.constant 0 : i32
    %98 = vector.broadcast %c0_i32_55 : i32 to vector<256x1xi32>
    %99 = arith.cmpi ne, %97, %98 : vector<256x1xi32>
    %c0_i32_56 = arith.constant 0 : i32
    %100 = vector.broadcast %c0_i32_56 : i32 to vector<256x1xi32>
    %101 = arith.cmpi slt, %97, %100 : vector<256x1xi32>
    %c0_i32_57 = arith.constant 0 : i32
    %102 = arith.cmpi slt, %95, %c0_i32_57 : i32
    %103 = vector.broadcast %102 : i1 to vector<256x1xi1>
    %104 = vector.broadcast %103 : vector<256x1xi1> to vector<256x1xi1>
    %105 = arith.xori %101, %104 : vector<256x1xi1>
    %106 = arith.andi %105, %99 : vector<256x1xi1>
    %107 = vector.broadcast %95 : i32 to vector<256x1xi32>
    %108 = arith.addi %97, %107 : vector<256x1xi32>
    %109 = arith.select %106, %108, %97 : vector<256x1xi1>, vector<256x1xi32>
    %c0_i32_58 = arith.constant 0 : i32
    %110 = vector.broadcast %c0_i32_58 : i32 to vector<256x1xi32>
    %111 = arith.cmpi sgt, %109, %110 : vector<256x1xi32>
    %112 = arith.extui %111 : vector<256x1xi1> to vector<256x1xi32>
    %113 = arith.sitofp %112 : vector<256x1xi32> to vector<256x1xf32>
    %c15_i32_59 = arith.constant 15 : i32
    %114 = vector.broadcast %c15_i32_59 : i32 to vector<256x1xi32>
    %115 = arith.cmpi slt, %109, %114 : vector<256x1xi32>
    %116 = arith.extui %115 : vector<256x1xi1> to vector<256x1xi32>
    %117 = arith.sitofp %116 : vector<256x1xi32> to vector<256x1xf32>
    %cst_60 = arith.constant 0.000000e+00 : f32
    %118 = vector.broadcast %cst_60 : f32 to vector<256x16xf32>
    %c0_61 = arith.constant 0 : index
    %c0_62 = arith.constant 0 : index
    %119 = vector.load %arg14[%c0_61, %c0_62] : memref<290x16xf32, #tpu.memory_space<vmem>>, vector<256x8xf32>
    %120 = vector.broadcast %113 : vector<256x1xf32> to vector<256x8xf32>
    %121 = arith.mulf %119, %120 : vector<256x8xf32>
    %c0_63 = arith.constant 0 : index
    %c0_64 = arith.constant 0 : index
    %122 = vector.load %arg4[%c0_63, %c0_64] : memref<72x16xf32, #tpu.memory_space<vmem>>, vector<8x16xf32>
    %cst_65 = arith.constant dense<0.000000e+00> : vector<256x16xf32>
    %123 = tpu.matmul %121, %122, %cst_65 {dimension_numbers = #tpu.dot_dimension_numbers<[1], [0], [0], [1], [0, 0, 1, 1], [], []>} : vector<256x8xf32>, vector<8x16xf32>, vector<256x16xf32> -> vector<256x16xf32>
    %124 = arith.addf %118, %123 : vector<256x16xf32>
    %c1_66 = arith.constant 1 : index
    %c0_67 = arith.constant 0 : index
    %125 = vector.load %arg14[%c1_66, %c0_67] : memref<290x16xf32, #tpu.memory_space<vmem>>, vector<256x8xf32>
    %c8_68 = arith.constant 8 : index
    %c0_69 = arith.constant 0 : index
    %126 = vector.load %arg4[%c8_68, %c0_69] : memref<72x16xf32, #tpu.memory_space<vmem>>, vector<8x16xf32>
    %cst_70 = arith.constant dense<0.000000e+00> : vector<256x16xf32>
    %127 = tpu.matmul %125, %126, %cst_70 {dimension_numbers = #tpu.dot_dimension_numbers<[1], [0], [0], [1], [0, 0, 1, 1], [], []>} : vector<256x8xf32>, vector<8x16xf32>, vector<256x16xf32> -> vector<256x16xf32>
    %128 = arith.addf %124, %127 : vector<256x16xf32>
    %c2_71 = arith.constant 2 : index
    %c0_72 = arith.constant 0 : index
    %129 = vector.load %arg14[%c2_71, %c0_72] : memref<290x16xf32, #tpu.memory_space<vmem>>, vector<256x8xf32>
    %130 = vector.broadcast %117 : vector<256x1xf32> to vector<256x8xf32>
    %131 = arith.mulf %129, %130 : vector<256x8xf32>
    %c16_73 = arith.constant 16 : index
    %c0_74 = arith.constant 0 : index
    %132 = vector.load %arg4[%c16_73, %c0_74] : memref<72x16xf32, #tpu.memory_space<vmem>>, vector<8x16xf32>
    %cst_75 = arith.constant dense<0.000000e+00> : vector<256x16xf32>
    %133 = tpu.matmul %131, %132, %cst_75 {dimension_numbers = #tpu.dot_dimension_numbers<[1], [0], [0], [1], [0, 0, 1, 1], [], []>} : vector<256x8xf32>, vector<8x16xf32>, vector<256x16xf32> -> vector<256x16xf32>
    %134 = arith.addf %128, %133 : vector<256x16xf32>
    %c16_76 = arith.constant 16 : index
    %c0_77 = arith.constant 0 : index
    %135 = vector.load %arg14[%c16_76, %c0_77] : memref<290x16xf32, #tpu.memory_space<vmem>>, vector<256x8xf32>
    %136 = vector.broadcast %113 : vector<256x1xf32> to vector<256x8xf32>
    %137 = arith.mulf %135, %136 : vector<256x8xf32>
    %c24_78 = arith.constant 24 : index
    %c0_79 = arith.constant 0 : index
    %138 = vector.load %arg4[%c24_78, %c0_79] : memref<72x16xf32, #tpu.memory_space<vmem>>, vector<8x16xf32>
    %cst_80 = arith.constant dense<0.000000e+00> : vector<256x16xf32>
    %139 = tpu.matmul %137, %138, %cst_80 {dimension_numbers = #tpu.dot_dimension_numbers<[1], [0], [0], [1], [0, 0, 1, 1], [], []>} : vector<256x8xf32>, vector<8x16xf32>, vector<256x16xf32> -> vector<256x16xf32>
    %140 = arith.addf %134, %139 : vector<256x16xf32>
    %c17_81 = arith.constant 17 : index
    %c0_82 = arith.constant 0 : index
    %141 = vector.load %arg14[%c17_81, %c0_82] : memref<290x16xf32, #tpu.memory_space<vmem>>, vector<256x8xf32>
    %c32_83 = arith.constant 32 : index
    %c0_84 = arith.constant 0 : index
    %142 = vector.load %arg4[%c32_83, %c0_84] : memref<72x16xf32, #tpu.memory_space<vmem>>, vector<8x16xf32>
    %cst_85 = arith.constant dense<0.000000e+00> : vector<256x16xf32>
    %143 = tpu.matmul %141, %142, %cst_85 {dimension_numbers = #tpu.dot_dimension_numbers<[1], [0], [0], [1], [0, 0, 1, 1], [], []>} : vector<256x8xf32>, vector<8x16xf32>, vector<256x16xf32> -> vector<256x16xf32>
    %144 = arith.addf %140, %143 : vector<256x16xf32>
    %c18_86 = arith.constant 18 : index
    %c0_87 = arith.constant 0 : index
    %145 = vector.load %arg14[%c18_86, %c0_87] : memref<290x16xf32, #tpu.memory_space<vmem>>, vector<256x8xf32>
    %146 = vector.broadcast %117 : vector<256x1xf32> to vector<256x8xf32>
    %147 = arith.mulf %145, %146 : vector<256x8xf32>
    %c40 = arith.constant 40 : index
    %c0_88 = arith.constant 0 : index
    %148 = vector.load %arg4[%c40, %c0_88] : memref<72x16xf32, #tpu.memory_space<vmem>>, vector<8x16xf32>
    %cst_89 = arith.constant dense<0.000000e+00> : vector<256x16xf32>
    %149 = tpu.matmul %147, %148, %cst_89 {dimension_numbers = #tpu.dot_dimension_numbers<[1], [0], [0], [1], [0, 0, 1, 1], [], []>} : vector<256x8xf32>, vector<8x16xf32>, vector<256x16xf32> -> vector<256x16xf32>
    %150 = arith.addf %144, %149 : vector<256x16xf32>
    %c32_90 = arith.constant 32 : index
    %c0_91 = arith.constant 0 : index
    %151 = vector.load %arg14[%c32_90, %c0_91] : memref<290x16xf32, #tpu.memory_space<vmem>>, vector<256x8xf32>
    %152 = vector.broadcast %113 : vector<256x1xf32> to vector<256x8xf32>
    %153 = arith.mulf %151, %152 : vector<256x8xf32>
    %c48 = arith.constant 48 : index
    %c0_92 = arith.constant 0 : index
    %154 = vector.load %arg4[%c48, %c0_92] : memref<72x16xf32, #tpu.memory_space<vmem>>, vector<8x16xf32>
    %cst_93 = arith.constant dense<0.000000e+00> : vector<256x16xf32>
    %155 = tpu.matmul %153, %154, %cst_93 {dimension_numbers = #tpu.dot_dimension_numbers<[1], [0], [0], [1], [0, 0, 1, 1], [], []>} : vector<256x8xf32>, vector<8x16xf32>, vector<256x16xf32> -> vector<256x16xf32>
    %156 = arith.addf %150, %155 : vector<256x16xf32>
    %c33_94 = arith.constant 33 : index
    %c0_95 = arith.constant 0 : index
    %157 = vector.load %arg14[%c33_94, %c0_95] : memref<290x16xf32, #tpu.memory_space<vmem>>, vector<256x8xf32>
    %c56 = arith.constant 56 : index
    %c0_96 = arith.constant 0 : index
    %158 = vector.load %arg4[%c56, %c0_96] : memref<72x16xf32, #tpu.memory_space<vmem>>, vector<8x16xf32>
    %cst_97 = arith.constant dense<0.000000e+00> : vector<256x16xf32>
    %159 = tpu.matmul %157, %158, %cst_97 {dimension_numbers = #tpu.dot_dimension_numbers<[1], [0], [0], [1], [0, 0, 1, 1], [], []>} : vector<256x8xf32>, vector<8x16xf32>, vector<256x16xf32> -> vector<256x16xf32>
    %160 = arith.addf %156, %159 : vector<256x16xf32>
    %c34_98 = arith.constant 34 : index
    %c0_99 = arith.constant 0 : index
    %161 = vector.load %arg14[%c34_98, %c0_99] : memref<290x16xf32, #tpu.memory_space<vmem>>, vector<256x8xf32>
    %162 = vector.broadcast %117 : vector<256x1xf32> to vector<256x8xf32>
    %163 = arith.mulf %161, %162 : vector<256x8xf32>
    %c64 = arith.constant 64 : index
    %c0_100 = arith.constant 0 : index
    %164 = vector.load %arg4[%c64, %c0_100] : memref<72x16xf32, #tpu.memory_space<vmem>>, vector<8x16xf32>
    %cst_101 = arith.constant dense<0.000000e+00> : vector<256x16xf32>
    %165 = tpu.matmul %163, %164, %cst_101 {dimension_numbers = #tpu.dot_dimension_numbers<[1], [0], [0], [1], [0, 0, 1, 1], [], []>} : vector<256x8xf32>, vector<8x16xf32>, vector<256x16xf32> -> vector<256x16xf32>
    %166 = arith.addf %160, %165 : vector<256x16xf32>
    %c0_102 = arith.constant 0 : index
    %c0_103 = arith.constant 0 : index
    %167 = vector.load %arg6[%c0_102, %c0_103] : memref<64x256xf32, #tpu.memory_space<vmem>>, vector<64x256xf32>
    %cst_104 = arith.constant dense<0.000000e+00> : vector<64x16xf32>
    %168 = tpu.matmul %167, %166, %cst_104 {dimension_numbers = #tpu.dot_dimension_numbers<[1], [0], [0], [1], [0, 0, 1, 1], [], []>} : vector<64x256xf32>, vector<256x16xf32>, vector<64x16xf32> -> vector<64x16xf32>
    %c0_105 = arith.constant 0 : index
    %c0_106 = arith.constant 0 : index
    %169 = vector.load %arg5[%c0_105, %c0_106] : memref<1x16xf32, #tpu.memory_space<vmem>>, vector<1x16xf32>
    %170 = vector.broadcast %169 : vector<1x16xf32> to vector<64x16xf32>
    %171 = arith.addf %168, %170 : vector<64x16xf32>
    %cst_107 = arith.constant 5.000000e-01 : f32
    %172 = vector.broadcast %cst_107 : f32 to vector<64x16xf32>
    %173 = arith.mulf %172, %171 : vector<64x16xf32>
    %cst_108 = arith.constant 0.707106769 : f32
    %174 = vector.broadcast %cst_108 : f32 to vector<64x16xf32>
    %175 = arith.mulf %171, %174 : vector<64x16xf32>
    %176 = math.erf %175 : vector<64x16xf32>
    %cst_109 = arith.constant 1.000000e+00 : f32
    %177 = vector.broadcast %cst_109 : f32 to vector<64x16xf32>
    %178 = arith.addf %177, %176 : vector<64x16xf32>
    %179 = arith.mulf %173, %178 : vector<64x16xf32>
    %cst_110 = arith.constant 0.000000e+00 : f32
    %180 = vector.broadcast %cst_110 : f32 to vector<290x16xf32>
    %c0_111 = arith.constant 0 : index
    %c0_112 = arith.constant 0 : index
    %181 = vector.load %arg14[%c0_111, %c0_112] : memref<290x16xf32, #tpu.memory_space<vmem>>, vector<290x16xf32>
    tpu.vector_store %arg14[%c0_111, %c0_112], %180 {strides = array<i32>} : memref<290x16xf32, #tpu.memory_space<vmem>>, vector<290x16xf32>,
    %c9 = arith.constant 9 : index
    %c0_113 = arith.constant 0 : index
    %182 = vector.load %arg14[%c9, %c0_113] : memref<290x16xf32, #tpu.memory_space<vmem>>, vector<64x16xf32>
    tpu.vector_store %arg14[%c9, %c0_113], %179 {strides = array<i32>} : memref<290x16xf32, #tpu.memory_space<vmem>>, vector<64x16xf32>,
    %183 = tpu.iota {dimensions = array<i32: 0>} : vector<64x1xi32>
    %c8_i32 = arith.constant 8 : i32
    %c0_i32_114 = arith.constant 0 : i32
    %184 = arith.cmpi eq, %c8_i32, %c0_i32_114 : i32
    %c1_i32_115 = arith.constant 1 : i32
    %185 = arith.select %184, %c1_i32_115, %c8_i32 : i32
    %186 = vector.broadcast %185 : i32 to vector<64x1xi32>
    %187 = arith.remsi %183, %186 : vector<64x1xi32>
    %c0_i32_116 = arith.constant 0 : i32
    %188 = vector.broadcast %c0_i32_116 : i32 to vector<64x1xi32>
    %189 = arith.cmpi ne, %187, %188 : vector<64x1xi32>
    %c0_i32_117 = arith.constant 0 : i32
    %190 = vector.broadcast %c0_i32_117 : i32 to vector<64x1xi32>
    %191 = arith.cmpi slt, %187, %190 : vector<64x1xi32>
    %c0_i32_118 = arith.constant 0 : i32
    %192 = arith.cmpi slt, %185, %c0_i32_118 : i32
    %193 = vector.broadcast %192 : i1 to vector<64x1xi1>
    %194 = vector.broadcast %193 : vector<64x1xi1> to vector<64x1xi1>
    %195 = arith.xori %191, %194 : vector<64x1xi1>
    %196 = arith.andi %195, %189 : vector<64x1xi1>
    %197 = vector.broadcast %185 : i32 to vector<64x1xi32>
    %198 = arith.addi %187, %197 : vector<64x1xi32>
    %199 = arith.select %196, %198, %187 : vector<64x1xi1>, vector<64x1xi32>
    %c0_i32_119 = arith.constant 0 : i32
    %200 = vector.broadcast %c0_i32_119 : i32 to vector<64x1xi32>
    %201 = arith.cmpi sgt, %199, %200 : vector<64x1xi32>
    %202 = arith.extui %201 : vector<64x1xi1> to vector<64x1xi32>
    %203 = arith.sitofp %202 : vector<64x1xi32> to vector<64x1xf32>
    %c7_i32 = arith.constant 7 : i32
    %204 = vector.broadcast %c7_i32 : i32 to vector<64x1xi32>
    %205 = arith.cmpi slt, %199, %204 : vector<64x1xi32>
    %206 = arith.extui %205 : vector<64x1xi1> to vector<64x1xi32>
    %207 = arith.sitofp %206 : vector<64x1xi32> to vector<64x1xf32>
    %cst_120 = arith.constant 0.000000e+00 : f32
    %208 = vector.broadcast %cst_120 : f32 to vector<64x16xf32>
    %c0_121 = arith.constant 0 : index
    %c0_122 = arith.constant 0 : index
    %209 = vector.load %arg14[%c0_121, %c0_122] : memref<290x16xf32, #tpu.memory_space<vmem>>, vector<64x16xf32>
    %210 = vector.broadcast %203 : vector<64x1xf32> to vector<64x16xf32>
    %211 = arith.mulf %209, %210 : vector<64x16xf32>
    %c0_123 = arith.constant 0 : index
    %c0_124 = arith.constant 0 : index
    %212 = vector.load %arg7[%c0_123, %c0_124] : memref<144x16xf32, #tpu.memory_space<vmem>>, vector<16x16xf32>
    %cst_125 = arith.constant dense<0.000000e+00> : vector<64x16xf32>
    %213 = tpu.matmul %211, %212, %cst_125 {dimension_numbers = #tpu.dot_dimension_numbers<[1], [0], [0], [1], [0, 0, 1, 1], [], []>} : vector<64x16xf32>, vector<16x16xf32>, vector<64x16xf32> -> vector<64x16xf32>
    %214 = arith.addf %208, %213 : vector<64x16xf32>
    %c1_126 = arith.constant 1 : index
    %c0_127 = arith.constant 0 : index
    %215 = vector.load %arg14[%c1_126, %c0_127] : memref<290x16xf32, #tpu.memory_space<vmem>>, vector<64x16xf32>
    %c16_128 = arith.constant 16 : index
    %c0_129 = arith.constant 0 : index
    %216 = vector.load %arg7[%c16_128, %c0_129] : memref<144x16xf32, #tpu.memory_space<vmem>>, vector<16x16xf32>
    %cst_130 = arith.constant dense<0.000000e+00> : vector<64x16xf32>
    %217 = tpu.matmul %215, %216, %cst_130 {dimension_numbers = #tpu.dot_dimension_numbers<[1], [0], [0], [1], [0, 0, 1, 1], [], []>} : vector<64x16xf32>, vector<16x16xf32>, vector<64x16xf32> -> vector<64x16xf32>
    %218 = arith.addf %214, %217 : vector<64x16xf32>
    %c2_131 = arith.constant 2 : index
    %c0_132 = arith.constant 0 : index
    %219 = vector.load %arg14[%c2_131, %c0_132] : memref<290x16xf32, #tpu.memory_space<vmem>>, vector<64x16xf32>
    %220 = vector.broadcast %207 : vector<64x1xf32> to vector<64x16xf32>
    %221 = arith.mulf %219, %220 : vector<64x16xf32>
    %c32_133 = arith.constant 32 : index
    %c0_134 = arith.constant 0 : index
    %222 = vector.load %arg7[%c32_133, %c0_134] : memref<144x16xf32, #tpu.memory_space<vmem>>, vector<16x16xf32>
    %cst_135 = arith.constant dense<0.000000e+00> : vector<64x16xf32>
    %223 = tpu.matmul %221, %222, %cst_135 {dimension_numbers = #tpu.dot_dimension_numbers<[1], [0], [0], [1], [0, 0, 1, 1], [], []>} : vector<64x16xf32>, vector<16x16xf32>, vector<64x16xf32> -> vector<64x16xf32>
    %224 = arith.addf %218, %223 : vector<64x16xf32>
    %c8_136 = arith.constant 8 : index
    %c0_137 = arith.constant 0 : index
    %225 = vector.load %arg14[%c8_136, %c0_137] : memref<290x16xf32, #tpu.memory_space<vmem>>, vector<64x16xf32>
    %226 = vector.broadcast %203 : vector<64x1xf32> to vector<64x16xf32>
    %227 = arith.mulf %225, %226 : vector<64x16xf32>
    %c48_138 = arith.constant 48 : index
    %c0_139 = arith.constant 0 : index
    %228 = vector.load %arg7[%c48_138, %c0_139] : memref<144x16xf32, #tpu.memory_space<vmem>>, vector<16x16xf32>
    %cst_140 = arith.constant dense<0.000000e+00> : vector<64x16xf32>
    %229 = tpu.matmul %227, %228, %cst_140 {dimension_numbers = #tpu.dot_dimension_numbers<[1], [0], [0], [1], [0, 0, 1, 1], [], []>} : vector<64x16xf32>, vector<16x16xf32>, vector<64x16xf32> -> vector<64x16xf32>
    %230 = arith.addf %224, %229 : vector<64x16xf32>
    %c9_141 = arith.constant 9 : index
    %c0_142 = arith.constant 0 : index
    %231 = vector.load %arg14[%c9_141, %c0_142] : memref<290x16xf32, #tpu.memory_space<vmem>>, vector<64x16xf32>
    %c64_143 = arith.constant 64 : index
    %c0_144 = arith.constant 0 : index
    %232 = vector.load %arg7[%c64_143, %c0_144] : memref<144x16xf32, #tpu.memory_space<vmem>>, vector<16x16xf32>
    %cst_145 = arith.constant dense<0.000000e+00> : vector<64x16xf32>
    %233 = tpu.matmul %231, %232, %cst_145 {dimension_numbers = #tpu.dot_dimension_numbers<[1], [0], [0], [1], [0, 0, 1, 1], [], []>} : vector<64x16xf32>, vector<16x16xf32>, vector<64x16xf32> -> vector<64x16xf32>
    %234 = arith.addf %230, %233 : vector<64x16xf32>
    %c10 = arith.constant 10 : index
    %c0_146 = arith.constant 0 : index
    %235 = vector.load %arg14[%c10, %c0_146] : memref<290x16xf32, #tpu.memory_space<vmem>>, vector<64x16xf32>
    %236 = vector.broadcast %207 : vector<64x1xf32> to vector<64x16xf32>
    %237 = arith.mulf %235, %236 : vector<64x16xf32>
    %c80 = arith.constant 80 : index
    %c0_147 = arith.constant 0 : index
    %238 = vector.load %arg7[%c80, %c0_147] : memref<144x16xf32, #tpu.memory_space<vmem>>, vector<16x16xf32>
    %cst_148 = arith.constant dense<0.000000e+00> : vector<64x16xf32>
    %239 = tpu.matmul %237, %238, %cst_148 {dimension_numbers = #tpu.dot_dimension_numbers<[1], [0], [0], [1], [0, 0, 1, 1], [], []>} : vector<64x16xf32>, vector<16x16xf32>, vector<64x16xf32> -> vector<64x16xf32>
    %240 = arith.addf %234, %239 : vector<64x16xf32>
    %c16_149 = arith.constant 16 : index
    %c0_150 = arith.constant 0 : index
    %241 = vector.load %arg14[%c16_149, %c0_150] : memref<290x16xf32, #tpu.memory_space<vmem>>, vector<64x16xf32>
    %242 = vector.broadcast %203 : vector<64x1xf32> to vector<64x16xf32>
    %243 = arith.mulf %241, %242 : vector<64x16xf32>
    %c96 = arith.constant 96 : index
    %c0_151 = arith.constant 0 : index
    %244 = vector.load %arg7[%c96, %c0_151] : memref<144x16xf32, #tpu.memory_space<vmem>>, vector<16x16xf32>
    %cst_152 = arith.constant dense<0.000000e+00> : vector<64x16xf32>
    %245 = tpu.matmul %243, %244, %cst_152 {dimension_numbers = #tpu.dot_dimension_numbers<[1], [0], [0], [1], [0, 0, 1, 1], [], []>} : vector<64x16xf32>, vector<16x16xf32>, vector<64x16xf32> -> vector<64x16xf32>
    %246 = arith.addf %240, %245 : vector<64x16xf32>
    %c17_153 = arith.constant 17 : index
    %c0_154 = arith.constant 0 : index
    %247 = vector.load %arg14[%c17_153, %c0_154] : memref<290x16xf32, #tpu.memory_space<vmem>>, vector<64x16xf32>
    %c112 = arith.constant 112 : index
    %c0_155 = arith.constant 0 : index
    %248 = vector.load %arg7[%c112, %c0_155] : memref<144x16xf32, #tpu.memory_space<vmem>>, vector<16x16xf32>
    %cst_156 = arith.constant dense<0.000000e+00> : vector<64x16xf32>
    %249 = tpu.matmul %247, %248, %cst_156 {dimension_numbers = #tpu.dot_dimension_numbers<[1], [0], [0], [1], [0, 0, 1, 1], [], []>} : vector<64x16xf32>, vector<16x16xf32>, vector<64x16xf32> -> vector<64x16xf32>
    %250 = arith.addf %246, %249 : vector<64x16xf32>
    %c18_157 = arith.constant 18 : index
    %c0_158 = arith.constant 0 : index
    %251 = vector.load %arg14[%c18_157, %c0_158] : memref<290x16xf32, #tpu.memory_space<vmem>>, vector<64x16xf32>
    %252 = vector.broadcast %207 : vector<64x1xf32> to vector<64x16xf32>
    %253 = arith.mulf %251, %252 : vector<64x16xf32>
    %c128 = arith.constant 128 : index
    %c0_159 = arith.constant 0 : index
    %254 = vector.load %arg7[%c128, %c0_159] : memref<144x16xf32, #tpu.memory_space<vmem>>, vector<16x16xf32>
    %cst_160 = arith.constant dense<0.000000e+00> : vector<64x16xf32>
    %255 = tpu.matmul %253, %254, %cst_160 {dimension_numbers = #tpu.dot_dimension_numbers<[1], [0], [0], [1], [0, 0, 1, 1], [], []>} : vector<64x16xf32>, vector<16x16xf32>, vector<64x16xf32> -> vector<64x16xf32>
    %256 = arith.addf %250, %255 : vector<64x16xf32>
    %c0_161 = arith.constant 0 : index
    %c0_162 = arith.constant 0 : index
    %257 = vector.load %arg9[%c0_161, %c0_162] : memref<16x64xf32, #tpu.memory_space<vmem>>, vector<16x64xf32>
    %cst_163 = arith.constant dense<0.000000e+00> : vector<16x16xf32>
    %258 = tpu.matmul %257, %256, %cst_163 {dimension_numbers = #tpu.dot_dimension_numbers<[1], [0], [0], [1], [0, 0, 1, 1], [], []>} : vector<16x64xf32>, vector<64x16xf32>, vector<16x16xf32> -> vector<16x16xf32>
    %c0_164 = arith.constant 0 : index
    %c0_165 = arith.constant 0 : index
    %259 = vector.load %arg8[%c0_164, %c0_165] : memref<1x16xf32, #tpu.memory_space<vmem>>, vector<1x16xf32>
    %260 = vector.broadcast %259 : vector<1x16xf32> to vector<16x16xf32>
    %261 = arith.addf %258, %260 : vector<16x16xf32>
    %cst_166 = arith.constant 5.000000e-01 : f32
    %262 = vector.broadcast %cst_166 : f32 to vector<16x16xf32>
    %263 = arith.mulf %262, %261 : vector<16x16xf32>
    %cst_167 = arith.constant 0.707106769 : f32
    %264 = vector.broadcast %cst_167 : f32 to vector<16x16xf32>
    %265 = arith.mulf %261, %264 : vector<16x16xf32>
    %266 = math.erf %265 : vector<16x16xf32>
    %cst_168 = arith.constant 1.000000e+00 : f32
    %267 = vector.broadcast %cst_168 : f32 to vector<16x16xf32>
    %268 = arith.addf %267, %266 : vector<16x16xf32>
    %269 = arith.mulf %263, %268 : vector<16x16xf32>
    %cst_169 = arith.constant 0.000000e+00 : f32
    %270 = vector.broadcast %cst_169 : f32 to vector<290x16xf32>
    %c0_170 = arith.constant 0 : index
    %c0_171 = arith.constant 0 : index
    %271 = vector.load %arg14[%c0_170, %c0_171] : memref<290x16xf32, #tpu.memory_space<vmem>>, vector<290x16xf32>
    tpu.vector_store %arg14[%c0_170, %c0_171], %270 {strides = array<i32>} : memref<290x16xf32, #tpu.memory_space<vmem>>, vector<290x16xf32>,
    %c5 = arith.constant 5 : index
    %c0_172 = arith.constant 0 : index
    %272 = vector.load %arg14[%c5, %c0_172] : memref<290x16xf32, #tpu.memory_space<vmem>>, vector<16x16xf32>
    tpu.vector_store %arg14[%c5, %c0_172], %269 {strides = array<i32>} : memref<290x16xf32, #tpu.memory_space<vmem>>, vector<16x16xf32>,
    %273 = tpu.iota {dimensions = array<i32: 0>} : vector<16x1xi32>
    %c4_i32 = arith.constant 4 : i32
    %c0_i32_173 = arith.constant 0 : i32
    %274 = arith.cmpi eq, %c4_i32, %c0_i32_173 : i32
    %c1_i32_174 = arith.constant 1 : i32
    %275 = arith.select %274, %c1_i32_174, %c4_i32 : i32
    %276 = vector.broadcast %275 : i32 to vector<16x1xi32>
    %277 = arith.remsi %273, %276 : vector<16x1xi32>
    %c0_i32_175 = arith.constant 0 : i32
    %278 = vector.broadcast %c0_i32_175 : i32 to vector<16x1xi32>
    %279 = arith.cmpi ne, %277, %278 : vector<16x1xi32>
    %c0_i32_176 = arith.constant 0 : i32
    %280 = vector.broadcast %c0_i32_176 : i32 to vector<16x1xi32>
    %281 = arith.cmpi slt, %277, %280 : vector<16x1xi32>
    %c0_i32_177 = arith.constant 0 : i32
    %282 = arith.cmpi slt, %275, %c0_i32_177 : i32
    %283 = vector.broadcast %282 : i1 to vector<16x1xi1>
    %284 = vector.broadcast %283 : vector<16x1xi1> to vector<16x1xi1>
    %285 = arith.xori %281, %284 : vector<16x1xi1>
    %286 = arith.andi %285, %279 : vector<16x1xi1>
    %287 = vector.broadcast %275 : i32 to vector<16x1xi32>
    %288 = arith.addi %277, %287 : vector<16x1xi32>
    %289 = arith.select %286, %288, %277 : vector<16x1xi1>, vector<16x1xi32>
    %c0_i32_178 = arith.constant 0 : i32
    %290 = vector.broadcast %c0_i32_178 : i32 to vector<16x1xi32>
    %291 = arith.cmpi sgt, %289, %290 : vector<16x1xi32>
    %292 = arith.extui %291 : vector<16x1xi1> to vector<16x1xi32>
    %293 = arith.sitofp %292 : vector<16x1xi32> to vector<16x1xf32>
    %c3_i32 = arith.constant 3 : i32
    %294 = vector.broadcast %c3_i32 : i32 to vector<16x1xi32>
    %295 = arith.cmpi slt, %289, %294 : vector<16x1xi32>
    %296 = arith.extui %295 : vector<16x1xi1> to vector<16x1xi32>
    %297 = arith.sitofp %296 : vector<16x1xi32> to vector<16x1xf32>
    %cst_179 = arith.constant 0.000000e+00 : f32
    %298 = vector.broadcast %cst_179 : f32 to vector<16x32xf32>
    %c0_180 = arith.constant 0 : index
    %c0_181 = arith.constant 0 : index
    %299 = vector.load %arg14[%c0_180, %c0_181] : memref<290x16xf32, #tpu.memory_space<vmem>>, vector<16x16xf32>
    %300 = vector.broadcast %293 : vector<16x1xf32> to vector<16x16xf32>
    %301 = arith.mulf %299, %300 : vector<16x16xf32>
    %c0_182 = arith.constant 0 : index
    %c0_183 = arith.constant 0 : index
    %302 = vector.load %arg10[%c0_182, %c0_183] : memref<144x32xf32, #tpu.memory_space<vmem>>, vector<16x32xf32>
    %cst_184 = arith.constant dense<0.000000e+00> : vector<16x32xf32>
    %303 = tpu.matmul %301, %302, %cst_184 {dimension_numbers = #tpu.dot_dimension_numbers<[1], [0], [0], [1], [0, 0, 1, 1], [], []>} : vector<16x16xf32>, vector<16x32xf32>, vector<16x32xf32> -> vector<16x32xf32>
    %304 = arith.addf %298, %303 : vector<16x32xf32>
    %c1_185 = arith.constant 1 : index
    %c0_186 = arith.constant 0 : index
    %305 = vector.load %arg14[%c1_185, %c0_186] : memref<290x16xf32, #tpu.memory_space<vmem>>, vector<16x16xf32>
    %c16_187 = arith.constant 16 : index
    %c0_188 = arith.constant 0 : index
    %306 = vector.load %arg10[%c16_187, %c0_188] : memref<144x32xf32, #tpu.memory_space<vmem>>, vector<16x32xf32>
    %cst_189 = arith.constant dense<0.000000e+00> : vector<16x32xf32>
    %307 = tpu.matmul %305, %306, %cst_189 {dimension_numbers = #tpu.dot_dimension_numbers<[1], [0], [0], [1], [0, 0, 1, 1], [], []>} : vector<16x16xf32>, vector<16x32xf32>, vector<16x32xf32> -> vector<16x32xf32>
    %308 = arith.addf %304, %307 : vector<16x32xf32>
    %c2_190 = arith.constant 2 : index
    %c0_191 = arith.constant 0 : index
    %309 = vector.load %arg14[%c2_190, %c0_191] : memref<290x16xf32, #tpu.memory_space<vmem>>, vector<16x16xf32>
    %310 = vector.broadcast %297 : vector<16x1xf32> to vector<16x16xf32>
    %311 = arith.mulf %309, %310 : vector<16x16xf32>
    %c32_192 = arith.constant 32 : index
    %c0_193 = arith.constant 0 : index
    %312 = vector.load %arg10[%c32_192, %c0_193] : memref<144x32xf32, #tpu.memory_space<vmem>>, vector<16x32xf32>
    %cst_194 = arith.constant dense<0.000000e+00> : vector<16x32xf32>
    %313 = tpu.matmul %311, %312, %cst_194 {dimension_numbers = #tpu.dot_dimension_numbers<[1], [0], [0], [1], [0, 0, 1, 1], [], []>} : vector<16x16xf32>, vector<16x32xf32>, vector<16x32xf32> -> vector<16x32xf32>
    %314 = arith.addf %308, %313 : vector<16x32xf32>
    %c4_195 = arith.constant 4 : index
    %c0_196 = arith.constant 0 : index
    %315 = vector.load %arg14[%c4_195, %c0_196] : memref<290x16xf32, #tpu.memory_space<vmem>>, vector<16x16xf32>
    %316 = vector.broadcast %293 : vector<16x1xf32> to vector<16x16xf32>
    %317 = arith.mulf %315, %316 : vector<16x16xf32>
    %c48_197 = arith.constant 48 : index
    %c0_198 = arith.constant 0 : index
    %318 = vector.load %arg10[%c48_197, %c0_198] : memref<144x32xf32, #tpu.memory_space<vmem>>, vector<16x32xf32>
    %cst_199 = arith.constant dense<0.000000e+00> : vector<16x32xf32>
    %319 = tpu.matmul %317, %318, %cst_199 {dimension_numbers = #tpu.dot_dimension_numbers<[1], [0], [0], [1], [0, 0, 1, 1], [], []>} : vector<16x16xf32>, vector<16x32xf32>, vector<16x32xf32> -> vector<16x32xf32>
    %320 = arith.addf %314, %319 : vector<16x32xf32>
    %c5_200 = arith.constant 5 : index
    %c0_201 = arith.constant 0 : index
    %321 = vector.load %arg14[%c5_200, %c0_201] : memref<290x16xf32, #tpu.memory_space<vmem>>, vector<16x16xf32>
    %c64_202 = arith.constant 64 : index
    %c0_203 = arith.constant 0 : index
    %322 = vector.load %arg10[%c64_202, %c0_203] : memref<144x32xf32, #tpu.memory_space<vmem>>, vector<16x32xf32>
    %cst_204 = arith.constant dense<0.000000e+00> : vector<16x32xf32>
    %323 = tpu.matmul %321, %322, %cst_204 {dimension_numbers = #tpu.dot_dimension_numbers<[1], [0], [0], [1], [0, 0, 1, 1], [], []>} : vector<16x16xf32>, vector<16x32xf32>, vector<16x32xf32> -> vector<16x32xf32>
    %324 = arith.addf %320, %323 : vector<16x32xf32>
    %c6 = arith.constant 6 : index
    %c0_205 = arith.constant 0 : index
    %325 = vector.load %arg14[%c6, %c0_205] : memref<290x16xf32, #tpu.memory_space<vmem>>, vector<16x16xf32>
    %326 = vector.broadcast %297 : vector<16x1xf32> to vector<16x16xf32>
    %327 = arith.mulf %325, %326 : vector<16x16xf32>
    %c80_206 = arith.constant 80 : index
    %c0_207 = arith.constant 0 : index
    %328 = vector.load %arg10[%c80_206, %c0_207] : memref<144x32xf32, #tpu.memory_space<vmem>>, vector<16x32xf32>
    %cst_208 = arith.constant dense<0.000000e+00> : vector<16x32xf32>
    %329 = tpu.matmul %327, %328, %cst_208 {dimension_numbers = #tpu.dot_dimension_numbers<[1], [0], [0], [1], [0, 0, 1, 1], [], []>} : vector<16x16xf32>, vector<16x32xf32>, vector<16x32xf32> -> vector<16x32xf32>
    %330 = arith.addf %324, %329 : vector<16x32xf32>
    %c8_209 = arith.constant 8 : index
    %c0_210 = arith.constant 0 : index
    %331 = vector.load %arg14[%c8_209, %c0_210] : memref<290x16xf32, #tpu.memory_space<vmem>>, vector<16x16xf32>
    %332 = vector.broadcast %293 : vector<16x1xf32> to vector<16x16xf32>
    %333 = arith.mulf %331, %332 : vector<16x16xf32>
    %c96_211 = arith.constant 96 : index
    %c0_212 = arith.constant 0 : index
    %334 = vector.load %arg10[%c96_211, %c0_212] : memref<144x32xf32, #tpu.memory_space<vmem>>, vector<16x32xf32>
    %cst_213 = arith.constant dense<0.000000e+00> : vector<16x32xf32>
    %335 = tpu.matmul %333, %334, %cst_213 {dimension_numbers = #tpu.dot_dimension_numbers<[1], [0], [0], [1], [0, 0, 1, 1], [], []>} : vector<16x16xf32>, vector<16x32xf32>, vector<16x32xf32> -> vector<16x32xf32>
    %336 = arith.addf %330, %335 : vector<16x32xf32>
    %c9_214 = arith.constant 9 : index
    %c0_215 = arith.constant 0 : index
    %337 = vector.load %arg14[%c9_214, %c0_215] : memref<290x16xf32, #tpu.memory_space<vmem>>, vector<16x16xf32>
    %c112_216 = arith.constant 112 : index
    %c0_217 = arith.constant 0 : index
    %338 = vector.load %arg10[%c112_216, %c0_217] : memref<144x32xf32, #tpu.memory_space<vmem>>, vector<16x32xf32>
    %cst_218 = arith.constant dense<0.000000e+00> : vector<16x32xf32>
    %339 = tpu.matmul %337, %338, %cst_218 {dimension_numbers = #tpu.dot_dimension_numbers<[1], [0], [0], [1], [0, 0, 1, 1], [], []>} : vector<16x16xf32>, vector<16x32xf32>, vector<16x32xf32> -> vector<16x32xf32>
    %340 = arith.addf %336, %339 : vector<16x32xf32>
    %c10_219 = arith.constant 10 : index
    %c0_220 = arith.constant 0 : index
    %341 = vector.load %arg14[%c10_219, %c0_220] : memref<290x16xf32, #tpu.memory_space<vmem>>, vector<16x16xf32>
    %342 = vector.broadcast %297 : vector<16x1xf32> to vector<16x16xf32>
    %343 = arith.mulf %341, %342 : vector<16x16xf32>
    %c128_221 = arith.constant 128 : index
    %c0_222 = arith.constant 0 : index
    %344 = vector.load %arg10[%c128_221, %c0_222] : memref<144x32xf32, #tpu.memory_space<vmem>>, vector<16x32xf32>
    %cst_223 = arith.constant dense<0.000000e+00> : vector<16x32xf32>
    %345 = tpu.matmul %343, %344, %cst_223 {dimension_numbers = #tpu.dot_dimension_numbers<[1], [0], [0], [1], [0, 0, 1, 1], [], []>} : vector<16x16xf32>, vector<16x32xf32>, vector<16x32xf32> -> vector<16x32xf32>
    %346 = arith.addf %340, %345 : vector<16x32xf32>
    %c0_224 = arith.constant 0 : index
    %c0_225 = arith.constant 0 : index
    %347 = vector.load %arg12[%c0_224, %c0_225] : memref<4x16xf32, #tpu.memory_space<vmem>>, vector<4x16xf32>
    %cst_226 = arith.constant dense<0.000000e+00> : vector<4x32xf32>
    %348 = tpu.matmul %347, %346, %cst_226 {dimension_numbers = #tpu.dot_dimension_numbers<[1], [0], [0], [1], [0, 0, 1, 1], [], []>} : vector<4x16xf32>, vector<16x32xf32>, vector<4x32xf32> -> vector<4x32xf32>
    %c0_227 = arith.constant 0 : index
    %c0_228 = arith.constant 0 : index
    %349 = vector.load %arg11[%c0_227, %c0_228] : memref<1x32xf32, #tpu.memory_space<vmem>>, vector<1x32xf32>
    %350 = vector.broadcast %349 : vector<1x32xf32> to vector<4x32xf32>
    %351 = arith.addf %348, %350 : vector<4x32xf32>
    %c0_229 = arith.constant 0 : index
    %c0_230 = arith.constant 0 : index
    %c0_231 = arith.constant 0 : index
    %352 = vector.load %arg13[%c0_229, %c0_230, %c0_231] : memref<1x4x32xf32, #tpu.memory_space<vmem>>, vector<1x4x32xf32>
    %353 = vector.shape_cast %352 : vector<1x4x32xf32> to vector<4x32xf32>
    %354 = vector.shape_cast %351 : vector<4x32xf32> to vector<1x4x32xf32>
    tpu.vector_store %arg13[%c0_229, %c0_230, %c0_231], %354 {strides = array<i32>} : memref<1x4x32xf32, #tpu.memory_space<vmem>>, vector<1x4x32xf32>,
    return
  }
  func.func @transform_0(%arg0: i32) -> (i32, i32, i32) {
    %c0_i32 = arith.constant 0 : i32
    %c0_i32_0 = arith.constant 0 : i32
    %c0_i32_1 = arith.constant 0 : i32
    return %arg0, %c0_i32, %c0_i32_0 : i32, i32, i32
  }
  func.func @transform_1(%arg0: i32) -> (i32, i32) {
    %c0_i32 = arith.constant 0 : i32
    %c0_i32_0 = arith.constant 0 : i32
    %c0_i32_1 = arith.constant 0 : i32
    return %c0_i32, %c0_i32_0 : i32, i32
  }
  func.func @transform_2(%arg0: i32) -> (i32, i32) {
    %c0_i32 = arith.constant 0 : i32
    %c0_i32_0 = arith.constant 0 : i32
    %c0_i32_1 = arith.constant 0 : i32
    return %c0_i32, %c0_i32_0 : i32, i32
  }
  func.func @transform_3(%arg0: i32) -> (i32, i32) {
    %c0_i32 = arith.constant 0 : i32
    %c0_i32_0 = arith.constant 0 : i32
    %c0_i32_1 = arith.constant 0 : i32
    return %c0_i32, %c0_i32_0 : i32, i32
  }
  func.func @transform_4(%arg0: i32) -> (i32, i32) {
    %c0_i32 = arith.constant 0 : i32
    %c0_i32_0 = arith.constant 0 : i32
    %c0_i32_1 = arith.constant 0 : i32
    return %c0_i32, %c0_i32_0 : i32, i32
  }
  func.func @transform_5(%arg0: i32) -> (i32, i32) {
    %c0_i32 = arith.constant 0 : i32
    %c0_i32_0 = arith.constant 0 : i32
    %c0_i32_1 = arith.constant 0 : i32
    return %c0_i32, %c0_i32_0 : i32, i32
  }
  func.func @transform_6(%arg0: i32) -> (i32, i32) {
    %c0_i32 = arith.constant 0 : i32
    %c0_i32_0 = arith.constant 0 : i32
    %c0_i32_1 = arith.constant 0 : i32
    return %c0_i32, %c0_i32_0 : i32, i32
  }
  func.func @transform_7(%arg0: i32) -> (i32, i32) {
    %c0_i32 = arith.constant 0 : i32
    %c0_i32_0 = arith.constant 0 : i32
    %c0_i32_1 = arith.constant 0 : i32
    return %c0_i32, %c0_i32_0 : i32, i32
  }
  func.func @transform_8(%arg0: i32) -> (i32, i32) {
    %c0_i32 = arith.constant 0 : i32
    %c0_i32_0 = arith.constant 0 : i32
    %c0_i32_1 = arith.constant 0 : i32
    return %c0_i32, %c0_i32_0 : i32, i32
  }
  func.func @transform_9(%arg0: i32) -> (i32, i32) {
    %c0_i32 = arith.constant 0 : i32
    %c0_i32_0 = arith.constant 0 : i32
    %c0_i32_1 = arith.constant 0 : i32
    return %c0_i32, %c0_i32_0 : i32, i32
  }
  func.func @transform_10(%arg0: i32) -> (i32, i32) {
    %c0_i32 = arith.constant 0 : i32
    %c0_i32_0 = arith.constant 0 : i32
    %c0_i32_1 = arith.constant 0 : i32
    return %c0_i32, %c0_i32_0 : i32, i32
  }
  func.func @transform_11(%arg0: i32) -> (i32, i32) {
    %c0_i32 = arith.constant 0 : i32
    %c0_i32_0 = arith.constant 0 : i32
    %c0_i32_1 = arith.constant 0 : i32
    return %c0_i32, %c0_i32_0 : i32, i32
  }
  func.func @transform_12(%arg0: i32) -> (i32, i32, i32) {
    %c0_i32 = arith.constant 0 : i32
    %c0_i32_0 = arith.constant 0 : i32
    %c0_i32_1 = arith.constant 0 : i32
    return %arg0, %c0_i32, %c0_i32_0 : i32, i32, i32
  }
}

</mosaic_0001>

<bundles_post_ra>
// kernel: encoder_forward.1
= control target key start
LH: loop header
LB: loop body
LE: loop exit
PB: predicated region body
PF: predicated region fallthrough
CT: control target
= control target key end

     0   :  { %s18526_s0 = inlined_call_operand.vmem [shape: f32[2,256,4], index: 0, kind: input, shape index: {}]   ;;  %s18527_s1 = inlined_call_operand.vmem [shape: f32[36,8], index: 1, kind: input, shape index: {}]   ;;  %s18528_s2 = inlined_call_operand.vmem [shape: f32[1,8], index: 2, kind: input, shape index: {}]   ;;  %s18529_s3 = inlined_call_operand.vmem [shape: f32[72,16], index: 3, kind: input, shape index: {}]   ;;  %s18530_s4 = inlined_call_operand.vmem [shape: f32[1,16], index: 4, kind: input, shape index: {}]   ;;  %s18531_s5 = inlined_call_operand.vmem [shape: f32[64,256], index: 5, kind: input, shape index: {}]   ;;  %s18532_s6 = inlined_call_operand.vmem [shape: f32[144,16], index: 6, kind: input, shape index: {}]   ;;  %s18533_s7 = inlined_call_operand.vmem [shape: f32[1,16], index: 7, kind: input, shape index: {}]   ;;  %s18534_s8 = inlined_call_operand.vmem [shape: f32[16,64], index: 8, kind: input, shape index: {}]   ;;  %s18535_s9 = inlined_call_operand.vmem [shape: f32[144,32], index: 9, kind: input, shape index: {}]   ;;  %s18536_s10 = inlined_call_operand.vmem [shape: f32[1,32], index: 10, kind: input, shape index: {}]   ;;  %s18537_s11 = inlined_call_operand.vmem [shape: f32[4,16], index: 11, kind: input, shape index: {}]   ;;  %s18538_s12 = inlined_call_operand.hbm [shape: f32[2,4,32], index: 12, kind: output, shape index: {}]  }
   0x1   :  { %18742 = sst [smem:[#allocation137_spill]] %s18526_s0 }
   0x2   :  { %18743 = sst [smem:[#allocation138_spill]] %s18527_s1 }
   0x3   :  { %17 = vsyncpa [#allocation4], 0 }
   0x4   :  { %19 = vsyncpa [#allocation4 + $0x1], 0  ;;  %s15105_s21 = smov 0   ;;  %s15107_s22 = smov 0  }
   0x5   :  { %s15109_s23 = smov 0   ;;  %s15111_s24 = smov 0  }
   0x6 LB: > { %s15126_s25 = sadd.s32 4294967295, %s15034_s24   ;;  %s11461_s26 = sadd.s32 4294967294, %s15034_s24   ;;  %s15034_s24 = sphi %s15111_s24, %s19302_s24   ;;  %s15030_s23 = sphi %s15109_s23, %s19301_s23   ;;  %s15026_s22 = sphi %s15107_s22, %s19300_s22   ;;  %s15022_s21 = sphi %s15105_s21, %s19299_s21  }
   0x7   : > { %s15130_s27 = sadd.s32 1, %s15034_s24   ;;  %s289_s28 = sadd.s32 1, %s15030_s23 }
   0x8   : > { %s286_s29 = ssub.s32 %s15034_s24, %s15130_s27  ;;  %p299_p0 = scmp.ne.s32.totalorder %s15030_s23, %s15026_s22 }
   0x9   : > { %p287_p1 = scmp.eq.s32.totalorder %s286_s29, 0  ;;  %p300_p2 = scmp.eq.s32.totalorder %s15126_s25, 1 }
   0xa   : > { %p305_p3 = scmp.ne.s32.totalorder %s15026_s22, %s15022_s21  ;;  %p306_p4 = scmp.eq.s32.totalorder %s11461_s26, 1 }
   0xb   : > { %s15141_s30 = scalar_select %p287_p1, %s15030_s23, %s289_s28  }
   0xc   : > { %p15143_p5 = por %p300_p2, %p299_p0  ;;  %p15147_p6 = por %p306_p4, %p305_p3 }
   0xd   : > { %p11464_p7 = scmp.ge.s32.totalorder %s15034_s24, 1  ;;  %p365_p8 = scmp.lt.s32.totalorder %s15034_s24, 3 }
   0xf   : > { %p366_p9 = pnand %p11464_p7, %p365_p8 }
  0x11   : > { %369 = sbr.rel (%p366_p9) target bundleno = 2975 (0xb9f), region = 68 }
  0x18   : > { %s18746_s1 = sld [smem:[#allocation138_spill]]  ;;  %vm1319_vm0 = vcmask 1043456   ;;  %vm444_vm1 = vcmask 130048   ;;  %v18565_v1 = vmov 0.0   ;;  %p407_p10 = scmp.lt.s32.totalorder %s15126_s25, 1  ;;  %vm483_vm2 = vcmask 31744  }
  0x19   : > { %445 = vst.msk [vmem:[#allocation2] sm:$0xff] %vm444_vm1, %v18565_v1  ;;  %446 = vst.msk [vmem:[#allocation2 + $0x8] sm:$0xff] %vm444_vm1, %v18565_v1  ;;  %s18747_s0 = sld [smem:[#allocation137_spill]]  ;;  %s12203_s26 = sshll.u32 %s15126_s25, 6 }
  0x1a   : > { %447 = vst.msk [vmem:[#allocation2 + $0x10] sm:$0xff] %vm444_vm1, %v18565_v1  ;;  %448 = vst.msk [vmem:[#allocation2 + $0x18] sm:$0xff] %vm444_vm1, %v18565_v1  ;;  %s408_s19 = scalar_select %p407_p10, %s15126_s25, 1 }
  0x1b   : > { %449 = vst.msk [vmem:[#allocation2 + $0x20] sm:$0xff] %vm444_vm1, %v18565_v1  ;;  %450 = vst.msk [vmem:[#allocation2 + $0x28] sm:$0xff] %vm444_vm1, %v18565_v1  ;;  %s18484_s16 = scalar_lea.hbm %s18538_s12, %s12203_s26  ;;  %s15039_s25 = smov [#allocation3]  }
  0x1c   : > { %451 = vst.msk [vmem:[#allocation2 + $0x30] sm:$0xff] %vm444_vm1, %v18565_v1  ;;  %452 = vst.msk [vmem:[#allocation2 + $0x38] sm:$0xff] %vm444_vm1, %v18565_v1  ;;  %s12206_s20 = sshll.u32 %s408_s19, 8 }
  0x1d   : > { %453 = vst.msk [vmem:[#allocation2 + $0x40] sm:$0xff] %vm444_vm1, %v18565_v1  ;;  %454 = vst.msk [vmem:[#allocation2 + $0x48] sm:$0xff] %vm444_vm1, %v18565_v1 }
  0x1e   : > { %v1222_v0 = vld [vmem:[%s18746_s1 + $0x4] sm:$0xf]  ;;  %455 = vst.msk [vmem:[#allocation2 + $0x50] sm:$0xff] %vm444_vm1, %v18565_v1  ;;  %456 = vst.msk [vmem:[#allocation2 + $0x58] sm:$0xff] %vm444_vm1, %v18565_v1  ;;  %v1189_v2 = vld [vmem:[%s18746_s1] sm:$0xf] }
  0x1f   : > { %12996 = vmatprep.subr.msk.mxu0 %vm1319_vm0, %v1222_v0  ;;  %457 = vst.msk [vmem:[#allocation2 + $0x60] sm:$0xff] %vm444_vm1, %v18565_v1  ;;  %458 = vst.msk [vmem:[#allocation2 + $0x68] sm:$0xff] %vm444_vm1, %v18565_v1  ;;  %s15239_s29 = scalar_lea.vmem %s18747_s0, %s12206_s20  ;;  %v15247_v6 = vld [vmem:[%s18746_s1 + $0x8] sm:$0xf]  ;;  %s404_s0 = sand.u32 1, %s15026_s22  }
  0x20   : > { %459 = vst.msk [vmem:[#allocation2 + $0x70] sm:$0xff] %vm444_vm1, %v18565_v1  ;;  %460 = vst.msk [vmem:[#allocation2 + $0x78] sm:$0xff] %vm444_vm1, %v18565_v1  ;;  %12997 = vmatpush3.msk.msra.mxu0 %vm1319_vm0, %v1222_v0  ;;  %v412_v3 = vld [vmem:[%s15239_s29] sm:$0xff]  ;;  %v413_v4 = vld [vmem:[%s15239_s29 + $0x8] sm:$0xff]  ;;  %s11465_s18 = sshll.u32 %s404_s0, 2  ;;  %s11389_s17 = scalar_lea.sflag [#allocation4], %s404_s0 }
  0x21   : > { %461 = vst.msk [vmem:[#allocation2 + $0x80] sm:$0xff] %vm444_vm1, %v18565_v1  ;;  %462 = vst.msk [vmem:[#allocation2 + $0x88] sm:$0xff] %vm444_vm1, %v18565_v1  ;;  %13046 = vmatprep.subr.msk.mxu0 %vm1319_vm0, %v1189_v2  ;;  %v414_v5 = vld [vmem:[%s15239_s29 + $0x10] sm:$0xff]  ;;  %v1190_v7 = vld [vmem:[#allocation2 + $0x1] sm:$0xff]  ;;  %s406_s28 = scalar_lea.vmem [#allocation3], %s11465_s18  ;;  %s14976_s18 = sshll.u32 %s15039_s25, 4  ;;  %s14977_s18 = int_to_ptr.vmem [resolvable:$false] %s14976_s18 }
  0x22   : > { %463 = vst.msk [vmem:[#allocation2 + $0x90] sm:$0xff] %vm444_vm1, %v18565_v1  ;;  %464 = vst.msk [vmem:[#allocation2 + $0x98] sm:$0xff] %vm444_vm1, %v18565_v1  ;;  %v1191_v8 = vld [vmem:[#allocation2 + $0x9] sm:$0xff]  ;;  %v415_v9 = vld [vmem:[%s15239_s29 + $0x18] sm:$0xff]  ;;  %12998 = vmatprep.mubr.msk.f32.mxu0 %vm483_vm2, %v1190_v7  ;;  %s14978_s20 = scalar_lea.vmem %s14977_s18, 128 }
  0x23   : > { %465 = vst.msk [vmem:[#allocation2 + $0xa0] sm:$0xff] %vm444_vm1, %v18565_v1  ;;  %466 = vst.msk [vmem:[#allocation2 + $0xa8] sm:$0xff] %vm444_vm1, %v18565_v1  ;;  %v416_v10 = vld [vmem:[%s15239_s29 + $0x20] sm:$0xff]  ;;  %v417_v11 = vld [vmem:[%s15239_s29 + $0x28] sm:$0xff]  ;;  %12999 = vmatmul.mubr.msk.f32.vlgmr.msra.gmra.mrb[0].mxu0 %vm483_vm2, %v1191_v8 }
  0x24   : > { %467 = vst.msk [vmem:[#allocation2 + $0xb0] sm:$0xff] %vm444_vm1, %v18565_v1  ;;  %468 = vst.msk [vmem:[#allocation2 + $0xb8] sm:$0xff] %vm444_vm1, %v18565_v1  ;;  %v418_v12 = vld [vmem:[%s15239_s29 + $0x30] sm:$0xff]  ;;  %v419_v13 = vld [vmem:[%s15239_s29 + $0x38] sm:$0xff]  ;;  %13047 = vmatpush3.msk.msra.mxu0 %vm1319_vm0, %v1189_v2 }
  0x25   : > { %469 = vst.msk [vmem:[#allocation2 + $0xc0] sm:$0xff] %vm444_vm1, %v18565_v1  ;;  %470 = vst.msk [vmem:[#allocation2 + $0xc8] sm:$0xff] %vm444_vm1, %v18565_v1  ;;  %v420_v14 = vld [vmem:[%s15239_s29 + $0x40] sm:$0xff]  ;;  %v421_v15 = vld [vmem:[%s15239_s29 + $0x48] sm:$0xff]  ;;  %13096 = vmatprep.subr.msk.mxu0 %vm1319_vm0, %v15247_v6 }
  0x26   : > { %471 = vst.msk [vmem:[#allocation2 + $0xd0] sm:$0xff] %vm444_vm1, %v18565_v1  ;;  %472 = vst.msk [vmem:[#allocation2 + $0xd8] sm:$0xff] %vm444_vm1, %v18565_v1  ;;  %v422_v16 = vld [vmem:[%s15239_s29 + $0x50] sm:$0xff]  ;;  %v423_v17 = vld [vmem:[%s15239_s29 + $0x58] sm:$0xff] }
  0x27   : > { %473 = vst.msk [vmem:[#allocation2 + $0xe0] sm:$0xff] %vm444_vm1, %v18565_v1  ;;  %474 = vst.msk [vmem:[#allocation2 + $0xe8] sm:$0xff] %vm444_vm1, %v18565_v1  ;;  %v424_v18 = vld [vmem:[%s15239_s29 + $0x60] sm:$0xff]  ;;  %v425_v19 = vld [vmem:[%s15239_s29 + $0x68] sm:$0xff] }
  0x28   : > { %475 = vst.msk [vmem:[#allocation2 + $0xf0] sm:$0xff] %vm444_vm1, %v18565_v1  ;;  %476 = vst.msk [vmem:[#allocation2 + $0xf8] sm:$0xff] %vm444_vm1, %v18565_v1  ;;  %v426_v20 = vld [vmem:[%s15239_s29 + $0x70] sm:$0xff]  ;;  %v427_v21 = vld [vmem:[%s15239_s29 + $0x78] sm:$0xff] }
  0x29   : > { %477 = vst.msk [vmem:[#allocation2 + $0x100] sm:$0xff] %vm444_vm1, %v18565_v1  ;;  %478 = vst.msk [vmem:[#allocation2 + $0x108] sm:$0xff] %vm444_vm1, %v18565_v1  ;;  %v428_v22 = vld [vmem:[%s15239_s29 + $0x80] sm:$0xff]  ;;  %v429_v23 = vld [vmem:[%s15239_s29 + $0x88] sm:$0xff] }
  0x2a   : > { %479 = vst.msk [vmem:[#allocation2 + $0x110] sm:$0xff] %vm444_vm1, %v18565_v1  ;;  %480 = vst.msk [vmem:[#allocation2 + $0x118] sm:$0xff] %vm444_vm1, %v18565_v1  ;;  %v430_v24 = vld [vmem:[%s15239_s29 + $0x90] sm:$0xff]  ;;  %v431_v25 = vld [vmem:[%s15239_s29 + $0x98] sm:$0xff] }
  0x2b   : > { %484 = vst.msk [vmem:[#allocation2 + $0x11] sm:$0xff] %vm483_vm2, %v412_v3  ;;  %485 = vst.msk [vmem:[#allocation2 + $0x19] sm:$0xff] %vm483_vm2, %v413_v4  ;;  %v432_v26 = vld [vmem:[%s15239_s29 + $0xa0] sm:$0xff]  ;;  %v433_v27 = vld [vmem:[%s15239_s29 + $0xa8] sm:$0xff]  ;;  %v516_v3 = vlaneseq }
  0x2c   : > { %486 = vst.msk [vmem:[#allocation2 + $0x21] sm:$0xff] %vm483_vm2, %v414_v5  ;;  %487 = vst.msk [vmem:[#allocation2 + $0x29] sm:$0xff] %vm483_vm2, %v415_v9  ;;  %v434_v31 = vld [vmem:[%s15239_s29 + $0xb0] sm:$0xff]  ;;  %v435_v32 = vld [vmem:[%s15239_s29 + $0xb8] sm:$0xff] }
  0x2d   : > { %488 = vst.msk [vmem:[#allocation2 + $0x31] sm:$0xff] %vm483_vm2, %v416_v10  ;;  %489 = vst.msk [vmem:[#allocation2 + $0x39] sm:$0xff] %vm483_vm2, %v417_v11  ;;  %v436_v37 = vld [vmem:[%s15239_s29 + $0xc0] sm:$0xff]  ;;  %v437_v38 = vld [vmem:[%s15239_s29 + $0xc8] sm:$0xff]  ;;  %v15425_v7 = vshrl.u32 %v516_v3, 7 }
  0x2e   : > { %490 = vst.msk [vmem:[#allocation2 + $0x41] sm:$0xff] %vm483_vm2, %v418_v12  ;;  %491 = vst.msk [vmem:[#allocation2 + $0x49] sm:$0xff] %vm483_vm2, %v419_v13  ;;  %v438_v39 = vld [vmem:[%s15239_s29 + $0xd0] sm:$0xff]  ;;  %v439_v40 = vld [vmem:[%s15239_s29 + $0xd8] sm:$0xff] }
  0x2f   : > { %492 = vst.msk [vmem:[#allocation2 + $0x51] sm:$0xff] %vm483_vm2, %v420_v14  ;;  %493 = vst.msk [vmem:[#allocation2 + $0x59] sm:$0xff] %vm483_vm2, %v421_v15  ;;  %v440_v41 = vld [vmem:[%s15239_s29 + $0xe0] sm:$0xff]  ;;  %v441_v42 = vld [vmem:[%s15239_s29 + $0xe8] sm:$0xff]  ;;  %v553_v10 = vand.u32 15, %v15425_v7  ;;  %v15437_v11 = vadd.s32 16, %v15425_v7 }
  0x30   : > { %494 = vst.msk [vmem:[#allocation2 + $0x61] sm:$0xff] %vm483_vm2, %v422_v16  ;;  %495 = vst.msk [vmem:[#allocation2 + $0x69] sm:$0xff] %vm483_vm2, %v423_v17  ;;  %v442_v43 = vld [vmem:[%s15239_s29 + $0xf0] sm:$0xff]  ;;  %v15343_v45 = vld [vmem:[#allocation2] sm:$0xff]  ;;  %v15449_v15 = vadd.s32 32, %v15425_v7 }
  0x31   : > { %496 = vst.msk [vmem:[#allocation2 + $0x71] sm:$0xff] %vm483_vm2, %v424_v18  ;;  %497 = vst.msk [vmem:[#allocation2 + $0x79] sm:$0xff] %vm483_vm2, %v425_v19  ;;  %v15345_v46 = vld [vmem:[#allocation2 + $0x2] sm:$0xff]  ;;  %vm933_vm3 = vcmp.gt.s32.totalorder %v553_v10, 0  ;;  %v567_v14 = vand.u32 15, %v15437_v11 }
  0x32   : > { %498 = vst.msk [vmem:[#allocation2 + $0x81] sm:$0xff] %vm483_vm2, %v426_v20  ;;  %499 = vst.msk [vmem:[#allocation2 + $0x89] sm:$0xff] %vm483_vm2, %v427_v21  ;;  %v15292_v28 = vld [vmem:[#allocation2 + $0x11] sm:$0xff]  ;;  %v15294_v29 = vld [vmem:[#allocation2 + $0x19] sm:$0xff]  ;;  %v15460_v18 = vsel %vm933_vm3, 1.0, %v18565_v1  ;;  %v581_v19 = vand.u32 15, %v15449_v15 }
  0x33   : > { %500 = vst.msk [vmem:[#allocation2 + $0x91] sm:$0xff] %vm483_vm2, %v428_v22  ;;  %501 = vst.msk [vmem:[#allocation2 + $0x99] sm:$0xff] %vm483_vm2, %v429_v23  ;;  %v15296_v30 = vld [vmem:[#allocation2 + $0x21] sm:$0xff]  ;;  %13001 = vmatprep.mubr.msk.f32.mxu0 %vm483_vm2, %v15292_v28  ;;  %v15311_v33 = vld [vmem:[#allocation2 + $0x29] sm:$0xff]  ;;  %vm935_vm4 = vcmp.gt.s32.totalorder %v567_v14, 0  ;;  %v15464_v20 = vadd.s32 48, %v15425_v7  ;;  %v1157_v22 = vmul.f32 %v15460_v18, %v15343_v45 }
  0x34   : > { %502 = vst.msk [vmem:[#allocation2 + $0xa1] sm:$0xff] %vm483_vm2, %v430_v24  ;;  %503 = vst.msk [vmem:[#allocation2 + $0xa9] sm:$0xff] %vm483_vm2, %v431_v25  ;;  %13002 = vmatmul.mubr.msk.f32.gmra.mrb[2].mxu0 %vm483_vm2, %v15294_v29  ;;  %v15313_v34 = vld [vmem:[#allocation2 + $0x31] sm:$0xff]  ;;  %v15319_v35 = vld [vmem:[#allocation2 + $0x39] sm:$0xff]  ;;  %v15475_v23 = vsel %vm935_vm4, 1.0, %v18565_v1  ;;  %vm937_vm5 = vcmp.gt.s32.totalorder %v581_v19, 0 }
  0x35   : > { %504 = vst.msk [vmem:[#allocation2 + $0xb1] sm:$0xff] %vm483_vm2, %v432_v26  ;;  %505 = vst.msk [vmem:[#allocation2 + $0xb9] sm:$0xff] %vm483_vm2, %v433_v27  ;;  %13004 = vmatprep.mubr.msk.f32.mxu0 %vm483_vm2, %v15296_v30  ;;  %v15321_v36 = vld [vmem:[#allocation2 + $0x41] sm:$0xff]  ;;  %v15338_v44 = vld [vmem:[#allocation2 + $0x49] sm:$0xff]  ;;  %v595_v24 = vand.u32 15, %v15464_v20  ;;  %v525_v25 = vadd.s32 64, %v15425_v7 }
  0x36   : > { %506 = vst.msk [vmem:[#allocation2 + $0xc1] sm:$0xff] %vm483_vm2, %v434_v31  ;;  %507 = vst.msk [vmem:[#allocation2 + $0xc9] sm:$0xff] %vm483_vm2, %v435_v32  ;;  %v15347_v47 = vld [vmem:[#allocation2 + $0x51] sm:$0xff]  ;;  %v15351_v48 = vld [vmem:[#allocation2 + $0x8] sm:$0xff]  ;;  %v15485_v27 = vsel %vm937_vm5, 1.0, %v18565_v1  ;;  %v531_v14 = vadd.s32 112, %v15425_v7 }
  0x37   : > { %18748 = vst [vmem:[#allocation6_spill] sm:$0xff] %v15311_v33  ;;  %18749 = vst [vmem:[#allocation7_spill] sm:$0xff] %v15313_v34  ;;  %v15353_v49 = vld [vmem:[#allocation2 + $0xa] sm:$0xff]  ;;  %v15361_v50 = vld [vmem:[#allocation2 + $0x59] sm:$0xff]  ;;  %vm939_vm6 = vcmp.gt.s32.totalorder %v595_v24, 0  ;;  %v609_v32 = vand.u32 15, %v525_v25 }
  0x38   : > { %13005 = vmatmul.mubr.msk.f32.gmra.mrb[4].mxu0 %vm483_vm2, %v15311_v33  ;;  %18750 = vst [vmem:[#allocation8_spill] sm:$0xff] %v15319_v35  ;;  %18751 = vst [vmem:[#allocation9_spill] sm:$0xff] %v15321_v36  ;;  %v15363_v51 = vld [vmem:[#allocation2 + $0x61] sm:$0xff]  ;;  %v15369_v52 = vld [vmem:[#allocation2 + $0x69] sm:$0xff] }
  0x39   : > { %13007 = vmatprep.mubr.msk.f32.mxu0 %vm483_vm2, %v15313_v34  ;;  %508 = vst.msk [vmem:[#allocation2 + $0xd1] sm:$0xff] %vm483_vm2, %v436_v37  ;;  %509 = vst.msk [vmem:[#allocation2 + $0xd9] sm:$0xff] %vm483_vm2, %v437_v38  ;;  %v15371_v53 = vld [vmem:[#allocation2 + $0x71] sm:$0xff]  ;;  %v15377_v54 = vld [vmem:[#allocation2 + $0x79] sm:$0xff]  ;;  %v527_v37 = vadd.s32 80, %v15425_v7  ;;  %vm941_vm7 = vcmp.gt.s32.totalorder %v609_v32, 0 }
  0x3a   : > { %510 = vst.msk [vmem:[#allocation2 + $0xe1] sm:$0xff] %vm483_vm2, %v438_v39  ;;  %511 = vst.msk [vmem:[#allocation2 + $0xe9] sm:$0xff] %vm483_vm2, %v439_v40  ;;  %v15379_v55 = vld [vmem:[#allocation2 + $0x81] sm:$0xff]  ;;  %v15381_v56 = vld [vmem:[#allocation2 + $0x10] sm:$0xff]  ;;  %v15503_v40 = vsel %vm939_vm6, 1.0, %v18565_v1  ;;  %v533_v32 = vadd.s32 128, %v15425_v7 }
  0x3b   : > { %18752 = vst [vmem:[#allocation10_spill] sm:$0xff] %v15338_v44  ;;  %512 = vst.msk [vmem:[#allocation2 + $0xf1] sm:$0xff] %vm483_vm2, %v440_v41  ;;  %v15383_v57 = vld [vmem:[#allocation2 + $0x18] sm:$0xff]  ;;  %v15397_v60 = vld [vmem:[#allocation2 + $0x89] sm:$0xff]  ;;  %v1159_v26 = vmul.f32 %v15475_v23, %v15381_v56 }
  0x3c   : > { %13008 = vmatmul.mubr.msk.f32.gmra.mrb[6].mxu0 %vm483_vm2, %v15319_v35  ;;  %513 = vst.msk [vmem:[#allocation2 + $0xf9] sm:$0xff] %vm483_vm2, %v441_v42  ;;  %514 = vst.msk [vmem:[#allocation2 + $0x101] sm:$0xff] %vm483_vm2, %v442_v43  ;;  %v15385_v58 = vld [vmem:[#allocation2 + $0x12] sm:$0xff]  ;;  %v15387_v59 = vld [vmem:[#allocation2 + $0x1a] sm:$0xff]  ;;  %v623_v42 = vand.u32 15, %v527_v37  ;;  %v529_v43 = vadd.s32 96, %v15425_v7 }
  0x3d   : > { %13010 = vmatprep.mubr.msk.f32.mxu0 %vm483_vm2, %v15321_v36  ;;  %18753 = vst [vmem:[#allocation11_spill] sm:$0xff] %v15347_v47  ;;  %4954 = vst.msk [vmem:[#allocation2] sm:$0xff] %vm444_vm1, %v18565_v1  ;;  %v15399_v61 = vld [vmem:[#allocation2 + $0x91] sm:$0xff]  ;;  %v15405_v62 = vld [vmem:[#allocation2 + $0x99] sm:$0xff] }
  0x3e   : > { %4955 = vst.msk [vmem:[#allocation2 + $0x8] sm:$0xff] %vm444_vm1, %v18565_v1  ;;  %18754 = vst [vmem:[#allocation12_spill] sm:$0xff] %v15361_v50  ;;  %v15407_v63 = vld [vmem:[#allocation2 + $0xa1] sm:$0xff]  ;;  %v15413_v0 = vld [vmem:[#allocation2 + $0xa9] sm:$0xff]  ;;  %vm943_vm8 = vcmp.gt.s32.totalorder %v623_v42, 0  ;;  %v637_v10 = vand.u32 15, %v529_v43 }
  0x3f   : > { %18755 = vst [vmem:[#allocation13_spill] sm:$0xff] %v15363_v51  ;;  %18756 = vst [vmem:[#allocation14_spill] sm:$0xff] %v15369_v52  ;;  %v15415_v2 = vld [vmem:[#allocation2 + $0xb1] sm:$0xff]  ;;  %v15421_v4 = vld [vmem:[#allocation2 + $0xb9] sm:$0xff]  ;;  %v15531_v24 = vsel %vm943_vm8, 1.0, %v18565_v1 }
  0x40   : > { %13011 = vmatmul.mubr.msk.f32.gmra.mrb[8].mxu0 %vm483_vm2, %v15338_v44  ;;  %18757 = vst [vmem:[#allocation15_spill] sm:$0xff] %v15371_v53  ;;  %18758 = vst [vmem:[#allocation16_spill] sm:$0xff] %v15377_v54  ;;  %v15423_v5 = vld [vmem:[#allocation2 + $0xc1] sm:$0xff]  ;;  %v15431_v8 = vld [vmem:[#allocation2 + $0xc9] sm:$0xff]  ;;  %vm945_vm9 = vcmp.gt.s32.totalorder %v637_v10, 0  ;;  %v535_v10 = vadd.s32 144, %v15425_v7 }
  0x41   : > { %13013 = vmatprep.mubr.msk.f32.mxu0 %vm483_vm2, %v15347_v47  ;;  %18759 = vst [vmem:[#allocation17_spill] sm:$0xff] %v15379_v55  ;;  %18760 = vst [vmem:[#allocation18_spill] sm:$0xff] %v15385_v58  ;;  %v15433_v9 = vld [vmem:[#allocation2 + $0xd1] sm:$0xff]  ;;  %v15443_v12 = vld [vmem:[#allocation2 + $0xd9] sm:$0xff]  ;;  %v15544_v42 = vsel %vm945_vm9, 1.0, %v18565_v1  ;;  %v15668_v44 = vadd.s32 24, %v15425_v7 }
  0x42   : > { %18761 = vst [vmem:[#allocation19_spill] sm:$0xff] %v15387_v59  ;;  %4956 = vst.msk [vmem:[#allocation2 + $0x10] sm:$0xff] %vm444_vm1, %v18565_v1  ;;  %v15445_v13 = vld [vmem:[#allocation2 + $0xe1] sm:$0xff]  ;;  %v15455_v16 = vld [vmem:[#allocation2 + $0xe9] sm:$0xff] }
  0x43   : > { %4957 = vst.msk [vmem:[#allocation2 + $0x18] sm:$0xff] %vm444_vm1, %v18565_v1  ;;  %18762 = vst [vmem:[#allocation20_spill] sm:$0xff] %v15397_v60  ;;  %v15457_v17 = vld [vmem:[#allocation2 + $0xf1] sm:$0xff]  ;;  %v15470_v21 = vld [vmem:[#allocation2 + $0xf9] sm:$0xff]  ;;  %v574_v36 = vand.u32 15, %v15668_v44 }
  0x44   : > { %13014 = vmatmul.mubr.msk.f32.gmra.mrb[10].mxu0 %vm483_vm2, %v15361_v50  ;;  %18763 = vst [vmem:[#allocation21_spill] sm:$0xff] %v15399_v61  ;;  %18764 = vst [vmem:[#allocation22_spill] sm:$0xff] %v15405_v62  ;;  %v15487_v31 = vld [vmem:[#allocation2 + $0x20] sm:$0xff]  ;;  %v15493_v38 = vld [vmem:[%s18746_s1 + $0xc] sm:$0xf] }
  0x45   : > { %13016 = vmatprep.mubr.msk.f32.mxu0 %vm483_vm2, %v15363_v51  ;;  %18765 = vst [vmem:[#allocation23_spill] sm:$0xff] %v15407_v63  ;;  %18766 = vst [vmem:[#allocation24_spill] sm:$0xff] %v15413_v0  ;;  %v1161_v39 = vmul.f32 %v15485_v27, %v15487_v31  ;;  %v15505_v41 = vld [vmem:[#allocation2 + $0x30] sm:$0xff]  ;;  %v15513_v45 = vld [vmem:[#allocation2 + $0x28] sm:$0xff]  ;;  %v15652_v51 = vadd.s32 8, %v15425_v7 }
  0x46   : > { %18767 = vst [vmem:[#allocation25_spill] sm:$0xff] %v15415_v2  ;;  %18768 = vst [vmem:[#allocation26_spill] sm:$0xff] %v15421_v4  ;;  %v15520_v3 = vld [vmem:[#allocation2 + $0x40] sm:$0xff]  ;;  %v15526_v19 = vld [vmem:[#allocation2 + $0x38] sm:$0xff] }
  0x47   : > { %18769 = vst [vmem:[#allocation27_spill] sm:$0xff] %v15423_v5  ;;  %18770 = vst [vmem:[#allocation28_spill] sm:$0xff] %v15425_v7  ;;  %v15533_v25 = vld [vmem:[#allocation2 + $0x50] sm:$0xff]  ;;  %v15539_v37 = vld [vmem:[#allocation2 + $0x48] sm:$0xff]  ;;  %v560_v47 = vand.u32 15, %v15652_v51 }
  0x48   : > { %13017 = vmatmul.mubr.msk.f32.gmra.mrb[12].mxu0 %vm483_vm2, %v15369_v52  ;;  %18771 = vst [vmem:[#allocation29_spill] sm:$0xff] %v15431_v8  ;;  %18772 = vst [vmem:[#allocation30_spill] sm:$0xff] %v15433_v9  ;;  %v15546_v43 = vld [vmem:[#allocation2 + $0x60] sm:$0xff]  ;;  %v15664_v50 = vld [vmem:[#allocation2 + $0xf0] sm:$0xff] }
  0x49   : > { %13019 = vmatprep.mubr.msk.f32.mxu0 %vm483_vm2, %v15371_v53  ;;  %18773 = vst [vmem:[#allocation31_spill] sm:$0xff] %v15437_v11  ;;  %18774 = vst [vmem:[#allocation32_spill] sm:$0xff] %v15443_v12  ;;  %v15649_v52 = vld [vmem:[#allocation2 + $0xe0] sm:$0xff]  ;;  %vm1030_vm6 = vcmp.lt.s32.totalorder %v560_v47, 15  ;;  %v15686_v35 = vld [vmem:[#allocation2 + $0xf8] sm:$0xff]  ;;  %v15693_v47 = vadd.s32 56, %v15425_v7 }
  0x4a   : > { %18775 = vst [vmem:[#allocation33_spill] sm:$0xff] %v15445_v13  ;;  %18776 = vst [vmem:[#allocation34_spill] sm:$0xff] %v15449_v15  ;;  %v15559_v15 = vld [vmem:[#allocation2 + $0x70] sm:$0xff] }
  0x4b   : > { %18777 = vst [vmem:[#allocation35_spill] sm:$0xff] %v15455_v16  ;;  %18778 = vst [vmem:[#allocation36_spill] sm:$0xff] %v15457_v17  ;;  %v15709_v33 = vld [vmem:[%s18746_s1 + $0x10] sm:$0xf] }
  0x4c   : > { %13020 = vmatmul.mubr.msk.f32.gmra.mrb[14].mxu0 %vm483_vm2, %v15377_v54  ;;  %18779 = vst [vmem:[#allocation37_spill] sm:$0xff] %v15460_v18  ;;  %18780 = vst [vmem:[#allocation38_spill] sm:$0xff] %v15464_v20  ;;  %v15637_v54 = vld [vmem:[#allocation2 + $0xd0] sm:$0xff] }
  0x4d   : > { %13022 = vmatprep.mubr.msk.f32.mxu0 %vm483_vm2, %v15379_v55  ;;  %18781 = vst [vmem:[#allocation39_spill] sm:$0xff] %v15470_v21  ;;  %18782 = vst [vmem:[#allocation40_spill] sm:$0xff] %v15475_v23 }
  0x4e   : > { %18783 = vst [vmem:[#allocation41_spill] sm:$0xff] %v15544_v42  ;;  %18785 = vst [vmem:[#allocation43_spill] sm:$0xff] %v15652_v51  ;;  %v15681_v51 = vadd.s32 40, %v15425_v7 }
  0x4f   : > { %18787 = vst [vmem:[#allocation45_spill] sm:$0xff] %v15668_v44  ;;  %18790 = vst [vmem:[#allocation48_spill] sm:$0xff] %v15686_v35 }
  0x50   : > { %13023 = vmatmul.mubr.msk.f32.gmra.mrb[16].mxu0 %vm483_vm2, %v15397_v60  ;;  %18789 = vst [vmem:[#allocation47_spill] sm:$0xff] %v15681_v51  ;;  %v588_v34 = vand.u32 15, %v15681_v51  ;;  %18793 = vst [vmem:[#allocation50_spill] sm:$0xff] %v15693_v47  ;;  %v526_v51 = vadd.s32 72, %v15425_v7 }
  0x51   : > { %13025 = vmatprep.mubr.msk.f32.mxu0 %vm483_vm2, %v15399_v61  ;;  %v15624_v61 = vld [vmem:[#allocation2 + $0xc0] sm:$0xff] }
  0x52   : > { %vm1034_vm8 = vcmp.lt.s32.totalorder %v588_v34, 15  ;;  %v15719_v34 = vld [vmem:[#allocation2 + $0x2a] sm:$0xff] }
  0x53   : > { %18796 = vst [vmem:[#allocation53_spill] sm:$0xff] %v15719_v34 }
  0x54   : > { %13026 = vmatmul.mubr.msk.f32.gmra.mrb[18].mxu0 %vm483_vm2, %v15405_v62 }
  0x55   : > { %13028 = vmatprep.mubr.msk.f32.mxu0 %vm483_vm2, %v15407_v63 }
  0x58   : > { %13029 = vmatmul.mubr.msk.f32.gmra.mrb[20].mxu0 %vm483_vm2, %v15413_v0  ;;  %v15611_v0 = vld [vmem:[#allocation2 + $0xb0] sm:$0xff] }
  0x59   : > { %13031 = vmatprep.mubr.msk.f32.mxu0 %vm483_vm2, %v15415_v2 }
  0x5c   : > { %13032 = vmatmul.mubr.msk.f32.gmra.mrb[22].mxu0 %vm483_vm2, %v15421_v4 }
  0x5d   : > { %13034 = vmatprep.mubr.msk.f32.mxu0 %vm483_vm2, %v15423_v5  ;;  %v15598_v5 = vld [vmem:[#allocation2 + $0xa0] sm:$0xff] }
  0x60   : > { %13035 = vmatmul.mubr.msk.f32.gmra.mrb[24].mxu0 %vm483_vm2, %v15431_v8 }
  0x61   : > { %13037 = vmatprep.mubr.msk.f32.mxu0 %vm483_vm2, %v15433_v9 }
  0x64   : > { %13038 = vmatmul.mubr.msk.f32.gmra.mrb[26].mxu0 %vm483_vm2, %v15443_v12  ;;  %v15585_v12 = vld [vmem:[#allocation2 + $0x90] sm:$0xff] }
  0x65   : > { %13040 = vmatprep.mubr.msk.f32.mxu0 %vm483_vm2, %v15445_v13 }
  0x68   : > { %13041 = vmatmul.mubr.msk.f32.gmra.mrb[28].mxu0 %vm483_vm2, %v15455_v16 }
  0x69   : > { %13043 = vmatprep.mubr.msk.f32.mxu0 %vm483_vm2, %v15457_v17  ;;  %v15572_v17 = vld [vmem:[#allocation2 + $0x80] sm:$0xff] }
  0x6c   : > { %13044 = vmatmul.mubr.msk.f32.gmra.mrb[30].mxu0 %vm483_vm2, %v15470_v21 }
  0x6d   : > { %13048 = vmatprep.mubr.msk.f32.mxu0 %vm483_vm2, %v1157_v22 }
  0x70   : > { %13049 = vmatmul.mubr.msk.f32.vlgmr.msra.gmra.mrb[0].mxu0 %vm483_vm2, %v15351_v48  ;;  %v15518_v48 = vsel %vm941_vm7, 1.0, %v18565_v1  ;;  %vm1032_vm7 = vcmp.lt.s32.totalorder %v574_v36, 15  ;;  %v602_v36 = vand.u32 15, %v15693_v47  ;;  %v15723_v47 = vld [vmem:[#allocation2 + $0x22] sm:$0xff] }
  0x71   : > { %13051 = vmatprep.mubr.msk.f32.mxu0 %vm483_vm2, %v1159_v26  ;;  %13097 = vmatpush3.msk.msra.mxu0 %vm1319_vm0, %v15247_v6  ;;  %v1163_v6 = vmul.f32 %v15503_v40, %v15505_v41  ;;  %v1165_v22 = vmul.f32 %v15518_v48, %v15520_v3  ;;  %v651_v26 = vand.u32 15, %v531_v14  ;;  %v15552_v14 = vld [vmem:[#allocation2 + $0x58] sm:$0xff]  ;;  %18797 = vst [vmem:[#allocation54_spill] sm:$0xff] %v15723_v47 }
  0x72   : > { %13146 = vmatprep.subr.msk.mxu0 %vm1319_vm0, %v15493_v38  ;;  %vm1036_vm9 = vcmp.lt.s32.totalorder %v602_v36, 15  ;;  %v15738_v36 = vld [vmem:[#allocation2 + $0x32] sm:$0xff] }
  0x73   : > { %vm947_vm10 = vcmp.gt.s32.totalorder %v651_v26, 0  ;;  %v679_v26 = vand.u32 15, %v535_v10  ;;  %v539_v10 = vadd.s32 176, %v15425_v7  ;;  %18800 = vst [vmem:[#allocation57_spill] sm:$0xff] %v15738_v36 }
  0x74   : > { %13052 = vmatmul.mubr.msk.f32.gmra.mrb[2].mxu0 %vm483_vm2, %v15383_v57  ;;  %v15557_v20 = vsel %vm947_vm10, 1.0, %v18565_v1 }
  0x75   : > { %13054 = vmatprep.mubr.msk.f32.mxu0 %vm483_vm2, %v1161_v39  ;;  %v1167_v39 = vmul.f32 %v15531_v24, %v15533_v25  ;;  %v1171_v11 = vmul.f32 %v15557_v20, %v15559_v15  ;;  %vm951_vm12 = vcmp.gt.s32.totalorder %v679_v26, 0  ;;  %v707_v26 = vand.u32 15, %v539_v10 }
  0x76   : > { %v15583_v13 = vsel %vm951_vm12, 1.0, %v18565_v1  ;;  %v543_v10 = vadd.s32 208, %v15425_v7 }
  0x77   : > { %v1175_v9 = vmul.f32 %v15583_v13, %v15585_v12  ;;  %vm955_vm14 = vcmp.gt.s32.totalorder %v707_v26, 0 }
  0x78   : > { %13055 = vmatmul.mubr.msk.f32.gmra.mrb[4].mxu0 %vm483_vm2, %v15513_v45  ;;  %v15609_v2 = vsel %vm955_vm14, 1.0, %v18565_v1  ;;  %v735_v26 = vand.u32 15, %v543_v10  ;;  %v547_v10 = vadd.s32 240, %v15425_v7 }
  0x79   : > { %13057 = vmatprep.mubr.msk.f32.mxu0 %vm483_vm2, %v1163_v6  ;;  %v665_v6 = vand.u32 15, %v533_v32  ;;  %v537_v32 = vadd.s32 160, %v15425_v7  ;;  %v1179_v63 = vmul.f32 %v15609_v2, %v15611_v0 }
  0x7a   : > { %vm959_vm3 = vcmp.gt.s32.totalorder %v735_v26, 0  ;;  %v763_v26 = vand.u32 15, %v547_v10 }
  0x7b   : > { %vm949_vm11 = vcmp.gt.s32.totalorder %v665_v6, 0  ;;  %v693_v6 = vand.u32 15, %v537_v32  ;;  %v541_v32 = vadd.s32 192, %v15425_v7  ;;  %v15635_v55 = vsel %vm959_vm3, 1.0, %v18565_v1 }
  0x7c   : > { %13058 = vmatmul.mubr.msk.f32.gmra.mrb[6].mxu0 %vm483_vm2, %v15526_v19  ;;  %v15570_v21 = vsel %vm949_vm11, 1.0, %v18565_v1  ;;  %vm963_vm5 = vcmp.gt.s32.totalorder %v763_v26, 0  ;;  %v443_v26 = vld [vmem:[%s15239_s29 + $0xf8] sm:$0xff]  ;;  %s11402_s29 = sshll.u32 %s406_s28, 4  ;;  %s18486_s29 = int_to_ptr.vmem [resolvable:$true] %s11402_s29 }
  0x7d   : > { %13060 = vmatprep.mubr.msk.f32.mxu0 %vm483_vm2, %v1165_v22  ;;  %v1169_v22 = vmul.f32 %v15544_v42, %v15546_v43  ;;  %v1173_v16 = vmul.f32 %v15570_v21, %v15572_v17  ;;  %vm953_vm13 = vcmp.gt.s32.totalorder %v693_v6, 0  ;;  %v721_v6 = vand.u32 15, %v541_v32  ;;  %515 = vst.msk [vmem:[#allocation2 + $0x109] sm:$0xff] %vm483_vm2, %v443_v26  ;;  %s14972_s19 = scalar_lea.vmem %s18486_s29, 64  ;;  %p14979_p0 = scmp.lt.s32.totalorder %s18486_s29, %s14977_s18 }
  0x7e   : > { %v15596_v8 = vsel %vm953_vm13, 1.0, %v18565_v1  ;;  %v545_v32 = vadd.s32 224, %v15425_v7  ;;  %v15662_v10 = vsel %vm963_vm5, 1.0, %v18565_v1  ;;  %v18791_v26 = vmov 0.0   ;;  %p14973_p11 = scmp.ne.s32.totalorder %s18486_s29, %s14972_s19  ;;  %p14980_p1 = scmp.lt.s32.totalorder %s14978_s20, %s14972_s19 }
  0x7f   : > { %v1177_v4 = vmul.f32 %v15596_v8, %v15598_v5  ;;  %vm957_vm15 = vcmp.gt.s32.totalorder %v721_v6, 0  ;;  %18786 = vst [vmem:[#allocation44_spill] sm:$0xff] %v15662_v10 }
  0x80   : > { %13061 = vmatmul.mubr.msk.f32.gmra.mrb[8].mxu0 %vm483_vm2, %v15539_v37  ;;  %v15622_v62 = vsel %vm957_vm15, 1.0, %v18565_v1  ;;  %v749_v6 = vand.u32 15, %v545_v32  ;;  %v15642_v32 = vld [vmem:[#allocation2 + $0xc8] sm:$0xff]  ;;  %p14974_p12 = pnand %p14973_p11, %p15143_p5  ;;  %p14981_p2 = por %p14980_p1, %p14979_p0 }
  0x81   : > { %13063 = vmatprep.mubr.msk.f32.mxu0 %vm483_vm2, %v1167_v39  ;;  %v15565_v39 = vld [vmem:[#allocation2 + $0x68] sm:$0xff]  ;;  %v1181_v60 = vmul.f32 %v15622_v62, %v15624_v61 }
  0x82   : > { %vm961_vm4 = vcmp.gt.s32.totalorder %v749_v6, 0  ;;  %p14975_p13 = pneg %p14974_p12 }
  0x83   : > { %v15647_v53 = vsel %vm961_vm4, 1.0, %v18565_v1  ;;  %v1187_v1 = vmul.f32 %v15662_v10, %v15664_v50 }
  0x84   : > { %13064 = vmatmul.mubr.msk.f32.gmra.mrb[10].mxu0 %vm483_vm2, %v15552_v14  ;;  %18784 = vst [vmem:[#allocation42_spill] sm:$0xff] %v15647_v53  ;;  %v1185_v6 = vmul.f32 %v15647_v53, %v15649_v52  ;;  %p14982_p3 = pnand %p14981_p2, %p14975_p13 }
  0x85   : > { %13066 = vmatprep.mubr.msk.f32.mxu0 %vm483_vm2, %v1169_v22  ;;  %v15578_v22 = vld [vmem:[#allocation2 + $0x78] sm:$0xff] }
  0x88   : > { %13067 = vmatmul.mubr.msk.f32.gmra.mrb[12].mxu0 %vm483_vm2, %v15565_v39 }
  0x89   : > { %13069 = vmatprep.mubr.msk.f32.mxu0 %vm483_vm2, %v1171_v11  ;;  %v15591_v11 = vld [vmem:[#allocation2 + $0x88] sm:$0xff] }
  0x8c   : > { %13070 = vmatmul.mubr.msk.f32.gmra.mrb[14].mxu0 %vm483_vm2, %v15578_v22 }
  0x8d   : > { %13072 = vmatprep.mubr.msk.f32.mxu0 %vm483_vm2, %v1173_v16  ;;  %v15604_v16 = vld [vmem:[#allocation2 + $0x98] sm:$0xff] }
  0x90   : > { %13073 = vmatmul.mubr.msk.f32.gmra.mrb[16].mxu0 %vm483_vm2, %v15591_v11 }
  0x91   : > { %13075 = vmatprep.mubr.msk.f32.mxu0 %vm483_vm2, %v1175_v9  ;;  %v15617_v9 = vld [vmem:[#allocation2 + $0xa8] sm:$0xff] }
  0x94   : > { %13076 = vmatmul.mubr.msk.f32.gmra.mrb[18].mxu0 %vm483_vm2, %v15604_v16 }
  0x95   : > { %13078 = vmatprep.mubr.msk.f32.mxu0 %vm483_vm2, %v1177_v4  ;;  %v15630_v4 = vld [vmem:[#allocation2 + $0xb8] sm:$0xff] }
  0x98   : > { %13079 = vmatmul.mubr.msk.f32.gmra.mrb[20].mxu0 %vm483_vm2, %v15617_v9 }
  0x99   : > { %13081 = vmatprep.mubr.msk.f32.mxu0 %vm483_vm2, %v1179_v63  ;;  %v1183_v63 = vmul.f32 %v15635_v55, %v15637_v54 }
  0x9c   : > { %13082 = vmatmul.mubr.msk.f32.gmra.mrb[22].mxu0 %vm483_vm2, %v15630_v4 }
  0x9d   : > { %13084 = vmatprep.mubr.msk.f32.mxu0 %vm483_vm2, %v1181_v60  ;;  %v15657_v60 = vld [vmem:[#allocation2 + $0xd8] sm:$0xff] }
  0xa0   : > { %13085 = vmatmul.mubr.msk.f32.gmra.mrb[24].mxu0 %vm483_vm2, %v15642_v32 }
  0xa1   : > { %13087 = vmatprep.mubr.msk.f32.mxu0 %vm483_vm2, %v1183_v63  ;;  %v15675_v63 = vld [vmem:[#allocation2 + $0xe8] sm:$0xff] }
  0xa2   : > { %18788 = vst [vmem:[#allocation46_spill] sm:$0xff] %v15675_v63 }
  0xa4   : > { %13088 = vmatmul.mubr.msk.f32.gmra.mrb[26].mxu0 %vm483_vm2, %v15657_v60 }
  0xa5   : > { %13090 = vmatprep.mubr.msk.f32.mxu0 %vm483_vm2, %v1185_v6  ;;  %v15689_v6 = vsel %vm1030_vm6, 1.0, %v18791_v26 }
  0xa6   : > { %18792 = vst [vmem:[#allocation49_spill] sm:$0xff] %v15689_v6  ;;  %v1905_v44 = vmul.f32 %v15689_v6, %v15353_v49  ;;  %v616_v6 = vand.u32 15, %v526_v51 }
  0xa8   : > { %13091 = vmatmul.mubr.msk.f32.gmra.mrb[28].mxu0 %vm483_vm2, %v15675_v63  ;;  %vm1038_vm10 = vcmp.lt.s32.totalorder %v616_v6, 15 }
  0xa9   : > { %13093 = vmatprep.mubr.msk.f32.mxu0 %vm483_vm2, %v1187_v1  ;;  %v15702_v1 = vsel %vm1032_vm7, 1.0, %v18791_v26 }
  0xaa   : > { %18794 = vst [vmem:[#allocation51_spill] sm:$0xff] %v15702_v1  ;;  %v1907_v49 = vmul.f32 %v15702_v1, %v15387_v59  ;;  %v530_v59 = vadd.s32 104, %v15425_v7 }
  0xac   : > { %13094 = vmatmul.mubr.msk.f32.gmra.mrb[30].mxu0 %vm483_vm2, %v15686_v35  ;;  %v644_v6 = vand.u32 15, %v530_v59  ;;  %v534_v59 = vadd.s32 136, %v15425_v7 }
  0xad   : > { %13098 = vmatprep.mubr.msk.f32.mxu0 %vm483_vm2, %v15345_v46  ;;  %v15717_v46 = vsel %vm1034_vm8, 1.0, %v18791_v26 }
  0xae   : > { %18795 = vst [vmem:[#allocation52_spill] sm:$0xff] %v15717_v46  ;;  %v1909_v1 = vmul.f32 %v15717_v46, %v15719_v34  ;;  %v15747_v46 = vsel %vm1038_vm10, 1.0, %v18791_v26  ;;  %v15751_v34 = vld [vmem:[#allocation2 + $0x42] sm:$0xff]  ;;  %vm1042_vm12 = vcmp.lt.s32.totalorder %v644_v6, 15  ;;  %v672_v6 = vand.u32 15, %v534_v59 }
  0xaf   : > { %18801 = vst [vmem:[#allocation58_spill] sm:$0xff] %v15747_v46  ;;  %18803 = vst [vmem:[#allocation60_spill] sm:$0xff] %v15751_v34  ;;  %v538_v59 = vadd.s32 168, %v15425_v7 }
  0xb0   : > { %13099 = vmatmul.mubr.msk.f32.vlgmr.msra.gmra.mrb[0].mxu0 %vm483_vm2, %v1905_v44  ;;  %v528_v44 = vadd.s32 88, %v15425_v7  ;;  %vm1046_vm14 = vcmp.lt.s32.totalorder %v672_v6, 15 }
  0xb1   : > { %13101 = vmatprep.mubr.msk.f32.mxu0 %vm483_vm2, %v15385_v58  ;;  %13147 = vmatpush3.msk.msra.mxu0 %vm1319_vm0, %v15493_v38  ;;  %v15734_v58 = vsel %vm1036_vm9, 1.0, %v18791_v26  ;;  %v15736_v38 = vld [vmem:[#allocation2 + $0x3a] sm:$0xff]  ;;  %v700_v6 = vand.u32 15, %v538_v59  ;;  %v542_v59 = vadd.s32 200, %v15425_v7  ;;  %vm481_vm9 = vcmask 123904  }
  0xb2   : > { %13196 = vmatprep.subr.msk.mxu0 %vm1319_vm0, %v15709_v33  ;;  %18798 = vst [vmem:[#allocation55_spill] sm:$0xff] %v15734_v58  ;;  %18799 = vst [vmem:[#allocation56_spill] sm:$0xff] %v15736_v38  ;;  %v630_v51 = vand.u32 15, %v528_v44  ;;  %v532_v44 = vadd.s32 120, %v15425_v7 }
  0xb3   : > { %vm1050_vm3 = vcmp.lt.s32.totalorder %v700_v6, 15  ;;  %v728_v6 = vand.u32 15, %v542_v59  ;;  %v546_v59 = vadd.s32 232, %v15425_v7  ;;  %482 = vst.msk [vmem:[#allocation2 + $0x120] sm:$0x3] %vm481_vm9, %v18791_v26 }
  0xb4   : > { %13102 = vmatmul.mubr.msk.f32.gmra.mrb[2].mxu0 %vm483_vm2, %v1907_v49  ;;  %v1911_v49 = vmul.f32 %v15734_v58, %v15736_v38  ;;  %vm1040_vm11 = vcmp.lt.s32.totalorder %v630_v51, 15  ;;  %v15764_v38 = vld [vmem:[#allocation2 + $0x52] sm:$0xff]  ;;  %v658_v51 = vand.u32 15, %v532_v44  ;;  %v536_v44 = vadd.s32 152, %v15425_v7 }
  0xb5   : > { %13104 = vmatprep.mubr.msk.f32.mxu0 %vm483_vm2, %v15723_v47  ;;  %v15749_v47 = vld [vmem:[#allocation2 + $0x4a] sm:$0xff]  ;;  %v15760_v58 = vsel %vm1040_vm11, 1.0, %v18791_v26  ;;  %18806 = vst [vmem:[#allocation63_spill] sm:$0xff] %v15764_v38  ;;  %vm1054_vm5 = vcmp.lt.s32.totalorder %v728_v6, 15  ;;  %v756_v6 = vand.u32 15, %v546_v59 }
  0xb6   : > { %18802 = vst [vmem:[#allocation59_spill] sm:$0xff] %v15749_v47  ;;  %18804 = vst [vmem:[#allocation61_spill] sm:$0xff] %v15760_v58  ;;  %vm1044_vm13 = vcmp.lt.s32.totalorder %v658_v51, 15  ;;  %v686_v51 = vand.u32 15, %v536_v44  ;;  %v540_v44 = vadd.s32 184, %v15425_v7 }
  0xb7   : > { %vm1058_vm7 = vcmp.lt.s32.totalorder %v756_v6, 15 }
  0xb8   : > { %13105 = vmatmul.mubr.msk.f32.gmra.mrb[4].mxu0 %vm483_vm2, %v1909_v1  ;;  %v1913_v1 = vmul.f32 %v15747_v46, %v15749_v47  ;;  %v15773_v46 = vsel %vm1042_vm12, 1.0, %v18791_v26  ;;  %v15777_v47 = vld [vmem:[#allocation2 + $0x62] sm:$0xff]  ;;  %vm1048_vm15 = vcmp.lt.s32.totalorder %v686_v51, 15  ;;  %v714_v51 = vand.u32 15, %v540_v44 }
  0xb9   : > { %13107 = vmatprep.mubr.msk.f32.mxu0 %vm483_vm2, %v15738_v36  ;;  %v15762_v36 = vld [vmem:[#allocation2 + $0x5a] sm:$0xff]  ;;  %18807 = vst [vmem:[#allocation64_spill] sm:$0xff] %v15773_v46  ;;  %18809 = vst [vmem:[#allocation66_spill] sm:$0xff] %v15777_v47  ;;  %v544_v44 = vadd.s32 216, %v15425_v7 }
  0xba   : > { %18805 = vst [vmem:[#allocation62_spill] sm:$0xff] %v15762_v36  ;;  %vm1052_vm4 = vcmp.lt.s32.totalorder %v714_v51, 15 }
  0xbb   : > { %v742_v51 = vand.u32 15, %v544_v44  ;;  %v548_v44 = vadd.s32 248, %v15425_v7  ;;  %v15878_v7 = vld [vmem:[#allocation2 + $0xea] sm:$0xff] }
  0xbc   : > { %13108 = vmatmul.mubr.msk.f32.gmra.mrb[6].mxu0 %vm483_vm2, %v1911_v49  ;;  %v1915_v49 = vmul.f32 %v15760_v58, %v15762_v36  ;;  %v15786_v58 = vsel %vm1044_vm13, 1.0, %v18791_v26  ;;  %v15790_v36 = vld [vmem:[#allocation2 + $0x72] sm:$0xff]  ;;  %18830 = vst [vmem:[#allocation87_spill] sm:$0xff] %v15878_v7 }
  0xbd   : > { %13110 = vmatprep.mubr.msk.f32.mxu0 %vm483_vm2, %v15751_v34  ;;  %v15775_v34 = vld [vmem:[#allocation2 + $0x6a] sm:$0xff]  ;;  %18810 = vst [vmem:[#allocation67_spill] sm:$0xff] %v15786_v58  ;;  %18812 = vst [vmem:[#allocation69_spill] sm:$0xff] %v15790_v36  ;;  %vm1056_vm6 = vcmp.lt.s32.totalorder %v742_v51, 15  ;;  %v770_v51 = vand.u32 15, %v548_v44 }
  0xbe   : > { %18808 = vst [vmem:[#allocation65_spill] sm:$0xff] %v15775_v34 }
  0xbf   : > { %vm1060_vm8 = vcmp.lt.s32.totalorder %v770_v51, 15 }
  0xc0   : > { %13111 = vmatmul.mubr.msk.f32.gmra.mrb[8].mxu0 %vm483_vm2, %v1913_v1  ;;  %v1917_v1 = vmul.f32 %v15773_v46, %v15775_v34  ;;  %v15799_v46 = vsel %vm1046_vm14, 1.0, %v18791_v26  ;;  %v15803_v34 = vld [vmem:[#allocation2 + $0x82] sm:$0xff]  ;;  %v15888_v44 = vsel %vm1060_vm8, 1.0, %v18791_v26 }
  0xc1   : > { %13113 = vmatprep.mubr.msk.f32.mxu0 %vm483_vm2, %v15764_v38  ;;  %v15788_v38 = vld [vmem:[#allocation2 + $0x7a] sm:$0xff]  ;;  %18813 = vst [vmem:[#allocation70_spill] sm:$0xff] %v15799_v46  ;;  %18815 = vst [vmem:[#allocation72_spill] sm:$0xff] %v15803_v34 }
  0xc2   : > { %18811 = vst [vmem:[#allocation68_spill] sm:$0xff] %v15788_v38  ;;  %18832 = vst [vmem:[#allocation89_spill] sm:$0xff] %v15888_v44 }
  0xc4   : > { %13114 = vmatmul.mubr.msk.f32.gmra.mrb[10].mxu0 %vm483_vm2, %v1915_v49  ;;  %v1919_v49 = vmul.f32 %v15786_v58, %v15788_v38  ;;  %v15812_v58 = vsel %vm1048_vm15, 1.0, %v18791_v26  ;;  %v15816_v38 = vld [vmem:[#allocation2 + $0x92] sm:$0xff] }
  0xc5   : > { %13116 = vmatprep.mubr.msk.f32.mxu0 %vm483_vm2, %v15777_v47  ;;  %v15801_v47 = vld [vmem:[#allocation2 + $0x8a] sm:$0xff]  ;;  %18816 = vst [vmem:[#allocation73_spill] sm:$0xff] %v15812_v58  ;;  %18818 = vst [vmem:[#allocation75_spill] sm:$0xff] %v15816_v38 }
  0xc6   : > { %18814 = vst [vmem:[#allocation71_spill] sm:$0xff] %v15801_v47 }
  0xc8   : > { %13117 = vmatmul.mubr.msk.f32.gmra.mrb[12].mxu0 %vm483_vm2, %v1917_v1  ;;  %v1921_v1 = vmul.f32 %v15799_v46, %v15801_v47  ;;  %v15825_v46 = vsel %vm1050_vm3, 1.0, %v18791_v26  ;;  %v15829_v47 = vld [vmem:[#allocation2 + $0xa2] sm:$0xff] }
  0xc9   : > { %13119 = vmatprep.mubr.msk.f32.mxu0 %vm483_vm2, %v15790_v36  ;;  %v15814_v36 = vld [vmem:[#allocation2 + $0x9a] sm:$0xff]  ;;  %18819 = vst [vmem:[#allocation76_spill] sm:$0xff] %v15825_v46  ;;  %18821 = vst [vmem:[#allocation78_spill] sm:$0xff] %v15829_v47 }
  0xca   : > { %18817 = vst [vmem:[#allocation74_spill] sm:$0xff] %v15814_v36 }
  0xcc   : > { %13120 = vmatmul.mubr.msk.f32.gmra.mrb[14].mxu0 %vm483_vm2, %v1919_v49  ;;  %v1923_v49 = vmul.f32 %v15812_v58, %v15814_v36  ;;  %v15838_v58 = vsel %vm1052_vm4, 1.0, %v18791_v26  ;;  %v15842_v36 = vld [vmem:[#allocation2 + $0xb2] sm:$0xff] }
  0xcd   : > { %13122 = vmatprep.mubr.msk.f32.mxu0 %vm483_vm2, %v15803_v34  ;;  %v15827_v34 = vld [vmem:[#allocation2 + $0xaa] sm:$0xff]  ;;  %18822 = vst [vmem:[#allocation79_spill] sm:$0xff] %v15838_v58  ;;  %18824 = vst [vmem:[#allocation81_spill] sm:$0xff] %v15842_v36 }
  0xce   : > { %18820 = vst [vmem:[#allocation77_spill] sm:$0xff] %v15827_v34 }
  0xd0   : > { %13123 = vmatmul.mubr.msk.f32.gmra.mrb[16].mxu0 %vm483_vm2, %v1921_v1  ;;  %v1925_v1 = vmul.f32 %v15825_v46, %v15827_v34  ;;  %v15851_v46 = vsel %vm1054_vm5, 1.0, %v18791_v26  ;;  %v15855_v34 = vld [vmem:[#allocation2 + $0xc2] sm:$0xff] }
  0xd1   : > { %13125 = vmatprep.mubr.msk.f32.mxu0 %vm483_vm2, %v15816_v38  ;;  %v15840_v38 = vld [vmem:[#allocation2 + $0xba] sm:$0xff]  ;;  %18825 = vst [vmem:[#allocation82_spill] sm:$0xff] %v15851_v46  ;;  %18827 = vst [vmem:[#allocation84_spill] sm:$0xff] %v15855_v34 }
  0xd2   : > { %18823 = vst [vmem:[#allocation80_spill] sm:$0xff] %v15840_v38 }
  0xd4   : > { %13126 = vmatmul.mubr.msk.f32.gmra.mrb[18].mxu0 %vm483_vm2, %v1923_v49  ;;  %v1927_v49 = vmul.f32 %v15838_v58, %v15840_v38  ;;  %v15864_v58 = vsel %vm1056_vm6, 1.0, %v18791_v26  ;;  %v15868_v38 = vld [vmem:[#allocation2 + $0xd2] sm:$0xff] }
  0xd5   : > { %13128 = vmatprep.mubr.msk.f32.mxu0 %vm483_vm2, %v15829_v47  ;;  %v15853_v47 = vld [vmem:[#allocation2 + $0xca] sm:$0xff]  ;;  %18828 = vst [vmem:[#allocation85_spill] sm:$0xff] %v15864_v58 }
  0xd6   : > { %18826 = vst [vmem:[#allocation83_spill] sm:$0xff] %v15853_v47 }
  0xd8   : > { %13129 = vmatmul.mubr.msk.f32.gmra.mrb[20].mxu0 %vm483_vm2, %v1925_v1  ;;  %v1929_v1 = vmul.f32 %v15851_v46, %v15853_v47  ;;  %v15880_v46 = vld [vmem:[#allocation2 + $0xe2] sm:$0xff] }
  0xd9   : > { %13131 = vmatprep.mubr.msk.f32.mxu0 %vm483_vm2, %v15842_v36  ;;  %v15866_v36 = vld [vmem:[#allocation2 + $0xda] sm:$0xff]  ;;  %18831 = vst [vmem:[#allocation88_spill] sm:$0xff] %v15880_v46 }
  0xda   : > { %v1931_v59 = vmul.f32 %v15864_v58, %v15866_v36  ;;  %v15892_v58 = vld [vmem:[#allocation2 + $0xf2] sm:$0xff] }
  0xdb   : > { %18834 = vst [vmem:[#allocation91_spill] sm:$0xff] %v15892_v58 }
  0xdc   : > { %13132 = vmatmul.mubr.msk.f32.gmra.mrb[22].mxu0 %vm483_vm2, %v1927_v49  ;;  %v15876_v49 = vsel %vm1058_vm7, 1.0, %v18791_v26 }
  0xdd   : > { %13134 = vmatprep.mubr.msk.f32.mxu0 %vm483_vm2, %v15855_v34  ;;  %18829 = vst [vmem:[#allocation86_spill] sm:$0xff] %v15876_v49  ;;  %v1933_v6 = vmul.f32 %v15876_v49, %v15878_v7  ;;  %v2327_v49 = vmul.f32 %v15475_v23, %v15487_v31 }
  0xe0   : > { %13135 = vmatmul.mubr.msk.f32.gmra.mrb[24].mxu0 %vm483_vm2, %v1929_v1  ;;  %v15890_v1 = vld [vmem:[#allocation2 + $0xfa] sm:$0xff] }
  0xe1   : > { %13137 = vmatprep.mubr.msk.f32.mxu0 %vm483_vm2, %v15868_v38  ;;  %18833 = vst [vmem:[#allocation90_spill] sm:$0xff] %v15890_v1  ;;  %v1935_v51 = vmul.f32 %v15888_v44, %v15890_v1  ;;  %v2329_v44 = vmul.f32 %v15485_v27, %v15505_v41 }
  0xe4   : > { %13138 = vmatmul.mubr.msk.f32.gmra.mrb[26].mxu0 %vm483_vm2, %v1931_v59  ;;  %v2325_v59 = vmul.f32 %v15460_v18, %v15381_v56  ;;  %v2331_v56 = vmul.f32 %v15503_v40, %v15520_v3 }
  0xe5   : > { %13140 = vmatprep.mubr.msk.f32.mxu0 %vm483_vm2, %v15880_v46 }
  0xe8   : > { %13141 = vmatmul.mubr.msk.f32.gmra.mrb[28].mxu0 %vm483_vm2, %v1933_v6  ;;  %v3167_v6 = vld [vmem:[%s18746_s1 + $0x14] sm:$0xf] }
  0xe9   : > { %13143 = vmatprep.mubr.msk.f32.mxu0 %vm483_vm2, %v15892_v58 }
  0xec   : > { %13144 = vmatmul.mubr.msk.f32.gmra.mrb[30].mxu0 %vm483_vm2, %v1935_v51  ;;  %v2341_v51 = vmul.f32 %v15570_v21, %v15585_v12 }
  0xed   : > { %13148 = vmatprep.mubr.msk.f32.mxu0 %vm483_vm2, %v2325_v59  ;;  %v2343_v59 = vmul.f32 %v15583_v13, %v15598_v5 }
  0xf0   : > { %13149 = vmatmul.mubr.msk.f32.vlgmr.msra.gmra.mrb[0].mxu0 %vm483_vm2, %v15383_v57  ;;  %v2333_v57 = vmul.f32 %v15518_v48, %v15533_v25 }
  0xf1   : > { %13151 = vmatprep.mubr.msk.f32.mxu0 %vm483_vm2, %v2327_v49  ;;  %13197 = vmatpush3.msk.msra.mxu0 %vm1319_vm0, %v15709_v33  ;;  %v2335_v33 = vmul.f32 %v15531_v24, %v15546_v43  ;;  %v2337_v49 = vmul.f32 %v15544_v42, %v15559_v15 }
  0xf2   : > { %13246 = vmatprep.subr.msk.mxu0 %vm1319_vm0, %v3167_v6 }
  0xf4   : > { %13152 = vmatmul.mubr.msk.f32.gmra.mrb[2].mxu0 %vm483_vm2, %v15513_v45 }
  0xf5   : > { %13154 = vmatprep.mubr.msk.f32.mxu0 %vm483_vm2, %v2329_v44  ;;  %v2339_v44 = vmul.f32 %v15557_v20, %v15572_v17 }
  0xf8   : > { %13155 = vmatmul.mubr.msk.f32.gmra.mrb[4].mxu0 %vm483_vm2, %v15526_v19 }
  0xf9   : > { %13157 = vmatprep.mubr.msk.f32.mxu0 %vm483_vm2, %v2331_v56  ;;  %v2345_v56 = vmul.f32 %v15596_v8, %v15611_v0 }
  0xfc   : > { %13158 = vmatmul.mubr.msk.f32.gmra.mrb[6].mxu0 %vm483_vm2, %v15539_v37 }
  0xfd   : > { %13160 = vmatprep.mubr.msk.f32.mxu0 %vm483_vm2, %v2333_v57  ;;  %v2347_v57 = vmul.f32 %v15609_v2, %v15624_v61 }
 0x100   : > { %13161 = vmatmul.mubr.msk.f32.gmra.mrb[8].mxu0 %vm483_vm2, %v15552_v14 }
 0x101   : > { %13163 = vmatprep.mubr.msk.f32.mxu0 %vm483_vm2, %v2335_v33  ;;  %v2349_v33 = vmul.f32 %v15622_v62, %v15637_v54 }
 0x104   : > { %13164 = vmatmul.mubr.msk.f32.gmra.mrb[10].mxu0 %vm483_vm2, %v15565_v39 }
 0x105   : > { %13166 = vmatprep.mubr.msk.f32.mxu0 %vm483_vm2, %v2337_v49  ;;  %v2351_v49 = vmul.f32 %v15635_v55, %v15649_v52 }
 0x108   : > { %13167 = vmatmul.mubr.msk.f32.gmra.mrb[12].mxu0 %vm483_vm2, %v15578_v22 }
 0x109   : > { %13169 = vmatprep.mubr.msk.f32.mxu0 %vm483_vm2, %v2339_v44  ;;  %v2353_v44 = vmul.f32 %v15647_v53, %v15664_v50  ;;  %v15994_v53 = vld [vmem:[#allocation2 + $0x10a] sm:$0xff] }
 0x10c   : > { %13170 = vmatmul.mubr.msk.f32.gmra.mrb[14].mxu0 %vm483_vm2, %v15591_v11 }
 0x10d   : > { %13172 = vmatprep.mubr.msk.f32.mxu0 %vm483_vm2, %v2341_v51  ;;  %v15976_v51 = vld [vmem:[#allocation2 + $0x100] sm:$0xff] }
 0x10e   : > { %18835 = vst [vmem:[#allocation92_spill] sm:$0xff] %v15976_v51 }
 0x110   : > { %13173 = vmatmul.mubr.msk.f32.gmra.mrb[16].mxu0 %vm483_vm2, %v15604_v16 }
 0x111   : > { %13175 = vmatprep.mubr.msk.f32.mxu0 %vm483_vm2, %v2343_v59  ;;  %v2355_v59 = vmul.f32 %v15662_v10, %v15976_v51  ;;  %v18842_v10 = vld [vmem:[#allocation9_spill] sm:$0xff] }
 0x112   : > { %v16094_v51 = vld [vmem:[#allocation2 + $0x49] sm:$0xff] }
 0x114   : > { %13176 = vmatmul.mubr.msk.f32.gmra.mrb[18].mxu0 %vm483_vm2, %v15617_v9 }
 0x115   : > { %13178 = vmatprep.mubr.msk.f32.mxu0 %vm483_vm2, %v2345_v56  ;;  %v15985_v56 = vld [vmem:[#allocation2 + $0x108] sm:$0xff] }
 0x116   : > { %18836 = vst [vmem:[#allocation93_spill] sm:$0xff] %v15985_v56 }
 0x118   : > { %13179 = vmatmul.mubr.msk.f32.gmra.mrb[20].mxu0 %vm483_vm2, %v15630_v4 }
 0x119   : > { %13181 = vmatprep.mubr.msk.f32.mxu0 %vm483_vm2, %v2347_v57  ;;  %v15987_v57 = vld [vmem:[#allocation2 + $0x101] sm:$0xff] }
 0x11a   : > { %18837 = vst [vmem:[#allocation94_spill] sm:$0xff] %v15987_v57 }
 0x11c   : > { %13182 = vmatmul.mubr.msk.f32.gmra.mrb[22].mxu0 %vm483_vm2, %v15642_v32 }
 0x11d   : > { %13184 = vmatprep.mubr.msk.f32.mxu0 %vm483_vm2, %v2349_v33  ;;  %v15990_v33 = vld [vmem:[#allocation2 + $0x109] sm:$0xff] }
 0x11e   : > { %18838 = vst [vmem:[#allocation95_spill] sm:$0xff] %v15990_v33 }
 0x120   : > { %13185 = vmatmul.mubr.msk.f32.gmra.mrb[24].mxu0 %vm483_vm2, %v15657_v60 }
 0x121   : > { %13187 = vmatprep.mubr.msk.f32.mxu0 %vm483_vm2, %v2351_v49  ;;  %v15992_v49 = vld [vmem:[#allocation2 + $0x102] sm:$0xff] }
 0x122   : > { %4987 = vst.msk [vmem:[#allocation2 + $0x108] sm:$0xff] %vm444_vm1, %v18791_v26 }
 0x124   : > { %13188 = vmatmul.mubr.msk.f32.gmra.mrb[26].mxu0 %vm483_vm2, %v15675_v63  ;;  %v16100_v63 = vld [vmem:[#allocation2 + $0x59] sm:$0xff] }
 0x125   : > { %13190 = vmatprep.mubr.msk.f32.mxu0 %vm483_vm2, %v2353_v44  ;;  %v3588_v44 = vld [vmem:[%s18746_s1 + $0x18] sm:$0xf] }
 0x128   : > { %13191 = vmatmul.mubr.msk.f32.gmra.mrb[28].mxu0 %vm483_vm2, %v15686_v35  ;;  %v18846_v35 = vld [vmem:[#allocation13_spill] sm:$0xff] }
 0x129   : > { %13193 = vmatprep.mubr.msk.f32.mxu0 %vm483_vm2, %v2355_v59  ;;  %v18839_v59 = vld [vmem:[#allocation6_spill] sm:$0xff] }
 0x12a   : > { %18878 = vst [vmem:[#allocation6_spill] sm:$0xff] %v16100_v63  ;;  %v16122_v63 = vld [vmem:[#allocation2 + $0x71] sm:$0xff] }
 0x12b   : > { %18886 = vst [vmem:[#allocation9_spill] sm:$0xff] %v16122_v63  ;;  %v16148_v63 = vld [vmem:[#allocation2 + $0x91] sm:$0xff] }
 0x12c   : > { %13194 = vmatmul.mubr.msk.f32.gmra.mrb[30].mxu0 %vm483_vm2, %v15985_v56  ;;  %v18840_v56 = vld [vmem:[#allocation7_spill] sm:$0xff]  ;;  %18896 = vst [vmem:[#allocation13_spill] sm:$0xff] %v16148_v63 }
 0x12d   : > { %13198 = vmatprep.mubr.msk.f32.mxu0 %vm483_vm2, %v15292_v28  ;;  %v18841_v28 = vld [vmem:[#allocation8_spill] sm:$0xff]  ;;  %v16174_v63 = vld [vmem:[#allocation2 + $0xb1] sm:$0xff] }
 0x130   : > { %13199 = vmatmul.mubr.msk.f32.vlgmr.msra.gmra.mrb[0].mxu0 %vm483_vm2, %v15294_v29  ;;  %v18843_v29 = vld [vmem:[#allocation10_spill] sm:$0xff] }
 0x131   : > { %13201 = vmatprep.mubr.msk.f32.mxu0 %vm483_vm2, %v15296_v30  ;;  %13247 = vmatpush3.msk.msra.mxu0 %vm1319_vm0, %v3167_v6  ;;  %v18844_v30 = vld [vmem:[#allocation11_spill] sm:$0xff]  ;;  %v18845_v6 = vld [vmem:[#allocation12_spill] sm:$0xff] }
 0x132   : > { %13296 = vmatprep.subr.msk.mxu0 %vm1319_vm0, %v3588_v44 }
 0x134   : > { %13202 = vmatmul.mubr.msk.f32.gmra.mrb[2].mxu0 %vm483_vm2, %v18839_v59  ;;  %v18847_v59 = vld [vmem:[#allocation14_spill] sm:$0xff] }
 0x135   : > { %13204 = vmatprep.mubr.msk.f32.mxu0 %vm483_vm2, %v18840_v56  ;;  %v18848_v56 = vld [vmem:[#allocation15_spill] sm:$0xff] }
 0x138   : > { %13205 = vmatmul.mubr.msk.f32.gmra.mrb[4].mxu0 %vm483_vm2, %v18841_v28  ;;  %v18849_v28 = vld [vmem:[#allocation16_spill] sm:$0xff] }
 0x139   : > { %13207 = vmatprep.mubr.msk.f32.mxu0 %vm483_vm2, %v18842_v10  ;;  %v18850_v10 = vld [vmem:[#allocation17_spill] sm:$0xff] }
 0x13c   : > { %13208 = vmatmul.mubr.msk.f32.gmra.mrb[6].mxu0 %vm483_vm2, %v18843_v29  ;;  %v18851_v29 = vld [vmem:[#allocation20_spill] sm:$0xff] }
 0x13d   : > { %13210 = vmatprep.mubr.msk.f32.mxu0 %vm483_vm2, %v18844_v30  ;;  %v18852_v30 = vld [vmem:[#allocation21_spill] sm:$0xff] }
 0x140   : > { %13211 = vmatmul.mubr.msk.f32.gmra.mrb[8].mxu0 %vm483_vm2, %v18845_v6  ;;  %v18853_v6 = vld [vmem:[#allocation22_spill] sm:$0xff] }
 0x141   : > { %13213 = vmatprep.mubr.msk.f32.mxu0 %vm483_vm2, %v18846_v35  ;;  %v18854_v35 = vld [vmem:[#allocation23_spill] sm:$0xff] }
 0x144   : > { %13214 = vmatmul.mubr.msk.f32.gmra.mrb[10].mxu0 %vm483_vm2, %v18847_v59  ;;  %v18855_v59 = vld [vmem:[#allocation24_spill] sm:$0xff] }
 0x145   : > { %13216 = vmatprep.mubr.msk.f32.mxu0 %vm483_vm2, %v18848_v56  ;;  %v18856_v56 = vld [vmem:[#allocation25_spill] sm:$0xff] }
 0x148   : > { %13217 = vmatmul.mubr.msk.f32.gmra.mrb[12].mxu0 %vm483_vm2, %v18849_v28  ;;  %v18857_v28 = vld [vmem:[#allocation26_spill] sm:$0xff] }
 0x149   : > { %13219 = vmatprep.mubr.msk.f32.mxu0 %vm483_vm2, %v18850_v10  ;;  %v18858_v10 = vld [vmem:[#allocation27_spill] sm:$0xff] }
 0x14c   : > { %13220 = vmatmul.mubr.msk.f32.gmra.mrb[14].mxu0 %vm483_vm2, %v18851_v29  ;;  %v18859_v29 = vld [vmem:[#allocation29_spill] sm:$0xff] }
 0x14d   : > { %13222 = vmatprep.mubr.msk.f32.mxu0 %vm483_vm2, %v18852_v30  ;;  %v18860_v30 = vld [vmem:[#allocation30_spill] sm:$0xff] }
 0x150   : > { %13223 = vmatmul.mubr.msk.f32.gmra.mrb[16].mxu0 %vm483_vm2, %v18853_v6  ;;  %v18861_v6 = vld [vmem:[#allocation32_spill] sm:$0xff] }
 0x151   : > { %13225 = vmatprep.mubr.msk.f32.mxu0 %vm483_vm2, %v18854_v35  ;;  %v18862_v35 = vld [vmem:[#allocation33_spill] sm:$0xff] }
 0x154   : > { %13226 = vmatmul.mubr.msk.f32.gmra.mrb[18].mxu0 %vm483_vm2, %v18855_v59  ;;  %v18863_v59 = vld [vmem:[#allocation35_spill] sm:$0xff] }
 0x155   : > { %13228 = vmatprep.mubr.msk.f32.mxu0 %vm483_vm2, %v18856_v56  ;;  %v18864_v56 = vld [vmem:[#allocation36_spill] sm:$0xff] }
 0x158   : > { %13229 = vmatmul.mubr.msk.f32.gmra.mrb[20].mxu0 %vm483_vm2, %v18857_v28  ;;  %v18865_v28 = vld [vmem:[#allocation39_spill] sm:$0xff] }
 0x159   : > { %13231 = vmatprep.mubr.msk.f32.mxu0 %vm483_vm2, %v18858_v10  ;;  %v18866_v10 = vld [vmem:[#allocation19_spill] sm:$0xff] }
 0x15c   : > { %13232 = vmatmul.mubr.msk.f32.gmra.mrb[22].mxu0 %vm483_vm2, %v18859_v29  ;;  %v18867_v29 = vld [vmem:[#allocation49_spill] sm:$0xff] }
 0x15d   : > { %13234 = vmatprep.mubr.msk.f32.mxu0 %vm483_vm2, %v18860_v30  ;;  %v3136_v30 = vmul.f32 %v18867_v29, %v18866_v10  ;;  %v18872_v10 = vld [vmem:[#allocation56_spill] sm:$0xff] }
 0x160   : > { %13235 = vmatmul.mubr.msk.f32.gmra.mrb[24].mxu0 %vm483_vm2, %v18861_v6  ;;  %v18868_v6 = vld [vmem:[#allocation18_spill] sm:$0xff] }
 0x161   : > { %13237 = vmatprep.mubr.msk.f32.mxu0 %vm483_vm2, %v18862_v35  ;;  %v16076_v35 = vld [vmem:[%s18746_s1 + $0x1c] sm:$0xf] }
 0x164   : > { %13238 = vmatmul.mubr.msk.f32.gmra.mrb[26].mxu0 %vm483_vm2, %v18863_v59  ;;  %v18869_v59 = vld [vmem:[#allocation53_spill] sm:$0xff] }
 0x165   : > { %13240 = vmatprep.mubr.msk.f32.mxu0 %vm483_vm2, %v18864_v56  ;;  %v18870_v56 = vld [vmem:[#allocation51_spill] sm:$0xff] }
 0x168   : > { %13241 = vmatmul.mubr.msk.f32.gmra.mrb[28].mxu0 %vm483_vm2, %v18865_v28  ;;  %v3138_v28 = vmul.f32 %v18870_v56, %v18869_v59  ;;  %v18876_v59 = vld [vmem:[#allocation55_spill] sm:$0xff] }
 0x169   : > { %13243 = vmatprep.mubr.msk.f32.mxu0 %vm483_vm2, %v15987_v57  ;;  %v18871_v57 = vld [vmem:[#allocation54_spill] sm:$0xff] }
 0x16c   : > { %13244 = vmatmul.mubr.msk.f32.gmra.mrb[30].mxu0 %vm483_vm2, %v15990_v33  ;;  %v18874_v33 = vld [vmem:[#allocation57_spill] sm:$0xff] }
 0x16d   : > { %13248 = vmatprep.mubr.msk.f32.mxu0 %vm483_vm2, %v18868_v6  ;;  %v18873_v6 = vld [vmem:[#allocation52_spill] sm:$0xff] }
 0x16e   : > { %v3140_v29 = vmul.f32 %v18873_v6, %v18872_v10  ;;  %v16109_v10 = vld [vmem:[#allocation2 + $0x61] sm:$0xff]  ;;  %v16113_v6 = vld [vmem:[#allocation2 + $0x69] sm:$0xff] }
 0x16f   : > { %18881 = vst [vmem:[#allocation7_spill] sm:$0xff] %v16109_v10  ;;  %18883 = vst [vmem:[#allocation8_spill] sm:$0xff] %v16113_v6  ;;  %v16135_v10 = vld [vmem:[#allocation2 + $0x81] sm:$0xff] }
 0x170   : > { %13249 = vmatmul.mubr.msk.f32.vlgmr.msra.gmra.mrb[0].mxu0 %vm483_vm2, %v3136_v30  ;;  %v18875_v30 = vld [vmem:[#allocation59_spill] sm:$0xff]  ;;  %4966 = vst.msk [vmem:[#allocation2 + $0x60] sm:$0xff] %vm444_vm1, %v18791_v26  ;;  %4967 = vst.msk [vmem:[#allocation2 + $0x68] sm:$0xff] %vm444_vm1, %v18791_v26 }
 0x171   : > { %13251 = vmatprep.mubr.msk.f32.mxu0 %vm483_vm2, %v18871_v57  ;;  %13297 = vmatpush3.msk.msra.mxu0 %vm1319_vm0, %v3588_v44  ;;  %v3142_v56 = vmul.f32 %v18876_v59, %v18875_v30  ;;  %v16096_v57 = vld [vmem:[#allocation2 + $0x51] sm:$0xff]  ;;  %v18877_v44 = vld [vmem:[#allocation60_spill] sm:$0xff]  ;;  %4968 = vst.msk [vmem:[#allocation2 + $0x70] sm:$0xff] %vm444_vm1, %v18791_v26  ;;  %18891 = vst [vmem:[#allocation11_spill] sm:$0xff] %v16135_v10 }
 0x172   : > { %13346 = vmatprep.subr.msk.mxu0 %vm1319_vm0, %v16076_v35  ;;  %4964 = vst.msk [vmem:[#allocation2 + $0x50] sm:$0xff] %vm444_vm1, %v18791_v26  ;;  %4965 = vst.msk [vmem:[#allocation2 + $0x58] sm:$0xff] %vm444_vm1, %v18791_v26  ;;  %v18882_v59 = vld [vmem:[#allocation63_spill] sm:$0xff]  ;;  %v16161_v10 = vld [vmem:[#allocation2 + $0xa1] sm:$0xff] }
 0x173   : > { %18901 = vst [vmem:[#allocation15_spill] sm:$0xff] %v16161_v10  ;;  %v16187_v10 = vld [vmem:[#allocation2 + $0xc1] sm:$0xff] }
 0x174   : > { %13252 = vmatmul.mubr.msk.f32.gmra.mrb[2].mxu0 %vm483_vm2, %v3138_v28 }
 0x175   : > { %13254 = vmatprep.mubr.msk.f32.mxu0 %vm483_vm2, %v18874_v33  ;;  %v18879_v33 = vld [vmem:[#allocation62_spill] sm:$0xff] }
 0x178   : > { %13255 = vmatmul.mubr.msk.f32.gmra.mrb[4].mxu0 %vm483_vm2, %v3140_v29  ;;  %v18880_v29 = vld [vmem:[#allocation58_spill] sm:$0xff] }
 0x179   : > { %13257 = vmatprep.mubr.msk.f32.mxu0 %vm483_vm2, %v18877_v44  ;;  %v3144_v28 = vmul.f32 %v18880_v29, %v18879_v33  ;;  %v18884_v44 = vld [vmem:[#allocation65_spill] sm:$0xff]  ;;  %v18887_v29 = vld [vmem:[#allocation66_spill] sm:$0xff]  ;;  %v16126_v33 = vld [vmem:[#allocation2 + $0x79] sm:$0xff] }
 0x17a   : > { %18888 = vst [vmem:[#allocation10_spill] sm:$0xff] %v16126_v33  ;;  %4969 = vst.msk [vmem:[#allocation2 + $0x78] sm:$0xff] %vm444_vm1, %v18791_v26 }
 0x17b   : > { %4970 = vst.msk [vmem:[#allocation2 + $0x80] sm:$0xff] %vm444_vm1, %v18791_v26 }
 0x17c   : > { %13258 = vmatmul.mubr.msk.f32.gmra.mrb[6].mxu0 %vm483_vm2, %v3142_v56  ;;  %v18885_v56 = vld [vmem:[#allocation61_spill] sm:$0xff] }
 0x17d   : > { %13260 = vmatprep.mubr.msk.f32.mxu0 %vm483_vm2, %v18882_v59  ;;  %v3146_v30 = vmul.f32 %v18885_v56, %v18884_v44  ;;  %v18889_v59 = vld [vmem:[#allocation68_spill] sm:$0xff]  ;;  %v18892_v56 = vld [vmem:[#allocation69_spill] sm:$0xff] }
 0x17e   : > { %v16139_v44 = vld [vmem:[#allocation2 + $0x89] sm:$0xff] }
 0x17f   : > { %18893 = vst [vmem:[#allocation12_spill] sm:$0xff] %v16139_v44  ;;  %4971 = vst.msk [vmem:[#allocation2 + $0x88] sm:$0xff] %vm444_vm1, %v18791_v26 }
 0x180   : > { %13261 = vmatmul.mubr.msk.f32.gmra.mrb[8].mxu0 %vm483_vm2, %v3144_v28  ;;  %v18890_v28 = vld [vmem:[#allocation64_spill] sm:$0xff]  ;;  %4972 = vst.msk [vmem:[#allocation2 + $0x90] sm:$0xff] %vm444_vm1, %v18791_v26 }
 0x181   : > { %13263 = vmatprep.mubr.msk.f32.mxu0 %vm483_vm2, %v18887_v29  ;;  %v3148_v6 = vmul.f32 %v18890_v28, %v18889_v59  ;;  %v18894_v29 = vld [vmem:[#allocation71_spill] sm:$0xff]  ;;  %v18897_v28 = vld [vmem:[#allocation72_spill] sm:$0xff] }
 0x182   : > { %v16152_v59 = vld [vmem:[#allocation2 + $0x99] sm:$0xff] }
 0x183   : > { %18898 = vst [vmem:[#allocation14_spill] sm:$0xff] %v16152_v59  ;;  %4973 = vst.msk [vmem:[#allocation2 + $0x98] sm:$0xff] %vm444_vm1, %v18791_v26 }
 0x184   : > { %13264 = vmatmul.mubr.msk.f32.gmra.mrb[10].mxu0 %vm483_vm2, %v3146_v30  ;;  %v18895_v30 = vld [vmem:[#allocation67_spill] sm:$0xff]  ;;  %4974 = vst.msk [vmem:[#allocation2 + $0xa0] sm:$0xff] %vm444_vm1, %v18791_v26 }
 0x185   : > { %13266 = vmatprep.mubr.msk.f32.mxu0 %vm483_vm2, %v18892_v56  ;;  %v3150_v33 = vmul.f32 %v18895_v30, %v18894_v29  ;;  %v18899_v56 = vld [vmem:[#allocation74_spill] sm:$0xff]  ;;  %v18902_v30 = vld [vmem:[#allocation75_spill] sm:$0xff] }
 0x186   : > { %v16165_v29 = vld [vmem:[#allocation2 + $0xa9] sm:$0xff] }
 0x187   : > { %18903 = vst [vmem:[#allocation16_spill] sm:$0xff] %v16165_v29  ;;  %4975 = vst.msk [vmem:[#allocation2 + $0xa8] sm:$0xff] %vm444_vm1, %v18791_v26 }
 0x188   : > { %13267 = vmatmul.mubr.msk.f32.gmra.mrb[12].mxu0 %vm483_vm2, %v3148_v6  ;;  %v18900_v6 = vld [vmem:[#allocation70_spill] sm:$0xff]  ;;  %4976 = vst.msk [vmem:[#allocation2 + $0xb0] sm:$0xff] %vm444_vm1, %v18791_v26 }
 0x189   : > { %13269 = vmatprep.mubr.msk.f32.mxu0 %vm483_vm2, %v18897_v28  ;;  %v3152_v44 = vmul.f32 %v18900_v6, %v18899_v56  ;;  %v18904_v28 = vld [vmem:[#allocation77_spill] sm:$0xff]  ;;  %v18906_v6 = vld [vmem:[#allocation78_spill] sm:$0xff]  ;;  %v16178_v56 = vld [vmem:[#allocation2 + $0xb9] sm:$0xff] }
 0x18a   : > { %18907 = vst [vmem:[#allocation17_spill] sm:$0xff] %v16178_v56  ;;  %4977 = vst.msk [vmem:[#allocation2 + $0xb8] sm:$0xff] %vm444_vm1, %v18791_v26  ;;  %v16200_v56 = vld [vmem:[#allocation2 + $0xd1] sm:$0xff] }
 0x18b   : > { %4978 = vst.msk [vmem:[#allocation2 + $0xc0] sm:$0xff] %vm444_vm1, %v18791_v26 }
 0x18c   : > { %13270 = vmatmul.mubr.msk.f32.gmra.mrb[14].mxu0 %vm483_vm2, %v3150_v33  ;;  %v18905_v33 = vld [vmem:[#allocation73_spill] sm:$0xff] }
 0x18d   : > { %13272 = vmatprep.mubr.msk.f32.mxu0 %vm483_vm2, %v18902_v30  ;;  %v3154_v59 = vmul.f32 %v18905_v33, %v18904_v28  ;;  %v18908_v30 = vld [vmem:[#allocation80_spill] sm:$0xff]  ;;  %v18910_v33 = vld [vmem:[#allocation81_spill] sm:$0xff] }
 0x18e   : > { %v16191_v28 = vld [vmem:[#allocation2 + $0xc9] sm:$0xff] }
 0x18f   : > { %4979 = vst.msk [vmem:[#allocation2 + $0xc8] sm:$0xff] %vm444_vm1, %v18791_v26  ;;  %4980 = vst.msk [vmem:[#allocation2 + $0xd0] sm:$0xff] %vm444_vm1, %v18791_v26 }
 0x190   : > { %13273 = vmatmul.mubr.msk.f32.gmra.mrb[16].mxu0 %vm483_vm2, %v3152_v44  ;;  %v18909_v44 = vld [vmem:[#allocation76_spill] sm:$0xff] }
 0x191   : > { %13275 = vmatprep.mubr.msk.f32.mxu0 %vm483_vm2, %v18906_v6  ;;  %v3156_v29 = vmul.f32 %v18909_v44, %v18908_v30  ;;  %v16204_v44 = vld [vmem:[#allocation2 + $0xd9] sm:$0xff]  ;;  %v16213_v30 = vld [vmem:[#allocation2 + $0xe1] sm:$0xff] }
 0x192   : > { %4981 = vst.msk [vmem:[#allocation2 + $0xd8] sm:$0xff] %vm444_vm1, %v18791_v26  ;;  %4982 = vst.msk [vmem:[#allocation2 + $0xe0] sm:$0xff] %vm444_vm1, %v18791_v26 }
 0x194   : > { %13276 = vmatmul.mubr.msk.f32.gmra.mrb[18].mxu0 %vm483_vm2, %v3154_v59  ;;  %v18911_v59 = vld [vmem:[#allocation79_spill] sm:$0xff] }
 0x195   : > { %13278 = vmatprep.mubr.msk.f32.mxu0 %vm483_vm2, %v18910_v33  ;;  %v3158_v6 = vmul.f32 %v18911_v59, %v15853_v47  ;;  %v16217_v59 = vld [vmem:[#allocation2 + $0xe9] sm:$0xff]  ;;  %v16226_v47 = vld [vmem:[#allocation2 + $0xf1] sm:$0xff] }
 0x196   : > { %4983 = vst.msk [vmem:[#allocation2 + $0xe8] sm:$0xff] %vm444_vm1, %v18791_v26  ;;  %4984 = vst.msk [vmem:[#allocation2 + $0xf0] sm:$0xff] %vm444_vm1, %v18791_v26 }
 0x198   : > { %13279 = vmatmul.mubr.msk.f32.gmra.mrb[20].mxu0 %vm483_vm2, %v3156_v29  ;;  %v18912_v29 = vld [vmem:[#allocation82_spill] sm:$0xff] }
 0x199   : > { %13281 = vmatprep.mubr.msk.f32.mxu0 %vm483_vm2, %v15855_v34  ;;  %v3160_v33 = vmul.f32 %v18912_v29, %v15866_v36  ;;  %v16230_v29 = vld [vmem:[#allocation2 + $0xf9] sm:$0xff] }
 0x19a   : > { %4985 = vst.msk [vmem:[#allocation2 + $0xf8] sm:$0xff] %vm444_vm1, %v18791_v26  ;;  %4986 = vst.msk [vmem:[#allocation2 + $0x100] sm:$0xff] %vm444_vm1, %v18791_v26 }
 0x19c   : > { %13282 = vmatmul.mubr.msk.f32.gmra.mrb[22].mxu0 %vm483_vm2, %v3158_v6  ;;  %v18913_v6 = vld [vmem:[#allocation85_spill] sm:$0xff] }
 0x19d   : > { %13284 = vmatprep.mubr.msk.f32.mxu0 %vm483_vm2, %v15868_v38  ;;  %v3162_v34 = vmul.f32 %v18913_v6, %v15878_v7 }
 0x1a0   : > { %13285 = vmatmul.mubr.msk.f32.gmra.mrb[24].mxu0 %vm483_vm2, %v3160_v33  ;;  %v18914_v33 = vld [vmem:[#allocation86_spill] sm:$0xff] }
 0x1a1   : > { %13287 = vmatprep.mubr.msk.f32.mxu0 %vm483_vm2, %v15880_v46  ;;  %v3164_v6 = vmul.f32 %v18914_v33, %v15890_v1  ;;  %v18915_v46 = vld [vmem:[#allocation89_spill] sm:$0xff] }
 0x1a2   : > { %v3166_v7 = vmul.f32 %v18915_v46, %v15994_v53  ;;  %v16253_v33 = vld [vmem:[#allocation2 + $0x21] sm:$0xff]  ;;  %v16264_v46 = vld [vmem:[#allocation2 + $0x2a] sm:$0xff] }
 0x1a3   : > { %v16255_v1 = vld [vmem:[#allocation2 + $0x22] sm:$0xff] }
 0x1a4   : > { %13288 = vmatmul.mubr.msk.f32.gmra.mrb[26].mxu0 %vm483_vm2, %v3162_v34  ;;  %v3556_v34 = vmul.f32 %v15460_v18, %v15487_v31  ;;  %4958 = vst.msk [vmem:[#allocation2 + $0x20] sm:$0xff] %vm444_vm1, %v18791_v26  ;;  %v16275_v31 = vld [vmem:[#allocation2 + $0x31] sm:$0xff]  ;;  %v16288_v18 = vld [vmem:[#allocation2 + $0x3a] sm:$0xff] }
 0x1a5   : > { %13290 = vmatprep.mubr.msk.f32.mxu0 %vm483_vm2, %v15892_v58  ;;  %v16260_v58 = vld [vmem:[#allocation2 + $0x29] sm:$0xff] }
 0x1a6   : > { %4959 = vst.msk [vmem:[#allocation2 + $0x28] sm:$0xff] %vm444_vm1, %v18791_v26 }
 0x1a8   : > { %13291 = vmatmul.mubr.msk.f32.gmra.mrb[28].mxu0 %vm483_vm2, %v3164_v6  ;;  %v3558_v6 = vmul.f32 %v15475_v23, %v15505_v41  ;;  %v16277_v41 = vld [vmem:[#allocation2 + $0x32] sm:$0xff] }
 0x1a9   : > { %13293 = vmatprep.mubr.msk.f32.mxu0 %vm483_vm2, %v15992_v49  ;;  %v16284_v23 = vld [vmem:[#allocation2 + $0x39] sm:$0xff]  ;;  %4960 = vst.msk [vmem:[#allocation2 + $0x30] sm:$0xff] %vm444_vm1, %v18791_v26 }
 0x1aa   : > { %4961 = vst.msk [vmem:[#allocation2 + $0x38] sm:$0xff] %vm444_vm1, %v18791_v26 }
 0x1ac   : > { %13294 = vmatmul.mubr.msk.f32.gmra.mrb[30].mxu0 %vm483_vm2, %v3166_v7  ;;  %v16271_v7 = vld [vmem:[%s18746_s1 + $0x20] sm:$0xf] }
 0x1ad   : > { %13298 = vmatprep.mubr.msk.f32.mxu0 %vm483_vm2, %v3556_v34  ;;  %v3560_v34 = vmul.f32 %v15485_v27, %v15520_v3  ;;  %v16296_v3 = vld [vmem:[#allocation2 + $0x42] sm:$0xff] }
 0x1b0   : > { %13299 = vmatmul.mubr.msk.f32.vlgmr.msra.gmra.mrb[0].mxu0 %vm483_vm2, %v15513_v45  ;;  %v3949_v45 = vld [vmem:[#allocation2 + $0x41] sm:$0xff] }
 0x1b1   : > { %13301 = vmatprep.mubr.msk.f32.mxu0 %vm483_vm2, %v3558_v6  ;;  %13347 = vmatpush3.msk.msra.mxu0 %vm1319_vm0, %v16076_v35  ;;  %v3562_v35 = vmul.f32 %v15503_v40, %v15533_v25  ;;  %4962 = vst.msk [vmem:[#allocation2 + $0x40] sm:$0xff] %vm444_vm1, %v18791_v26  ;;  %4963 = vst.msk [vmem:[#allocation2 + $0x48] sm:$0xff] %vm444_vm1, %v18791_v26  ;;  %v3566_v25 = vmul.f32 %v15531_v24, %v15559_v15  ;;  %v16366_v6 = vld [vmem:[#allocation2 + $0x112] sm:$0xff] }
 0x1b2   : > { %13396 = vmatprep.subr.msk.mxu0 %vm1319_vm0, %v16271_v7  ;;  %v3572_v15 = vmul.f32 %v15570_v21, %v15598_v5  ;;  %v3578_v5 = vmul.f32 %v15609_v2, %v15637_v54  ;;  %v18917_v54 = vld [vmem:[#allocation92_spill] sm:$0xff] }
 0x1b4   : > { %13302 = vmatmul.mubr.msk.f32.gmra.mrb[2].mxu0 %vm483_vm2, %v15526_v19  ;;  %v3564_v19 = vmul.f32 %v15518_v48, %v15546_v43  ;;  %v3570_v43 = vmul.f32 %v15557_v20, %v15585_v12  ;;  %v3576_v12 = vmul.f32 %v15596_v8, %v15624_v61  ;;  %v3582_v61 = vmul.f32 %v15635_v55, %v15664_v50  ;;  %v3976_v50 = vld [vmem:[#allocation2 + $0x119] sm:$0xff] }
 0x1b5   : > { %13304 = vmatprep.mubr.msk.f32.mxu0 %vm483_vm2, %v3560_v34  ;;  %v16368_v34 = vld [vmem:[#allocation2 + $0x11a] sm:$0xff] }
 0x1b6   : > { %4990 = vst.msk [vmem:[#allocation2 + $0x120] sm:$0x3] %vm481_vm9, %v18791_v26 }
 0x1b8   : > { %13305 = vmatmul.mubr.msk.f32.gmra.mrb[4].mxu0 %vm483_vm2, %v15539_v37  ;;  %v3568_v37 = vmul.f32 %v15544_v42, %v15572_v17  ;;  %v3574_v17 = vmul.f32 %v15583_v13, %v15611_v0  ;;  %v3580_v0 = vmul.f32 %v15622_v62, %v15649_v52  ;;  %v18920_v52 = vld [vmem:[#allocation44_spill] sm:$0xff] }
 0x1b9   : > { %13307 = vmatprep.mubr.msk.f32.mxu0 %vm483_vm2, %v3562_v35  ;;  %v18930_v35 = vld [vmem:[#allocation14_spill] sm:$0xff] }
 0x1bc   : > { %13308 = vmatmul.mubr.msk.f32.gmra.mrb[6].mxu0 %vm483_vm2, %v15552_v14  ;;  %v18916_v14 = vld [vmem:[#allocation46_spill] sm:$0xff] }
 0x1bd   : > { %13310 = vmatprep.mubr.msk.f32.mxu0 %vm483_vm2, %v3564_v19  ;;  %v18931_v19 = vld [vmem:[#allocation15_spill] sm:$0xff] }
 0x1c0   : > { %13311 = vmatmul.mubr.msk.f32.gmra.mrb[8].mxu0 %vm483_vm2, %v15565_v39  ;;  %v18918_v39 = vld [vmem:[#allocation42_spill] sm:$0xff] }
 0x1c1   : > { %13313 = vmatprep.mubr.msk.f32.mxu0 %vm483_vm2, %v3566_v25  ;;  %v18932_v25 = vld [vmem:[#allocation16_spill] sm:$0xff] }
 0x1c4   : > { %13314 = vmatmul.mubr.msk.f32.gmra.mrb[10].mxu0 %vm483_vm2, %v15578_v22  ;;  %v3584_v22 = vmul.f32 %v18918_v39, %v18917_v54  ;;  %v18950_v54 = vld [vmem:[#allocation64_spill] sm:$0xff] }
 0x1c5   : > { %13316 = vmatprep.mubr.msk.f32.mxu0 %vm483_vm2, %v3568_v37  ;;  %v18933_v37 = vld [vmem:[#allocation17_spill] sm:$0xff] }
 0x1c8   : > { %13317 = vmatmul.mubr.msk.f32.gmra.mrb[12].mxu0 %vm483_vm2, %v15591_v11  ;;  %v3554_v11 = vld [vmem:[#allocation2 + $0x110] sm:$0xff] }
 0x1c9   : > { %13319 = vmatprep.mubr.msk.f32.mxu0 %vm483_vm2, %v3570_v43 }
 0x1cc   : > { %13320 = vmatmul.mubr.msk.f32.gmra.mrb[14].mxu0 %vm483_vm2, %v15604_v16  ;;  %v18919_v16 = vld [vmem:[#allocation48_spill] sm:$0xff] }
 0x1cd   : > { %13322 = vmatprep.mubr.msk.f32.mxu0 %vm483_vm2, %v3572_v15  ;;  %v18942_v15 = vld [vmem:[#allocation63_spill] sm:$0xff] }
 0x1d0   : > { %13323 = vmatmul.mubr.msk.f32.gmra.mrb[16].mxu0 %vm483_vm2, %v15617_v9  ;;  %v3586_v9 = vmul.f32 %v18920_v52, %v3554_v11  ;;  %v18951_v11 = vld [vmem:[#allocation72_spill] sm:$0xff] }
 0x1d1   : > { %13325 = vmatprep.mubr.msk.f32.mxu0 %vm483_vm2, %v3574_v17 }
 0x1d4   : > { %13326 = vmatmul.mubr.msk.f32.gmra.mrb[18].mxu0 %vm483_vm2, %v15630_v4  ;;  %v3555_v4 = vld [vmem:[#allocation2 + $0x118] sm:$0xff] }
 0x1d5   : > { %13328 = vmatprep.mubr.msk.f32.mxu0 %vm483_vm2, %v3576_v12  ;;  %v18945_v12 = vld [vmem:[#allocation66_spill] sm:$0xff] }
 0x1d8   : > { %13329 = vmatmul.mubr.msk.f32.gmra.mrb[20].mxu0 %vm483_vm2, %v15642_v32  ;;  %v3975_v32 = vld [vmem:[#allocation2 + $0x111] sm:$0xff] }
 0x1d9   : > { %13331 = vmatprep.mubr.msk.f32.mxu0 %vm483_vm2, %v3578_v5  ;;  %4988 = vst.msk [vmem:[#allocation2 + $0x110] sm:$0xff] %vm444_vm1, %v18791_v26  ;;  %4989 = vst.msk [vmem:[#allocation2 + $0x118] sm:$0xff] %vm444_vm1, %v18791_v26  ;;  %v18946_v5 = vld [vmem:[#allocation68_spill] sm:$0xff] }
 0x1dc   : > { %13332 = vmatmul.mubr.msk.f32.gmra.mrb[22].mxu0 %vm483_vm2, %v15657_v60  ;;  %v18921_v60 = vld [vmem:[#allocation93_spill] sm:$0xff] }
 0x1dd   : > { %13334 = vmatprep.mubr.msk.f32.mxu0 %vm483_vm2, %v3580_v0 }
 0x1e0   : > { %13335 = vmatmul.mubr.msk.f32.gmra.mrb[24].mxu0 %vm483_vm2, %v18916_v14  ;;  %v18949_v14 = vld [vmem:[#allocation71_spill] sm:$0xff] }
 0x1e1   : > { %13337 = vmatprep.mubr.msk.f32.mxu0 %vm483_vm2, %v3582_v61  ;;  %v18948_v61 = vld [vmem:[#allocation69_spill] sm:$0xff] }
 0x1e4   : > { %13338 = vmatmul.mubr.msk.f32.gmra.mrb[26].mxu0 %vm483_vm2, %v18919_v16  ;;  %v18952_v16 = vld [vmem:[#allocation74_spill] sm:$0xff] }
 0x1e5   : > { %13340 = vmatprep.mubr.msk.f32.mxu0 %vm483_vm2, %v3584_v22  ;;  %v4379_v22 = vmul.f32 %v18950_v54, %v18949_v14 }
 0x1e8   : > { %13341 = vmatmul.mubr.msk.f32.gmra.mrb[28].mxu0 %vm483_vm2, %v18921_v60  ;;  %v18955_v60 = vld [vmem:[#allocation77_spill] sm:$0xff] }
 0x1e9   : > { %13343 = vmatprep.mubr.msk.f32.mxu0 %vm483_vm2, %v3586_v9  ;;  %v18953_v9 = vld [vmem:[#allocation67_spill] sm:$0xff] }
 0x1ec   : > { %13344 = vmatmul.mubr.msk.f32.gmra.mrb[30].mxu0 %vm483_vm2, %v3555_v4  ;;  %v4381_v4 = vmul.f32 %v18953_v9, %v18952_v16 }
 0x1ed   : > { %13348 = vmatprep.mubr.msk.f32.mxu0 %vm483_vm2, %v16253_v33  ;;  %v18922_v33 = vld [vmem:[#allocation6_spill] sm:$0xff] }
 0x1f0   : > { %13349 = vmatmul.mubr.msk.f32.vlgmr.msra.gmra.mrb[0].mxu0 %vm483_vm2, %v16260_v58  ;;  %v18923_v58 = vld [vmem:[#allocation7_spill] sm:$0xff] }
 0x1f1   : > { %13351 = vmatprep.mubr.msk.f32.mxu0 %vm483_vm2, %v16275_v31  ;;  %13397 = vmatpush3.msk.msra.mxu0 %vm1319_vm0, %v16271_v7  ;;  %v18924_v31 = vld [vmem:[#allocation8_spill] sm:$0xff]  ;;  %v18925_v7 = vld [vmem:[#allocation9_spill] sm:$0xff]  ;;  %vm4991_vm0 = vcmask 64512  }
 0x1f4   : > { %13352 = vmatmul.mubr.msk.f32.gmra.mrb[2].mxu0 %vm483_vm2, %v16284_v23  ;;  %v18926_v23 = vld [vmem:[#allocation10_spill] sm:$0xff] }
 0x1f5   : > { %13354 = vmatprep.mubr.msk.f32.mxu0 %vm483_vm2, %v3949_v45  ;;  %v18927_v45 = vld [vmem:[#allocation11_spill] sm:$0xff] }
 0x1f8   : > { %13355 = vmatmul.mubr.msk.f32.gmra.mrb[4].mxu0 %vm483_vm2, %v16094_v51  ;;  %v18928_v51 = vld [vmem:[#allocation12_spill] sm:$0xff] }
 0x1f9   : > { %13357 = vmatprep.mubr.msk.f32.mxu0 %vm483_vm2, %v16096_v57  ;;  %v18929_v57 = vld [vmem:[#allocation13_spill] sm:$0xff] }
 0x1fc   : > { %13358 = vmatmul.mubr.msk.f32.gmra.mrb[6].mxu0 %vm483_vm2, %v18922_v33 }
 0x1fd   : > { %13360 = vmatprep.mubr.msk.f32.mxu0 %vm483_vm2, %v18923_v58  ;;  %v18957_v58 = vld [vmem:[#allocation78_spill] sm:$0xff] }
 0x200   : > { %13361 = vmatmul.mubr.msk.f32.gmra.mrb[8].mxu0 %vm483_vm2, %v18924_v31  ;;  %v18958_v31 = vld [vmem:[#allocation80_spill] sm:$0xff] }
 0x201   : > { %13363 = vmatprep.mubr.msk.f32.mxu0 %vm483_vm2, %v18925_v7  ;;  %v18959_v7 = vld [vmem:[#allocation73_spill] sm:$0xff] }
 0x204   : > { %13364 = vmatmul.mubr.msk.f32.gmra.mrb[10].mxu0 %vm483_vm2, %v18926_v23  ;;  %v4385_v23 = vmul.f32 %v18959_v7, %v18958_v31 }
 0x205   : > { %13366 = vmatprep.mubr.msk.f32.mxu0 %vm483_vm2, %v18927_v45  ;;  %v18960_v45 = vld [vmem:[#allocation81_spill] sm:$0xff] }
 0x208   : > { %13367 = vmatmul.mubr.msk.f32.gmra.mrb[12].mxu0 %vm483_vm2, %v18928_v51  ;;  %v18961_v51 = vld [vmem:[#allocation83_spill] sm:$0xff] }
 0x209   : > { %13369 = vmatprep.mubr.msk.f32.mxu0 %vm483_vm2, %v18929_v57  ;;  %v18962_v57 = vld [vmem:[#allocation76_spill] sm:$0xff] }
 0x20c   : > { %13370 = vmatmul.mubr.msk.f32.gmra.mrb[14].mxu0 %vm483_vm2, %v18930_v35  ;;  %v4387_v35 = vmul.f32 %v18962_v57, %v18961_v51 }
 0x20d   : > { %13372 = vmatprep.mubr.msk.f32.mxu0 %vm483_vm2, %v18931_v19  ;;  %v18963_v19 = vld [vmem:[#allocation84_spill] sm:$0xff] }
 0x210   : > { %13373 = vmatmul.mubr.msk.f32.gmra.mrb[16].mxu0 %vm483_vm2, %v18932_v25  ;;  %v18964_v25 = vld [vmem:[#allocation79_spill] sm:$0xff] }
 0x211   : > { %13375 = vmatprep.mubr.msk.f32.mxu0 %vm483_vm2, %v16174_v63  ;;  %v18934_v63 = vld [vmem:[#allocation94_spill] sm:$0xff] }
 0x214   : > { %13376 = vmatmul.mubr.msk.f32.gmra.mrb[18].mxu0 %vm483_vm2, %v18933_v37  ;;  %v4389_v37 = vmul.f32 %v18964_v25, %v15866_v36 }
 0x215   : > { %13378 = vmatprep.mubr.msk.f32.mxu0 %vm483_vm2, %v16187_v10  ;;  %v18935_v10 = vld [vmem:[#allocation95_spill] sm:$0xff] }
 0x218   : > { %13379 = vmatmul.mubr.msk.f32.gmra.mrb[20].mxu0 %vm483_vm2, %v16191_v28 }
 0x219   : > { %13381 = vmatprep.mubr.msk.f32.mxu0 %vm483_vm2, %v16200_v56  ;;  %v18936_v56 = vld [vmem:[#allocation49_spill] sm:$0xff] }
 0x21a   : > { %v4367_v28 = vmul.f32 %v18936_v56, %v16264_v46  ;;  %v18940_v46 = vld [vmem:[#allocation62_spill] sm:$0xff] }
 0x21c   : > { %13382 = vmatmul.mubr.msk.f32.gmra.mrb[22].mxu0 %vm483_vm2, %v16204_v44  ;;  %v18938_v44 = vld [vmem:[#allocation59_spill] sm:$0xff] }
 0x21d   : > { %13384 = vmatprep.mubr.msk.f32.mxu0 %vm483_vm2, %v16213_v30 }
 0x220   : > { %13385 = vmatmul.mubr.msk.f32.gmra.mrb[24].mxu0 %vm483_vm2, %v16217_v59  ;;  %v18939_v59 = vld [vmem:[#allocation52_spill] sm:$0xff] }
 0x221   : > { %13387 = vmatprep.mubr.msk.f32.mxu0 %vm483_vm2, %v16226_v47  ;;  %v18937_v47 = vld [vmem:[#allocation51_spill] sm:$0xff] }
 0x222   : > { %v4369_v30 = vmul.f32 %v18937_v47, %v16288_v18  ;;  %v18943_v18 = vld [vmem:[#allocation65_spill] sm:$0xff] }
 0x224   : > { %13388 = vmatmul.mubr.msk.f32.gmra.mrb[26].mxu0 %vm483_vm2, %v16230_v29  ;;  %v4371_v29 = vmul.f32 %v18939_v59, %v18938_v44  ;;  %v18968_v44 = vld [vmem:[#allocation90_spill] sm:$0xff] }
 0x225   : > { %13390 = vmatprep.mubr.msk.f32.mxu0 %vm483_vm2, %v18934_v63  ;;  %v18965_v63 = vld [vmem:[#allocation87_spill] sm:$0xff] }
 0x228   : > { %13391 = vmatmul.mubr.msk.f32.gmra.mrb[28].mxu0 %vm483_vm2, %v18935_v10  ;;  %v18966_v10 = vld [vmem:[#allocation82_spill] sm:$0xff] }
 0x229   : > { %13393 = vmatprep.mubr.msk.f32.mxu0 %vm483_vm2, %v3975_v32  ;;  %v18954_v32 = vld [vmem:[#allocation75_spill] sm:$0xff] }
 0x22c   : > { %13394 = vmatmul.mubr.msk.f32.gmra.mrb[30].mxu0 %vm483_vm2, %v3976_v50  ;;  %v18956_v50 = vld [vmem:[#allocation70_spill] sm:$0xff] }
 0x22d   : > { %13398 = vmatprep.mubr.msk.f32.mxu0 %vm483_vm2, %v16255_v1  ;;  %v18941_v1 = vld [vmem:[#allocation55_spill] sm:$0xff]  ;;  %v4383_v33 = vmul.f32 %v18956_v50, %v18955_v60 }
 0x22e   : > { %v4373_v43 = vmul.f32 %v18941_v1, %v18940_v46 }
 0x230   : > { %13399 = vmatmul.mubr.msk.f32.vlgmr.msra.gmra.mrb[0].mxu0 %vm483_vm2, %v4367_v28  ;;  %v4391_v28 = vmul.f32 %v18966_v10, %v18965_v63 }
 0x231   : > { %13401 = vmatprep.mubr.msk.f32.mxu0 %vm483_vm2, %v16277_v41  ;;  %v18944_v41 = vld [vmem:[#allocation58_spill] sm:$0xff] }
 0x232   : > { %v4375_v17 = vmul.f32 %v18944_v41, %v18943_v18 }
 0x234   : > { %13402 = vmatmul.mubr.msk.f32.gmra.mrb[2].mxu0 %vm483_vm2, %v4369_v30  ;;  %v18967_v30 = vld [vmem:[#allocation88_spill] sm:$0xff] }
 0x235   : > { %13404 = vmatprep.mubr.msk.f32.mxu0 %vm483_vm2, %v16296_v3  ;;  %v18947_v3 = vld [vmem:[#allocation61_spill] sm:$0xff] }
 0x236   : > { %v4377_v0 = vmul.f32 %v18947_v3, %v18946_v5 }
 0x238   : > { %13405 = vmatmul.mubr.msk.f32.gmra.mrb[4].mxu0 %vm483_vm2, %v4371_v29  ;;  %v18969_v29 = vld [vmem:[#allocation85_spill] sm:$0xff] }
 0x239   : > { %13407 = vmatprep.mubr.msk.f32.mxu0 %vm483_vm2, %v18942_v15  ;;  %v4393_v46 = vmul.f32 %v18969_v29, %v18968_v44  ;;  %v18972_v15 = vld [vmem:[#allocation89_spill] sm:$0xff] }
 0x23a   : > { %v4397_v18 = vmul.f32 %v18972_v15, %v16368_v34  ;;  %v16535_v34 = vld [vmem:[%s18528_s2] ss:$0 sm:$0xff] }
 0x23c   : > { %13408 = vmatmul.mubr.msk.f32.gmra.mrb[6].mxu0 %vm483_vm2, %v4373_v43  ;;  %v18970_v43 = vld [vmem:[#allocation91_spill] sm:$0xff] }
 0x23d   : > { %13410 = vmatprep.mubr.msk.f32.mxu0 %vm483_vm2, %v18945_v12 }
 0x240   : > { %13411 = vmatmul.mubr.msk.f32.gmra.mrb[8].mxu0 %vm483_vm2, %v4375_v17  ;;  %v5121_v17 = vld [vmem:[%s18529_s3 + $0x8] sm:$0xff] }
 0x241   : > { %13413 = vmatprep.mubr.msk.f32.mxu0 %vm483_vm2, %v18948_v61  ;;  %13446 = vmatprep.subr.mxu0 %v5121_v17 }
 0x242   : > { %14252 = vmatprep.subr.mxu1 %v5121_v17  ;;  %13447 = vmatpush3.msra.mxu0 %v5121_v17 }
 0x243   : > { %14253 = vmatpush3.msra.mxu1 %v5121_v17 }
 0x244   : > { %13414 = vmatmul.mubr.msk.f32.gmra.mrb[10].mxu0 %vm483_vm2, %v4377_v0 }
 0x245   : > { %13416 = vmatprep.mubr.msk.f32.mxu0 %vm483_vm2, %v18951_v11 }
 0x248   : > { %13417 = vmatmul.mubr.msk.f32.gmra.mrb[12].mxu0 %vm483_vm2, %v4379_v22 }
 0x249   : > { %13419 = vmatprep.mubr.msk.f32.mxu0 %vm483_vm2, %v18954_v32 }
 0x24c   : > { %13420 = vmatmul.mubr.msk.f32.gmra.mrb[14].mxu0 %vm483_vm2, %v4381_v4 }
 0x24d   : > { %13422 = vmatprep.mubr.msk.f32.mxu0 %vm483_vm2, %v18957_v58 }
 0x250   : > { %13423 = vmatmul.mubr.msk.f32.gmra.mrb[16].mxu0 %vm483_vm2, %v4383_v33 }
 0x251   : > { %13425 = vmatprep.mubr.msk.f32.mxu0 %vm483_vm2, %v18960_v45 }
 0x254   : > { %13426 = vmatmul.mubr.msk.f32.gmra.mrb[18].mxu0 %vm483_vm2, %v4385_v23 }
 0x255   : > { %13428 = vmatprep.mubr.msk.f32.mxu0 %vm483_vm2, %v18963_v19 }
 0x258   : > { %13429 = vmatmul.mubr.msk.f32.gmra.mrb[20].mxu0 %vm483_vm2, %v4387_v35 }
 0x259   : > { %13431 = vmatprep.mubr.msk.f32.mxu0 %vm483_vm2, %v15868_v38  ;;  %v18971_v38 = vld [vmem:[#allocation86_spill] sm:$0xff] }
 0x25a   : > { %v4395_v36 = vmul.f32 %v18971_v38, %v15994_v53  ;;  %v5089_v53 = vld [vmem:[#allocation2 + $0x1] sm:$0xff] }
 0x25c   : > { %13432 = vmatmul.mubr.msk.f32.gmra.mrb[22].mxu0 %vm483_vm2, %v4389_v37 }
 0x25d   : > { %13434 = vmatprep.mubr.msk.f32.mxu0 %vm483_vm2, %v18967_v30 }
 0x260   : > { %13435 = vmatmul.mubr.msk.f32.gmra.mrb[24].mxu0 %vm483_vm2, %v4391_v28 }
 0x261   : > { %13437 = vmatprep.mubr.msk.f32.mxu0 %vm483_vm2, %v18970_v43 }
 0x264   : > { %13438 = vmatmul.mubr.msk.f32.gmra.mrb[26].mxu0 %vm483_vm2, %v4393_v46 }
 0x265   : > { %13440 = vmatprep.mubr.msk.f32.mxu0 %vm483_vm2, %v15992_v49  ;;  %v5090_v49 = vld [vmem:[#allocation2 + $0x9] sm:$0xff] }
 0x268   : > { %13441 = vmatmul.mubr.msk.f32.gmra.mrb[28].mxu0 %vm483_vm2, %v4395_v36 }
 0x269   : > { %13443 = vmatprep.mubr.msk.f32.mxu0 %vm483_vm2, %v16366_v6  ;;  %v16529_v6 = vld [vmem:[%s18529_s3] sm:$0xff] }
 0x26a   : > { %13496 = vmatprep.subr.mxu1 %v16529_v6 }
 0x26c   : > { %13444 = vmatmul.mubr.msk.f32.gmra.mrb[30].mxu0 %vm483_vm2, %v4397_v18 }
 0x26d   : > { %13448 = vmatprep.mubr.msk.f32.mxu0 %vm4991_vm0, %v5089_v53 }
 0x270   : > { %13449 = vmatmul.mubr.msk.f32.vlgmr.msra.gmra.mrb[32].mxu0 %vm4991_vm0, %v5090_v49 }
 0x303   : > { %v13400_v12 = vpop.f32.mrb[0].mxu0 }
 0x304   : > { %v4763_v5 = vadd.f32 %v13400_v12, %v16535_v34  ;;  %v4564_v0 = vpop.f32.mrb[1].mxu0 }
 0x305   : > { %v4762_v61 = vadd.f32 %v16535_v34, %v4564_v0 }
 0x306   : > { %v4827_v14 = vmul.f32 0.70710677, %v4763_v5  ;;  %v4795_v43 = vmul.f32 0.5, %v4763_v5 }
 0x307   : > { %v4826_v22 = vmul.f32 0.70710677, %v4762_v61  ;;  %v13403_v11 = vpop.f32.mrb[2].mxu0  ;;  %v4794_v53 = vmul.f32 0.5, %v4762_v61 }
 0x308   : > { %14888 = verf.f32 %v4827_v14  ;;  %v4765_v16 = vadd.f32 %v13403_v11, %v16535_v34  ;;  %v4574_v4 = vpop.f32.mrb[3].mxu0 }
 0x309   : > { %14890 = verf.f32 %v4826_v22  ;;  %v4764_v32 = vadd.f32 %v16535_v34, %v4574_v4 }
 0x30a   : > { %v4829_v60 = vmul.f32 0.70710677, %v4765_v16 }
 0x30b   : > { %v4828_v33 = vmul.f32 0.70710677, %v4764_v32  ;;  %v13406_v58 = vpop.f32.mrb[4].mxu0 }
 0x30c   : > { %14892 = verf.f32 %v4829_v60  ;;  %v4767_v31 = vadd.f32 %v13406_v58, %v16535_v34  ;;  %v4584_v23 = vpop.f32.mrb[5].mxu0 }
 0x30d   : > { %14894 = verf.f32 %v4828_v33  ;;  %v4766_v45 = vadd.f32 %v16535_v34, %v4584_v23  ;;  %v4797_v33 = vmul.f32 0.5, %v4765_v16  ;;  %v16564_v16 = vld [vmem:[#allocation2] sm:$0xff] }
 0x30e   : > { %v4831_v51 = vmul.f32 0.70710677, %v4767_v31 }
 0x30f   : > { %v4830_v35 = vmul.f32 0.70710677, %v4766_v45  ;;  %v13409_v19 = vpop.f32.mrb[6].mxu0 }
 0x310   : > { %14896 = verf.f32 %v4831_v51  ;;  %v4769_v37 = vadd.f32 %v13409_v19, %v16535_v34  ;;  %v4594_v63 = vpop.f32.mrb[7].mxu0  ;;  %v4796_v51 = vmul.f32 0.5, %v4764_v32 }
 0x311   : > { %14898 = verf.f32 %v4830_v35  ;;  %v16545_v28 = vadd.f32 %v16535_v34, %v4594_v63 }
 0x312   : > { %v14889_v30 = vpop.eup %14888  ;;  %v4833_v44 = vmul.f32 0.70710677, %v4769_v37 }
 0x313   : > { %v14891_v46 = vpop.eup %14890  ;;  %v4891_v36 = vadd.f32 1.0, %v14889_v30  ;;  %v4832_v18 = vmul.f32 0.70710677, %v16545_v28  ;;  %v13412_v17 = vpop.f32.mrb[8].mxu0 }
 0x314   : > { %v4890_v49 = vadd.f32 1.0, %v14891_v46  ;;  %14900 = verf.f32 %v4833_v44  ;;  %v16549_v12 = vadd.f32 %v13412_v17, %v16535_v34  ;;  %v4604_v0 = vpop.f32.mrb[9].mxu0  ;;  %v16566_v46 = vld [vmem:[#allocation2 + $0x2] sm:$0xff]  ;;  %v4799_v17 = vmul.f32 0.5, %v4767_v31 }
 0x315   : > { %v4923_v14 = vmul.f32 %v4891_v36, %v4795_v43  ;;  %14902 = verf.f32 %v4832_v18  ;;  %v16552_v22 = vadd.f32 %v16535_v34, %v4604_v0  ;;  %8794 = vst.msk [vmem:[#allocation2] sm:$0xff] %vm444_vm1, %v18791_v26 }
 0x316   : > { %v14893_v11 = vpop.eup %14892  ;;  %v4922_v4 = vmul.f32 %v4890_v49, %v4794_v53  ;;  %v4835_v5 = vmul.f32 0.70710677, %v16549_v12 }
 0x317   : > { %v14895_v60 = vpop.eup %14894  ;;  %v4893_v58 = vadd.f32 1.0, %v14893_v11  ;;  %v4834_v61 = vmul.f32 0.70710677, %v16552_v22  ;;  %v13415_v23 = vpop.f32.mrb[10].mxu0  ;;  %4993 = vst.msk [vmem:[#allocation2 + $0x19] sm:$0xff] %vm4991_vm0, %v4923_v14  ;;  %v4798_v14 = vmul.f32 0.5, %v4766_v45 }
 0x318   : > { %v4892_v35 = vadd.f32 1.0, %v14895_v60  ;;  %14904 = verf.f32 %v4835_v5  ;;  %v16558_v19 = vadd.f32 %v13415_v23, %v16535_v34  ;;  %v4614_v63 = vpop.f32.mrb[11].mxu0  ;;  %4992 = vst.msk [vmem:[#allocation2 + $0x11] sm:$0xff] %vm4991_vm0, %v4922_v4 }
 0x319   : > { %v4925_v30 = vmul.f32 %v4893_v58, %v4797_v33  ;;  %14906 = verf.f32 %v4834_v61  ;;  %v16562_v44 = vadd.f32 %v16535_v34, %v4614_v63 }
 0x31a   : > { %v14897_v43 = vpop.eup %14896  ;;  %v4924_v36 = vmul.f32 %v4892_v35, %v4796_v51  ;;  %v4837_v32 = vmul.f32 0.70710677, %v16558_v19  ;;  %v4801_v51 = vmul.f32 0.5, %v4769_v37 }
 0x31b   : > { %v14899_v18 = vpop.eup %14898  ;;  %v4895_v53 = vadd.f32 1.0, %v14897_v43  ;;  %v4836_v49 = vmul.f32 0.70710677, %v16562_v44  ;;  %v13418_v0 = vpop.f32.mrb[12].mxu0  ;;  %4995 = vst.msk [vmem:[#allocation2 + $0x29] sm:$0xff] %vm4991_vm0, %v4925_v30  ;;  %v4800_v43 = vmul.f32 0.5, %v16545_v28 }
 0x31c   : > { %v4894_v11 = vadd.f32 1.0, %v14899_v18  ;;  %14908 = verf.f32 %v4837_v32  ;;  %v16574_v4 = vadd.f32 %v13418_v0, %v16535_v34  ;;  %v4624_v5 = vpop.f32.mrb[13].mxu0  ;;  %4994 = vst.msk [vmem:[#allocation2 + $0x21] sm:$0xff] %vm4991_vm0, %v4924_v36 }
 0x31d   : > { %v4927_v60 = vmul.f32 %v4895_v53, %v4799_v17  ;;  %14910 = verf.f32 %v4836_v49  ;;  %v16578_v33 = vadd.f32 %v16535_v34, %v4624_v5  ;;  %v16594_v17 = vld [vmem:[#allocation2 + $0x8] sm:$0xff] }
 0x31e   : > { %v14901_v31 = vpop.eup %14900  ;;  %v4926_v58 = vmul.f32 %v4894_v11, %v4798_v14  ;;  %v4839_v61 = vmul.f32 0.70710677, %v16574_v4  ;;  %v16592_v37 = vld [vmem:[#allocation2 + $0x19] sm:$0xff] }
 0x31f   : > { %v14903_v23 = vpop.eup %14902  ;;  %v4897_v45 = vadd.f32 1.0, %v14901_v31  ;;  %v4838_v35 = vmul.f32 0.70710677, %v16578_v33  ;;  %4997 = vst.msk [vmem:[#allocation2 + $0x39] sm:$0xff] %vm4991_vm0, %v4927_v60  ;;  %v13421_v63 = vpop.f32.mrb[14].mxu0  ;;  %v16583_v30 = vld [vmem:[#allocation2 + $0x11] sm:$0xff] }
 0x320   : > { %18973 = vst [vmem:[#allocation20_spill] sm:$0xff] %v16583_v30  ;;  %v4896_v36 = vadd.f32 1.0, %v14903_v23  ;;  %14912 = verf.f32 %v4839_v61  ;;  %4996 = vst.msk [vmem:[#allocation2 + $0x31] sm:$0xff] %vm4991_vm0, %v4926_v58  ;;  %v16588_v32 = vadd.f32 %v13421_v63, %v16535_v34  ;;  %v4634_v18 = vpop.f32.mrb[15].mxu0  ;;  %13451 = vmatprep.mubr.msk.f32.mxu0 %vm4991_vm0, %v16583_v30  ;;  %v16596_v53 = vld [vmem:[#allocation2 + $0xa] sm:$0xff]  ;;  %v16607_v14 = vld [vmem:[#allocation2 + $0x12] sm:$0xff] }
 0x321   : > { %18974 = vst [vmem:[#allocation21_spill] sm:$0xff] %v16592_v37  ;;  %v4929_v49 = vmul.f32 %v4897_v45, %v4801_v51  ;;  %14914 = verf.f32 %v4838_v35  ;;  %v16599_v28 = vadd.f32 %v16535_v34, %v4634_v18  ;;  %13452 = vmatmul.mubr.msk.f32.gmra.mrb[34].mxu0 %vm4991_vm0, %v16592_v37  ;;  %v16603_v0 = vld [vmem:[#allocation2 + $0x10] sm:$0xff]  ;;  %8795 = vst.msk [vmem:[#allocation2 + $0x8] sm:$0xff] %vm444_vm1, %v18791_v26  ;;  %v4803_v58 = vmul.f32 0.5, %v16549_v12  ;;  %v16626_v18 = vld [vmem:[#allocation2 + $0x18] sm:$0xff] }
 0x322   : > { %v14905_v11 = vpop.eup %14904  ;;  %v4928_v5 = vmul.f32 %v4896_v36, %v4800_v43  ;;  %v4841_v60 = vmul.f32 0.70710677, %v16588_v32  ;;  %8796 = vst.msk [vmem:[#allocation2 + $0x10] sm:$0xff] %vm444_vm1, %v18791_v26  ;;  %v4802_v35 = vmul.f32 0.5, %v16552_v22  ;;  %v16624_v12 = vld [vmem:[#allocation2 + $0x29] sm:$0xff] }
 0x323   : > { %v14907_v31 = vpop.eup %14906  ;;  %v4899_v61 = vadd.f32 1.0, %v14905_v11  ;;  %4999 = vst.msk [vmem:[#allocation2 + $0x49] sm:$0xff] %vm4991_vm0, %v4929_v49  ;;  %v4840_v23 = vmul.f32 0.70710677, %v16599_v28  ;;  %v13424_v51 = vpop.f32.mrb[16].mxu0  ;;  %v16615_v45 = vld [vmem:[#allocation2 + $0x21] sm:$0xff] }
 0x324   : > { %18975 = vst [vmem:[#allocation22_spill] sm:$0xff] %v16615_v45  ;;  %v4898_v63 = vadd.f32 1.0, %v14907_v31  ;;  %4998 = vst.msk [vmem:[#allocation2 + $0x41] sm:$0xff] %vm4991_vm0, %v4928_v5  ;;  %14916 = verf.f32 %v4841_v60  ;;  %v16620_v43 = vadd.f32 %v13424_v51, %v16535_v34  ;;  %v4644_v36 = vpop.f32.mrb[17].mxu0  ;;  %13454 = vmatprep.mubr.msk.f32.mxu0 %vm4991_vm0, %v16615_v45  ;;  %v16628_v49 = vld [vmem:[#allocation2 + $0x1a] sm:$0xff]  ;;  %v16637_v60 = vld [vmem:[#allocation2 + $0x22] sm:$0xff] }
 0x325   : > { %18976 = vst [vmem:[#allocation23_spill] sm:$0xff] %v16624_v12  ;;  %18977 = vst [vmem:[#allocation24_spill] sm:$0xff] %v16628_v49  ;;  %v4931_v11 = vmul.f32 %v4899_v61, %v4803_v58  ;;  %14918 = verf.f32 %v4840_v23  ;;  %v16631_v22 = vadd.f32 %v16535_v34, %v4644_v36  ;;  %13455 = vmatmul.mubr.msk.f32.gmra.mrb[36].mxu0 %vm4991_vm0, %v16624_v12  ;;  %v16635_v5 = vld [vmem:[#allocation2 + $0x20] sm:$0xff]  ;;  %v4805_v58 = vmul.f32 0.5, %v16558_v19  ;;  %v16651_v15 = vld [vmem:[#allocation2 + $0x29] sm:$0xff] }
 0x326   : > { %18978 = vst [vmem:[#allocation25_spill] sm:$0xff] %v16637_v60  ;;  %8797 = vst.msk [vmem:[#allocation2 + $0x18] sm:$0xff] %vm444_vm1, %v18791_v26  ;;  %v16641_v31 = vld [vmem:[#allocation2 + $0x21] sm:$0xff]  ;;  %v14909_v51 = vpop.eup %14908  ;;  %v4930_v45 = vmul.f32 %v4898_v63, %v4802_v35  ;;  %v4843_v61 = vmul.f32 0.70710677, %v16620_v43  ;;  %v4804_v35 = vmul.f32 0.5, %v16562_v44 }
 0x327   : > { %18979 = vst [vmem:[#allocation26_spill] sm:$0xff] %v16641_v31  ;;  %8798 = vst.msk [vmem:[#allocation2 + $0x20] sm:$0xff] %vm444_vm1, %v18791_v26  ;;  %v14911_v23 = vpop.eup %14910  ;;  %v4901_v36 = vadd.f32 1.0, %v14909_v51  ;;  %v4842_v12 = vmul.f32 0.70710677, %v16631_v22  ;;  %v13427_v37 = vpop.f32.mrb[18].mxu0 }
 0x328   : > { %5001 = vst.msk [vmem:[#allocation2 + $0x59] sm:$0xff] %vm4991_vm0, %v4931_v11  ;;  %v16649_v30 = vld [vmem:[#allocation2 + $0x31] sm:$0xff]  ;;  %18981 = vst [vmem:[#allocation29_spill] sm:$0xff] %v16651_v15  ;;  %v4900_v63 = vadd.f32 1.0, %v14911_v23  ;;  %14920 = verf.f32 %v4843_v61  ;;  %v16656_v19 = vadd.f32 %v13427_v37, %v16535_v34  ;;  %v4654_v31 = vpop.f32.mrb[19].mxu0  ;;  %v16660_v11 = vld [vmem:[#allocation2 + $0x39] sm:$0xff] }
 0x329   : > { %18980 = vst [vmem:[#allocation27_spill] sm:$0xff] %v16649_v30  ;;  %5000 = vst.msk [vmem:[#allocation2 + $0x51] sm:$0xff] %vm4991_vm0, %v4930_v45  ;;  %13457 = vmatprep.mubr.msk.f32.mxu0 %vm4991_vm0, %v16649_v30  ;;  %v16662_v51 = vld [vmem:[#allocation2 + $0x28] sm:$0xff]  ;;  %v4933_v15 = vmul.f32 %v4901_v36, %v4805_v58  ;;  %14922 = verf.f32 %v4842_v12  ;;  %v16667_v44 = vadd.f32 %v16535_v34, %v4654_v31  ;;  %v16671_v37 = vld [vmem:[#allocation2 + $0x30] sm:$0xff]  ;;  %v4807_v58 = vmul.f32 0.5, %v16574_v4 }
 0x32a   : > { %18982 = vst [vmem:[#allocation30_spill] sm:$0xff] %v16660_v11  ;;  %v16664_v38 = vld [vmem:[#allocation2 + $0x2a] sm:$0xff]  ;;  %13458 = vmatmul.mubr.msk.f32.gmra.mrb[38].mxu0 %vm4991_vm0, %v16660_v11  ;;  %v16673_v45 = vld [vmem:[#allocation2 + $0x32] sm:$0xff]  ;;  %v14913_v23 = vpop.eup %14912  ;;  %v4932_v30 = vmul.f32 %v4900_v63, %v4804_v35  ;;  %v4845_v12 = vmul.f32 0.70710677, %v16656_v19  ;;  %v4806_v35 = vmul.f32 0.5, %v16578_v33 }
 0x32b   : > { %18983 = vst [vmem:[#allocation32_spill] sm:$0xff] %v16664_v38  ;;  %18984 = vst [vmem:[#allocation33_spill] sm:$0xff] %v16673_v45  ;;  %v16675_v61 = vld [vmem:[#allocation2 + $0x31] sm:$0xff]  ;;  %v14915_v31 = vpop.eup %14914  ;;  %v4903_v36 = vadd.f32 1.0, %v14913_v23  ;;  %v4844_v11 = vmul.f32 0.70710677, %v16667_v44 }
 0x32c   : > { %18985 = vst [vmem:[#allocation35_spill] sm:$0xff] %v16675_v61  ;;  %8799 = vst.msk [vmem:[#allocation2 + $0x28] sm:$0xff] %vm444_vm1, %v18791_v26  ;;  %v13430_v29 = vpop.f32.mrb[20].mxu0  ;;  %v16685_v61 = vld [vmem:[#allocation2 + $0x41] sm:$0xff]  ;;  %v16687_v10 = vld [vmem:[#allocation2 + $0x39] sm:$0xff]  ;;  %v4902_v63 = vadd.f32 1.0, %v14915_v31  ;;  %14924 = verf.f32 %v4845_v12 }
 0x32d   : > { %8800 = vst.msk [vmem:[#allocation2 + $0x30] sm:$0xff] %vm444_vm1, %v18791_v26  ;;  %18986 = vst [vmem:[#allocation36_spill] sm:$0xff] %v16685_v61  ;;  %v16692_v4 = vadd.f32 %v13430_v29, %v16535_v34  ;;  %v4664_v25 = vpop.f32.mrb[21].mxu0  ;;  %13460 = vmatprep.mubr.msk.f32.mxu0 %vm4991_vm0, %v16685_v61  ;;  %v16698_v23 = vld [vmem:[#allocation2 + $0x38] sm:$0xff]  ;;  %14926 = verf.f32 %v4844_v11  ;;  %v16707_v29 = vld [vmem:[#allocation2 + $0x40] sm:$0xff] }
 0x32e   : > { %5003 = vst.msk [vmem:[#allocation2 + $0x69] sm:$0xff] %vm4991_vm0, %v4933_v15  ;;  %18987 = vst [vmem:[#allocation39_spill] sm:$0xff] %v16687_v10  ;;  %v16696_v15 = vld [vmem:[#allocation2 + $0x49] sm:$0xff]  ;;  %v16700_v57 = vld [vmem:[#allocation2 + $0x3a] sm:$0xff]  ;;  %v4935_v10 = vmul.f32 %v4903_v36, %v4807_v58  ;;  %v16703_v33 = vadd.f32 %v16535_v34, %v4664_v25  ;;  %v14917_v31 = vpop.eup %14916  ;;  %v4934_v61 = vmul.f32 %v4902_v63, %v4806_v35  ;;  %v4809_v58 = vmul.f32 0.5, %v16588_v32 }
 0x32f   : > { %5002 = vst.msk [vmem:[#allocation2 + $0x61] sm:$0xff] %vm4991_vm0, %v4932_v30  ;;  %18988 = vst [vmem:[#allocation19_spill] sm:$0xff] %v16696_v15  ;;  %13461 = vmatmul.mubr.msk.f32.gmra.mrb[40].mxu0 %vm4991_vm0, %v16696_v15  ;;  %v16709_v30 = vld [vmem:[#allocation2 + $0x42] sm:$0xff]  ;;  %v4847_v11 = vmul.f32 0.70710677, %v16692_v4  ;;  %v14919_v25 = vpop.eup %14918  ;;  %v4905_v36 = vadd.f32 1.0, %v14917_v31 }
 0x330   : > { %18989 = vst [vmem:[#allocation18_spill] sm:$0xff] %v16700_v57  ;;  %18990 = vst [vmem:[#allocation53_spill] sm:$0xff] %v16709_v30  ;;  %v16711_v12 = vld [vmem:[#allocation2 + $0x41] sm:$0xff]  ;;  %v4846_v15 = vmul.f32 0.70710677, %v16703_v33  ;;  %v13433_v7 = vpop.f32.mrb[22].mxu0 }
 0x331   : > { %18991 = vst [vmem:[#allocation54_spill] sm:$0xff] %v16711_v12  ;;  %8801 = vst.msk [vmem:[#allocation2 + $0x38] sm:$0xff] %vm444_vm1, %v18791_v26  ;;  %v16721_v12 = vld [vmem:[#allocation2 + $0x51] sm:$0xff]  ;;  %v16723_v50 = vld [vmem:[#allocation2 + $0x49] sm:$0xff]  ;;  %v4808_v32 = vmul.f32 0.5, %v16599_v28  ;;  %v4904_v35 = vadd.f32 1.0, %v14919_v25  ;;  %14928 = verf.f32 %v4847_v11  ;;  %v16728_v63 = vadd.f32 %v13433_v7, %v16535_v34 }
 0x332   : > { %8802 = vst.msk [vmem:[#allocation2 + $0x40] sm:$0xff] %vm444_vm1, %v18791_v26  ;;  %18992 = vst [vmem:[#allocation56_spill] sm:$0xff] %v16721_v12  ;;  %v4674_v9 = vpop.f32.mrb[23].mxu0  ;;  %13463 = vmatprep.mubr.msk.f32.mxu0 %vm4991_vm0, %v16721_v12  ;;  %v16734_v31 = vld [vmem:[#allocation2 + $0x48] sm:$0xff]  ;;  %14930 = verf.f32 %v4846_v15  ;;  %v16743_v7 = vld [vmem:[#allocation2 + $0x50] sm:$0xff]  ;;  %v14921_v25 = vpop.eup %14920 }
 0x333   : > { %5005 = vst.msk [vmem:[#allocation2 + $0x79] sm:$0xff] %vm4991_vm0, %v4935_v10  ;;  %18993 = vst [vmem:[#allocation57_spill] sm:$0xff] %v16723_v50  ;;  %v16732_v10 = vld [vmem:[#allocation2 + $0x59] sm:$0xff]  ;;  %v16736_v54 = vld [vmem:[#allocation2 + $0x4a] sm:$0xff]  ;;  %v4937_v50 = vmul.f32 %v4905_v36, %v4809_v58  ;;  %v4936_v12 = vmul.f32 %v4904_v35, %v4808_v32  ;;  %v4811_v58 = vmul.f32 0.5, %v16620_v43  ;;  %v4907_v36 = vadd.f32 1.0, %v14921_v25 }
 0x334   : > { %5004 = vst.msk [vmem:[#allocation2 + $0x71] sm:$0xff] %vm4991_vm0, %v4934_v61  ;;  %18994 = vst [vmem:[#allocation60_spill] sm:$0xff] %v16732_v10  ;;  %v16739_v61 = vadd.f32 %v16535_v34, %v4674_v9  ;;  %13464 = vmatmul.mubr.msk.f32.gmra.mrb[42].mxu0 %vm4991_vm0, %v16732_v10  ;;  %v16745_v28 = vld [vmem:[#allocation2 + $0x52] sm:$0xff]  ;;  %v4849_v15 = vmul.f32 0.70710677, %v16728_v63  ;;  %v14923_v9 = vpop.eup %14922  ;;  %v13436_v3 = vpop.f32.mrb[24].mxu0 }
 0x335   : > { %18995 = vst [vmem:[#allocation46_spill] sm:$0xff] %v16736_v54  ;;  %18996 = vst [vmem:[#allocation92_spill] sm:$0xff] %v16745_v28  ;;  %v16747_v11 = vld [vmem:[#allocation2 + $0x51] sm:$0xff]  ;;  %v16759_v28 = vld [vmem:[#allocation2 + $0x59] sm:$0xff]  ;;  %v4810_v43 = vmul.f32 0.5, %v16631_v22  ;;  %v4906_v32 = vadd.f32 1.0, %v14923_v9  ;;  %v16764_v35 = vadd.f32 %v13436_v3, %v16535_v34 }
 0x336   : > { %18997 = vst [vmem:[#allocation42_spill] sm:$0xff] %v16747_v11  ;;  %8803 = vst.msk [vmem:[#allocation2 + $0x48] sm:$0xff] %vm444_vm1, %v18791_v26  ;;  %v4848_v10 = vmul.f32 0.70710677, %v16739_v61  ;;  %v16757_v11 = vld [vmem:[#allocation2 + $0x61] sm:$0xff]  ;;  %14932 = verf.f32 %v4849_v15  ;;  %v4684_v41 = vpop.f32.mrb[25].mxu0  ;;  %v14925_v9 = vpop.eup %14924 }
 0x337   : > { %8804 = vst.msk [vmem:[#allocation2 + $0x50] sm:$0xff] %vm444_vm1, %v18791_v26  ;;  %18998 = vst [vmem:[#allocation48_spill] sm:$0xff] %v16757_v11  ;;  %13466 = vmatprep.mubr.msk.f32.mxu0 %vm4991_vm0, %v16757_v11  ;;  %v16770_v25 = vld [vmem:[#allocation2 + $0x58] sm:$0xff]  ;;  %v16779_v3 = vld [vmem:[#allocation2 + $0x60] sm:$0xff]  ;;  %v4938_v11 = vmul.f32 %v4906_v32, %v4810_v43 }
 0x338   : > { %5007 = vst.msk [vmem:[#allocation2 + $0x89] sm:$0xff] %vm4991_vm0, %v4937_v50  ;;  %18999 = vst [vmem:[#allocation93_spill] sm:$0xff] %v16759_v28  ;;  %v16768_v50 = vld [vmem:[#allocation2 + $0x69] sm:$0xff]  ;;  %v16772_v54 = vld [vmem:[#allocation2 + $0x5a] sm:$0xff]  ;;  %v4939_v28 = vmul.f32 %v4907_v36, %v4811_v58  ;;  %14934 = verf.f32 %v4848_v10  ;;  %v4813_v58 = vmul.f32 0.5, %v16656_v19  ;;  %v4909_v36 = vadd.f32 1.0, %v14925_v9 }
 0x339   : > { %5006 = vst.msk [vmem:[#allocation2 + $0x81] sm:$0xff] %vm4991_vm0, %v4936_v12  ;;  %19000 = vst [vmem:[#allocation6_spill] sm:$0xff] %v16768_v50  ;;  %v16775_v12 = vadd.f32 %v16535_v34, %v4684_v41  ;;  %13467 = vmatmul.mubr.msk.f32.gmra.mrb[44].mxu0 %vm4991_vm0, %v16768_v50  ;;  %v16781_v22 = vld [vmem:[#allocation2 + $0x62] sm:$0xff]  ;;  %v4851_v10 = vmul.f32 0.70710677, %v16764_v35  ;;  %v14927_v41 = vpop.eup %14926  ;;  %v13439_v50 = vpop.f32.mrb[26].mxu0 }
 0x33a   : > { %19001 = vst [vmem:[#allocation7_spill] sm:$0xff] %v16772_v54  ;;  %19002 = vst [vmem:[#allocation8_spill] sm:$0xff] %v16781_v22  ;;  %v16783_v15 = vld [vmem:[#allocation2 + $0x61] sm:$0xff]  ;;  %v16797_v43 = vld [vmem:[#allocation2 + $0x69] sm:$0xff]  ;;  %v4812_v19 = vmul.f32 0.5, %v16667_v44  ;;  %v4908_v32 = vadd.f32 1.0, %v14927_v41  ;;  %v16804_v54 = vadd.f32 %v13439_v50, %v16535_v34  ;;  %v4941_v1 = vmul.f32 %v4909_v36, %v4813_v58 }
 0x33b   : > { %19003 = vst [vmem:[#allocation9_spill] sm:$0xff] %v16783_v15  ;;  %8805 = vst.msk [vmem:[#allocation2 + $0x58] sm:$0xff] %vm444_vm1, %v18791_v26  ;;  %v4850_v15 = vmul.f32 0.70710677, %v16775_v12  ;;  %v16795_v22 = vld [vmem:[#allocation2 + $0x71] sm:$0xff]  ;;  %14936 = verf.f32 %v4851_v10  ;;  %v16808_v9 = vld [vmem:[#allocation2 + $0x79] sm:$0xff]  ;;  %v14929_v41 = vpop.eup %14928 }
 0x33c   : > { %10450 = vst.msk [vmem:[#allocation2 + $0x58] sm:$0xff] %vm444_vm1, %v18791_v26  ;;  %8806 = vst.msk [vmem:[#allocation2 + $0x60] sm:$0xff] %vm444_vm1, %v18791_v26  ;;  %13469 = vmatprep.mubr.msk.f32.mxu0 %vm4991_vm0, %v16795_v22  ;;  %v16810_v30 = vld [vmem:[#allocation2 + $0x68] sm:$0xff]  ;;  %v16819_v44 = vld [vmem:[#allocation2 + $0x70] sm:$0xff]  ;;  %v4815_v58 = vmul.f32 0.5, %v16692_v4 }
 0x33d   : > { %5009 = vst.msk [vmem:[#allocation2 + $0x99] sm:$0xff] %vm4991_vm0, %v4939_v28  ;;  %19004 = vst [vmem:[#allocation10_spill] sm:$0xff] %v16795_v22  ;;  %v4694_v28 = vpop.f32.mrb[27].mxu0  ;;  %14938 = verf.f32 %v4850_v15  ;;  %13470 = vmatmul.mubr.msk.f32.gmra.mrb[46].mxu0 %vm4991_vm0, %v16808_v9  ;;  %v16821_v50 = vld [vmem:[#allocation2 + $0x72] sm:$0xff]  ;;  %v4940_v22 = vmul.f32 %v4908_v32, %v4812_v19  ;;  %v4853_v15 = vmul.f32 0.70710677, %v16804_v54 }
 0x33e   : > { %19005 = vst [vmem:[#allocation11_spill] sm:$0xff] %v16797_v43  ;;  %10451 = vst.msk [vmem:[#allocation2 + $0x60] sm:$0xff] %vm444_vm1, %v18791_v26  ;;  %v16812_v43 = vld [vmem:[#allocation2 + $0x6a] sm:$0xff]  ;;  %v13442_v4 = vpop.f32.mrb[28].mxu0  ;;  %v16855_v45 = vld [vmem:[#allocation2 + $0x78] sm:$0xff] }
 0x33f   : > { %5008 = vst.msk [vmem:[#allocation2 + $0x91] sm:$0xff] %vm4991_vm0, %v4938_v11  ;;  %19006 = vst [vmem:[#allocation12_spill] sm:$0xff] %v16808_v9  ;;  %v16815_v11 = vadd.f32 %v16535_v34, %v4694_v28  ;;  %v16823_v10 = vld [vmem:[#allocation2 + $0x71] sm:$0xff]  ;;  %v14931_v28 = vpop.eup %14930  ;;  %v16842_v9 = vld [vmem:[#allocation2 + $0x79] sm:$0xff]  ;;  %14940 = verf.f32 %v4853_v15  ;;  %v16849_v57 = vadd.f32 %v13442_v4, %v16535_v34 }
 0x340   : > { %19007 = vst [vmem:[#allocation13_spill] sm:$0xff] %v16812_v43  ;;  %19008 = vst [vmem:[#allocation14_spill] sm:$0xff] %v16821_v50  ;;  %v16832_v36 = vld [vmem:[%s18529_s3 + $0x10] sm:$0xff]  ;;  %v16840_v32 = vld [vmem:[#allocation2 + $0x81] sm:$0xff]  ;;  %v4814_v50 = vmul.f32 0.5, %v16703_v33  ;;  %v4910_v43 = vadd.f32 1.0, %v14931_v28  ;;  %v14933_v4 = vpop.eup %14932 }
 0x341   : > { %19009 = vst [vmem:[#allocation15_spill] sm:$0xff] %v16823_v10  ;;  %8807 = vst.msk [vmem:[#allocation2 + $0x68] sm:$0xff] %vm444_vm1, %v18791_v26  ;;  %v4911_v10 = vadd.f32 1.0, %v14929_v41  ;;  %v4852_v19 = vmul.f32 0.70710677, %v16815_v11  ;;  %13472 = vmatprep.mubr.msk.f32.mxu1 %vm4991_vm0, %v16840_v32  ;;  %v16853_v41 = vld [vmem:[#allocation2 + $0x89] sm:$0xff] }
 0x342   : > { %10452 = vst.msk [vmem:[#allocation2 + $0x68] sm:$0xff] %vm444_vm1, %v18791_v26  ;;  %8808 = vst.msk [vmem:[#allocation2 + $0x70] sm:$0xff] %vm444_vm1, %v18791_v26  ;;  %13473 = vmatmul.mubr.msk.f32.vlgmr.msra.gmra.mrb[0].mxu1 %vm4991_vm0, %v16853_v41  ;;  %v16864_v33 = vld [vmem:[#allocation2 + $0x80] sm:$0xff] }
 0x343   : > { %5011 = vst.msk [vmem:[#allocation2 + $0xa9] sm:$0xff] %vm4991_vm0, %v4941_v1  ;;  %19010 = vst [vmem:[#allocation16_spill] sm:$0xff] %v16840_v32  ;;  %v4704_v1 = vpop.f32.mrb[29].mxu0  ;;  %v4943_v59 = vmul.f32 %v4911_v10, %v4815_v58  ;;  %14942 = verf.f32 %v4852_v19  ;;  %v16866_v15 = vld [vmem:[#allocation2 + $0x82] sm:$0xff]  ;;  %v4942_v32 = vmul.f32 %v4910_v43, %v4814_v50  ;;  %v4817_v10 = vmul.f32 0.5, %v16728_v63  ;;  %13497 = vmatpush3.msra.mxu1 %v16529_v6  ;;  %v14935_v19 = vpop.eup %14934 }
 0x344   : > { %19011 = vst [vmem:[#allocation17_spill] sm:$0xff] %v16842_v9  ;;  %10453 = vst.msk [vmem:[#allocation2 + $0x70] sm:$0xff] %vm444_vm1, %v18791_v26  ;;  %v16857_v9 = vld [vmem:[#allocation2 + $0x7a] sm:$0xff]  ;;  %v4855_v58 = vmul.f32 0.70710677, %v16849_v57  ;;  %13546 = vmatprep.subr.mxu1 %v16832_v36  ;;  %v16884_v63 = vld [vmem:[#allocation2 + $0x89] sm:$0xff] }
 0x345   : > { %5010 = vst.msk [vmem:[#allocation2 + $0xa1] sm:$0xff] %vm4991_vm0, %v4940_v22  ;;  %19012 = vst [vmem:[#allocation94_spill] sm:$0xff] %v16853_v41  ;;  %v16860_v22 = vadd.f32 %v16535_v34, %v4704_v1  ;;  %v16868_v28 = vld [vmem:[#allocation2 + $0x81] sm:$0xff]  ;;  %v4913_v1 = vadd.f32 1.0, %v14933_v4  ;;  %v13445_v41 = vpop.f32.mrb[30].mxu0  ;;  %v4816_v6 = vmul.f32 0.5, %v16739_v61 }
 0x346   : > { %19013 = vst [vmem:[#allocation95_spill] sm:$0xff] %v16857_v9  ;;  %19014 = vst [vmem:[#allocation59_spill] sm:$0xff] %v16866_v15  ;;  %v16881_v43 = vld [vmem:[#allocation2 + $0x91] sm:$0xff]  ;;  %v4912_v50 = vadd.f32 1.0, %v14935_v19  ;;  %14944 = verf.f32 %v4855_v58  ;;  %v4714_v4 = vpop.f32.mrb[31].mxu0  ;;  %v16895_v15 = vld [vmem:[#allocation2 + $0x99] sm:$0xff]  ;;  %v14937_v19 = vpop.eup %14936 }
 0x347   : > { %19015 = vst [vmem:[#allocation62_spill] sm:$0xff] %v16868_v28  ;;  %8809 = vst.msk [vmem:[#allocation2 + $0x78] sm:$0xff] %vm444_vm1, %v18791_v26  ;;  %v4854_v28 = vmul.f32 0.70710677, %v16860_v22  ;;  %13475 = vmatprep.mubr.msk.f32.mxu1 %vm4991_vm0, %v16881_v43  ;;  %v16897_v9 = vld [vmem:[#allocation2 + $0x88] sm:$0xff]  ;;  %v4945_v38 = vmul.f32 %v4913_v1, %v4817_v10  ;;  %v16906_v61 = vld [vmem:[#allocation2 + $0x90] sm:$0xff] }
 0x348   : > { %10454 = vst.msk [vmem:[#allocation2 + $0x78] sm:$0xff] %vm444_vm1, %v18791_v26  ;;  %8810 = vst.msk [vmem:[#allocation2 + $0x80] sm:$0xff] %vm444_vm1, %v18791_v26  ;;  %13476 = vmatmul.mubr.msk.f32.gmra.mrb[2].mxu1 %vm4991_vm0, %v16895_v15  ;;  %v16910_v58 = vld [vmem:[#allocation2 + $0x91] sm:$0xff]  ;;  %v4915_v1 = vadd.f32 1.0, %v14937_v19 }
 0x349   : > { %5013 = vst.msk [vmem:[#allocation2 + $0xb9] sm:$0xff] %vm4991_vm0, %v4943_v59  ;;  %19016 = vst [vmem:[#allocation63_spill] sm:$0xff] %v16881_v43  ;;  %v16891_v59 = vadd.f32 %v13445_v41, %v16535_v34  ;;  %14946 = verf.f32 %v4854_v28  ;;  %v16908_v41 = vld [vmem:[#allocation2 + $0x92] sm:$0xff]  ;;  %v4944_v43 = vmul.f32 %v4912_v50, %v4816_v6  ;;  %v4819_v28 = vmul.f32 0.5, %v16764_v35 }
 0x34a   : > { %19017 = vst [vmem:[#allocation65_spill] sm:$0xff] %v16884_v63  ;;  %10455 = vst.msk [vmem:[#allocation2 + $0x80] sm:$0xff] %vm444_vm1, %v18791_v26  ;;  %v16899_v63 = vld [vmem:[#allocation2 + $0x8a] sm:$0xff]  ;;  %v4818_v6 = vmul.f32 0.5, %v16775_v12  ;;  %v16934_v35 = vld [vmem:[#allocation2 + $0x98] sm:$0xff] }
 0x34b   : > { %5012 = vst.msk [vmem:[#allocation2 + $0xb1] sm:$0xff] %vm4991_vm0, %v4942_v32  ;;  %19018 = vst [vmem:[#allocation66_spill] sm:$0xff] %v16895_v15  ;;  %v16902_v32 = vadd.f32 %v16535_v34, %v4714_v4  ;;  %v4857_v10 = vmul.f32 0.70710677, %v16891_v59  ;;  %v14939_v34 = vpop.eup %14938  ;;  %v16924_v15 = vld [vmem:[#allocation2 + $0x99] sm:$0xff] }
 0x34c   : > { %19019 = vst [vmem:[#allocation68_spill] sm:$0xff] %v16899_v63  ;;  %19020 = vst [vmem:[#allocation69_spill] sm:$0xff] %v16908_v41  ;;  %v4914_v50 = vadd.f32 1.0, %v14939_v34  ;;  %v16936_v19 = vld [vmem:[#allocation2 + $0x9a] sm:$0xff]  ;;  %v4947_v41 = vmul.f32 %v4915_v1, %v4819_v28  ;;  %v16950_v63 = vld [vmem:[#allocation2 + $0xa9] sm:$0xff]  ;;  %v4821_v1 = vmul.f32 0.5, %v16804_v54 }
 0x34d   : > { %19021 = vst [vmem:[#allocation71_spill] sm:$0xff] %v16910_v58  ;;  %8811 = vst.msk [vmem:[#allocation2 + $0x88] sm:$0xff] %vm444_vm1, %v18791_v26  ;;  %v4856_v4 = vmul.f32 0.70710677, %v16902_v32  ;;  %v16922_v58 = vld [vmem:[#allocation2 + $0xa1] sm:$0xff]  ;;  %14948 = verf.f32 %v4857_v10  ;;  %v14941_v10 = vpop.eup %14940 }
 0x34e   : > { %10456 = vst.msk [vmem:[#allocation2 + $0x88] sm:$0xff] %vm444_vm1, %v18791_v26  ;;  %8812 = vst.msk [vmem:[#allocation2 + $0x90] sm:$0xff] %vm444_vm1, %v18791_v26  ;;  %13478 = vmatprep.mubr.msk.f32.mxu1 %vm4991_vm0, %v16922_v58  ;;  %v16944_v12 = vld [vmem:[#allocation2 + $0xa1] sm:$0xff]  ;;  %v4946_v34 = vmul.f32 %v4914_v50, %v4818_v6  ;;  %v14943_v28 = vpop.eup %14942  ;;  %v4820_v50 = vmul.f32 0.5, %v16815_v11 }
 0x34f   : > { %5015 = vst.msk [vmem:[#allocation2 + $0xc9] sm:$0xff] %vm4991_vm0, %v4945_v38  ;;  %19022 = vst [vmem:[#allocation72_spill] sm:$0xff] %v16922_v58  ;;  %v16932_v38 = vld [vmem:[#allocation2 + $0xa9] sm:$0xff]  ;;  %14950 = verf.f32 %v4856_v4  ;;  %v4917_v4 = vadd.f32 1.0, %v14941_v10 }
 0x350   : > { %19023 = vst [vmem:[#allocation74_spill] sm:$0xff] %v16924_v15  ;;  %10457 = vst.msk [vmem:[#allocation2 + $0x90] sm:$0xff] %vm444_vm1, %v18791_v26  ;;  %13479 = vmatmul.mubr.msk.f32.gmra.mrb[4].mxu1 %vm4991_vm0, %v16932_v38  ;;  %v16940_v15 = vld [vmem:[#allocation2 + $0xa0] sm:$0xff]  ;;  %v16948_v58 = vld [vmem:[#allocation2 + $0xa8] sm:$0xff]  ;;  %v14945_v11 = vpop.eup %14944 }
 0x351   : > { %5014 = vst.msk [vmem:[#allocation2 + $0xc1] sm:$0xff] %vm4991_vm0, %v4944_v43  ;;  %19024 = vst [vmem:[#allocation75_spill] sm:$0xff] %v16932_v38  ;;  %v16942_v43 = vld [vmem:[#allocation2 + $0xa2] sm:$0xff]  ;;  %v16960_v38 = vld [vmem:[#allocation2 + $0xb9] sm:$0xff] }
 0x352   : > { %19025 = vst [vmem:[#allocation77_spill] sm:$0xff] %v16936_v19  ;;  %19026 = vst [vmem:[#allocation78_spill] sm:$0xff] %v16942_v43  ;;  %v16962_v6 = vld [vmem:[#allocation2 + $0xb0] sm:$0xff]  ;;  %v4949_v43 = vmul.f32 %v4917_v4, %v4821_v1  ;;  %v4823_v4 = vmul.f32 0.5, %v16849_v57 }
 0x353   : > { %19027 = vst [vmem:[#allocation80_spill] sm:$0xff] %v16944_v12  ;;  %8813 = vst.msk [vmem:[#allocation2 + $0x98] sm:$0xff] %vm444_vm1, %v18791_v26  ;;  %v16958_v12 = vld [vmem:[#allocation2 + $0xb1] sm:$0xff]  ;;  %v14947_v1 = vpop.eup %14946 }
 0x354   : > { %19028 = vst [vmem:[#allocation81_spill] sm:$0xff] %v16950_v63  ;;  %10458 = vst.msk [vmem:[#allocation2 + $0x98] sm:$0xff] %vm444_vm1, %v18791_v26  ;;  %v4916_v63 = vadd.f32 1.0, %v14943_v28  ;;  %13481 = vmatprep.mubr.msk.f32.mxu1 %vm4991_vm0, %v16958_v12  ;;  %v16972_v54 = vld [vmem:[#allocation2 + $0xb2] sm:$0xff] }
 0x355   : > { %8814 = vst.msk [vmem:[#allocation2 + $0xa0] sm:$0xff] %vm444_vm1, %v18791_v26  ;;  %19029 = vst [vmem:[#allocation83_spill] sm:$0xff] %v16958_v12  ;;  %v16974_v10 = vld [vmem:[#allocation2 + $0xb1] sm:$0xff]  ;;  %13482 = vmatmul.mubr.msk.f32.gmra.mrb[6].mxu1 %vm4991_vm0, %v16960_v38  ;;  %v16984_v12 = vld [vmem:[#allocation2 + $0xb9] sm:$0xff] }
 0x356   : > { %5017 = vst.msk [vmem:[#allocation2 + $0xd9] sm:$0xff] %vm4991_vm0, %v4947_v41  ;;  %19030 = vst [vmem:[#allocation84_spill] sm:$0xff] %v16960_v38  ;;  %v16970_v41 = vld [vmem:[#allocation2 + $0xaa] sm:$0xff]  ;;  %v16982_v28 = vld [vmem:[#allocation2 + $0xb8] sm:$0xff] }
 0x357   : > { %10459 = vst.msk [vmem:[#allocation2 + $0xa0] sm:$0xff] %vm444_vm1, %v18791_v26  ;;  %19031 = vst [vmem:[#allocation87_spill] sm:$0xff] %v16970_v41 }
 0x358   : > { %5016 = vst.msk [vmem:[#allocation2 + $0xd1] sm:$0xff] %vm4991_vm0, %v4946_v34  ;;  %19032 = vst [vmem:[#allocation88_spill] sm:$0xff] %v16972_v54  ;;  %v4948_v34 = vmul.f32 %v4916_v63, %v4820_v50  ;;  %v16992_v38 = vld [vmem:[#allocation2 + $0xc1] sm:$0xff]  ;;  %v16994_v54 = vld [vmem:[#allocation2 + $0xc9] sm:$0xff]  ;;  %v4822_v50 = vmul.f32 0.5, %v16860_v22  ;;  %v14949_v22 = vpop.eup %14948 }
 0x359   : > { %19033 = vst [vmem:[#allocation90_spill] sm:$0xff] %v16974_v10  ;;  %8815 = vst.msk [vmem:[#allocation2 + $0xa8] sm:$0xff] %vm444_vm1, %v18791_v26  ;;  %v4919_v10 = vadd.f32 1.0, %v14945_v11  ;;  %v16996_v63 = vld [vmem:[#allocation2 + $0xc0] sm:$0xff]  ;;  %13484 = vmatprep.mubr.msk.f32.mxu1 %vm4991_vm0, %v16992_v38 }
 0x35a   : > { %8816 = vst.msk [vmem:[#allocation2 + $0xb0] sm:$0xff] %vm444_vm1, %v18791_v26  ;;  %19034 = vst [vmem:[#allocation91_spill] sm:$0xff] %v16984_v12  ;;  %v4918_v12 = vadd.f32 1.0, %v14947_v1  ;;  %v17002_v41 = vld [vmem:[#allocation2 + $0xba] sm:$0xff]  ;;  %13485 = vmatmul.mubr.msk.f32.gmra.mrb[8].mxu1 %vm4991_vm0, %v16994_v54  ;;  %v17014_v1 = vld [vmem:[#allocation2 + $0xc8] sm:$0xff] }
 0x35b   : > { %10460 = vst.msk [vmem:[#allocation2 + $0xa8] sm:$0xff] %vm444_vm1, %v18791_v26  ;;  %10461 = vst.msk [vmem:[#allocation2 + $0xb0] sm:$0xff] %vm444_vm1, %v18791_v26  ;;  %v17006_v57 = vld [vmem:[#allocation2 + $0xc1] sm:$0xff]  ;;  %v4951_v11 = vmul.f32 %v4919_v10, %v4823_v4  ;;  %v14951_v10 = vpop.eup %14950  ;;  %v4825_v4 = vmul.f32 0.5, %v16891_v59 }
 0x35c   : > { %5019 = vst.msk [vmem:[#allocation2 + $0xe9] sm:$0xff] %vm4991_vm0, %v4949_v43  ;;  %19035 = vst [vmem:[#allocation96_spill] sm:$0xff] %v16992_v38  ;;  %v17004_v43 = vld [vmem:[#allocation2 + $0xc2] sm:$0xff] }
 0x35d   : > { %19036 = vst [vmem:[#allocation97_spill] sm:$0xff] %v16994_v54  ;;  %5018 = vst.msk [vmem:[#allocation2 + $0xe1] sm:$0xff] %vm4991_vm0, %v4948_v34  ;;  %v4950_v34 = vmul.f32 %v4918_v12, %v4822_v50  ;;  %v17016_v38 = vld [vmem:[#allocation2 + $0xc9] sm:$0xff]  ;;  %v4824_v50 = vmul.f32 0.5, %v16902_v32 }
 0x35e   : > { %19037 = vst [vmem:[#allocation98_spill] sm:$0xff] %v17002_v41  ;;  %19038 = vst [vmem:[#allocation99_spill] sm:$0xff] %v17004_v43  ;;  %v17026_v43 = vld [vmem:[#allocation2 + $0xd9] sm:$0xff] }
 0x35f   : > { %19039 = vst [vmem:[#allocation100_spill] sm:$0xff] %v17006_v57  ;;  %8817 = vst.msk [vmem:[#allocation2 + $0xb8] sm:$0xff] %vm444_vm1, %v18791_v26  ;;  %v4921_v57 = vadd.f32 1.0, %v14949_v22  ;;  %v17024_v54 = vld [vmem:[#allocation2 + $0xd1] sm:$0xff] }
 0x360   : > { %8818 = vst.msk [vmem:[#allocation2 + $0xc0] sm:$0xff] %vm444_vm1, %v18791_v26  ;;  %19040 = vst [vmem:[#allocation101_spill] sm:$0xff] %v17016_v38  ;;  %v17028_v12 = vld [vmem:[#allocation2 + $0xd0] sm:$0xff]  ;;  %v4920_v38 = vadd.f32 1.0, %v14951_v10  ;;  %13487 = vmatprep.mubr.msk.f32.mxu1 %vm4991_vm0, %v17024_v54  ;;  %v17048_v10 = vld [vmem:[#allocation2 + $0xd9] sm:$0xff] }
 0x361   : > { %10462 = vst.msk [vmem:[#allocation2 + $0xb8] sm:$0xff] %vm444_vm1, %v18791_v26  ;;  %10463 = vst.msk [vmem:[#allocation2 + $0xc0] sm:$0xff] %vm444_vm1, %v18791_v26  ;;  %v17034_v41 = vld [vmem:[#allocation2 + $0xca] sm:$0xff]  ;;  %v4953_v22 = vmul.f32 %v4921_v57, %v4825_v4  ;;  %13488 = vmatmul.mubr.msk.f32.gmra.mrb[10].mxu1 %vm4991_vm0, %v17026_v43 }
 0x362   : > { %5021 = vst.msk [vmem:[#allocation2 + $0xf9] sm:$0xff] %vm4991_vm0, %v4951_v11  ;;  %19041 = vst [vmem:[#allocation102_spill] sm:$0xff] %v17024_v54  ;;  %v17036_v11 = vld [vmem:[#allocation2 + $0xd2] sm:$0xff]  ;;  %v4952_v32 = vmul.f32 %v4920_v38, %v4824_v50 }
 0x363   : > { %19042 = vst [vmem:[#allocation103_spill] sm:$0xff] %v17026_v43  ;;  %5020 = vst.msk [vmem:[#allocation2 + $0xf1] sm:$0xff] %vm4991_vm0, %v4950_v34  ;;  %v17038_v59 = vld [vmem:[#allocation2 + $0xd1] sm:$0xff]  ;;  %v17057_v4 = vld [vmem:[#allocation2 + $0xe9] sm:$0xff] }
 0x364   : > { %19043 = vst [vmem:[#allocation104_spill] sm:$0xff] %v17034_v41  ;;  %19044 = vst [vmem:[#allocation105_spill] sm:$0xff] %v17036_v11  ;;  %v17046_v34 = vld [vmem:[#allocation2 + $0xd8] sm:$0xff]  ;;  %v17055_v57 = vld [vmem:[#allocation2 + $0xe1] sm:$0xff] }
 0x365   : > { %19045 = vst [vmem:[#allocation106_spill] sm:$0xff] %v17038_v59  ;;  %8819 = vst.msk [vmem:[#allocation2 + $0xc8] sm:$0xff] %vm444_vm1, %v18791_v26  ;;  %v17059_v59 = vld [vmem:[#allocation2 + $0xe0] sm:$0xff]  ;;  %13490 = vmatprep.mubr.msk.f32.mxu1 %vm4991_vm0, %v17055_v57  ;;  %v17088_v43 = vld [vmem:[#allocation2 + $0xe9] sm:$0xff] }
 0x366   : > { %8820 = vst.msk [vmem:[#allocation2 + $0xd0] sm:$0xff] %vm444_vm1, %v18791_v26  ;;  %19046 = vst [vmem:[#allocation107_spill] sm:$0xff] %v17048_v10  ;;  %v17064_v38 = vld [vmem:[#allocation2 + $0xda] sm:$0xff]  ;;  %v17066_v50 = vld [vmem:[#allocation2 + $0xe2] sm:$0xff]  ;;  %13491 = vmatmul.mubr.msk.f32.gmra.mrb[12].mxu1 %vm4991_vm0, %v17057_v4 }
 0x367   : > { %10464 = vst.msk [vmem:[#allocation2 + $0xc8] sm:$0xff] %vm444_vm1, %v18791_v26  ;;  %10465 = vst.msk [vmem:[#allocation2 + $0xd0] sm:$0xff] %vm444_vm1, %v18791_v26  ;;  %v17068_v10 = vld [vmem:[#allocation2 + $0xe1] sm:$0xff] }
 0x368   : > { %5023 = vst.msk [vmem:[#allocation2 + $0x109] sm:$0xff] %vm4991_vm0, %v4953_v22  ;;  %19047 = vst [vmem:[#allocation108_spill] sm:$0xff] %v17055_v57  ;;  %v19052_v22 = vld [vmem:[#allocation37_spill] sm:$0xff] }
 0x369   : > { %19048 = vst [vmem:[#allocation109_spill] sm:$0xff] %v17057_v4  ;;  %5022 = vst.msk [vmem:[#allocation2 + $0x101] sm:$0xff] %vm4991_vm0, %v4952_v32  ;;  %v5056_v32 = vmul.f32 %v19052_v22, %v16564_v16  ;;  %v17086_v4 = vld [vmem:[#allocation2 + $0xe8] sm:$0xff] }
 0x36a   : > { %19049 = vst [vmem:[#allocation110_spill] sm:$0xff] %v17064_v38  ;;  %19050 = vst [vmem:[#allocation111_spill] sm:$0xff] %v17066_v50  ;;  %v17082_v57 = vld [vmem:[#allocation2 + $0xf1] sm:$0xff] }
 0x36b   : > { %19051 = vst [vmem:[#allocation112_spill] sm:$0xff] %v17068_v10  ;;  %8821 = vst.msk [vmem:[#allocation2 + $0xd8] sm:$0xff] %vm444_vm1, %v18791_v26  ;;  %v17084_v10 = vld [vmem:[#allocation2 + $0xf9] sm:$0xff]  ;;  %13493 = vmatprep.mubr.msk.f32.mxu1 %vm4991_vm0, %v17082_v57  ;;  %v17092_v54 = vld [vmem:[#allocation2 + $0xf0] sm:$0xff] }
 0x36c   : > { %8822 = vst.msk [vmem:[#allocation2 + $0xe0] sm:$0xff] %vm444_vm1, %v18791_v26  ;;  %10466 = vst.msk [vmem:[#allocation2 + $0xd8] sm:$0xff] %vm444_vm1, %v18791_v26  ;;  %v17094_v16 = vld [vmem:[#allocation2 + $0xea] sm:$0xff]  ;;  %v17096_v22 = vld [vmem:[#allocation2 + $0xf2] sm:$0xff]  ;;  %13494 = vmatmul.mubr.msk.f32.gmra.mrb[14].mxu1 %vm4991_vm0, %v17084_v10 }
 0x36d   : > { %10467 = vst.msk [vmem:[#allocation2 + $0xe0] sm:$0xff] %vm444_vm1, %v18791_v26  ;;  %19053 = vst [vmem:[#allocation113_spill] sm:$0xff] %v17082_v57  ;;  %v17100_v50 = vld [vmem:[#allocation2 + $0xf1] sm:$0xff]  ;;  %13498 = vmatprep.mubr.msk.f32.mxu1 %vm4991_vm0, %v5056_v32 }
 0x36e   : > { %19054 = vst [vmem:[#allocation114_spill] sm:$0xff] %v17084_v10  ;;  %19055 = vst [vmem:[#allocation115_spill] sm:$0xff] %v17088_v43  ;;  %v17102_v38 = vld [vmem:[#allocation2 + $0xea] sm:$0xff]  ;;  %v17104_v11 = vld [vmem:[#allocation2 + $0xf2] sm:$0xff] }
 0x36f   : > { %19056 = vst [vmem:[#allocation116_spill] sm:$0xff] %v17094_v16  ;;  %19057 = vst [vmem:[#allocation117_spill] sm:$0xff] %v17096_v22  ;;  %v17107_v43 = vld [vmem:[#allocation2 + $0xf8] sm:$0xff]  ;;  %v17114_v16 = vld [vmem:[#allocation2 + $0x109] sm:$0xff] }
 0x370   : > { %19058 = vst [vmem:[#allocation118_spill] sm:$0xff] %v17100_v50  ;;  %19059 = vst [vmem:[#allocation119_spill] sm:$0xff] %v17102_v38  ;;  %v17112_v57 = vld [vmem:[%s18529_s3 + $0x18] sm:$0xff]  ;;  %v17116_v22 = vld [vmem:[#allocation2 + $0x10a] sm:$0xff]  ;;  %13499 = vmatmul.mubr.msk.f32.vlgmr.msra.gmra.mrb[16].mxu1 %vm4991_vm0, %v16594_v17  ;;  %v5060_v17 = vmul.f32 %v15485_v27, %v16635_v5 }
 0x371   : > { %19060 = vst [vmem:[#allocation120_spill] sm:$0xff] %v17104_v11  ;;  %19061 = vst [vmem:[#allocation121_spill] sm:$0xff] %v17107_v43  ;;  %v17118_v10 = vld [vmem:[#allocation2 + $0xf9] sm:$0xff]  ;;  %v17128_v38 = vld [vmem:[#allocation2 + $0x108] sm:$0xff]  ;;  %13547 = vmatpush3.msra.mxu1 %v16832_v36  ;;  %v5062_v36 = vmul.f32 %v15503_v40, %v16671_v37 }
 0x372   : > { %19062 = vst [vmem:[#allocation122_spill] sm:$0xff] %v17114_v16  ;;  %19063 = vst [vmem:[#allocation123_spill] sm:$0xff] %v17116_v22  ;;  %v17124_v32 = vld [vmem:[#allocation2 + $0xfa] sm:$0xff]  ;;  %v17138_v16 = vld [vmem:[#allocation2 + $0x102] sm:$0xff]  ;;  %13596 = vmatprep.subr.mxu1 %v17112_v57 }
 0x373   : > { %19064 = vst [vmem:[#allocation124_spill] sm:$0xff] %v17118_v10  ;;  %8823 = vst.msk [vmem:[#allocation2 + $0xe8] sm:$0xff] %vm444_vm1, %v18791_v26  ;;  %v17126_v11 = vld [vmem:[#allocation2 + $0x100] sm:$0xff] }
 0x374   : > { %8824 = vst.msk [vmem:[#allocation2 + $0xf0] sm:$0xff] %vm444_vm1, %v18791_v26  ;;  %19065 = vst [vmem:[#allocation125_spill] sm:$0xff] %v17128_v38  ;;  %v19066_v10 = vld [vmem:[#allocation40_spill] sm:$0xff] }
 0x375   : > { %10468 = vst.msk [vmem:[#allocation2 + $0xe8] sm:$0xff] %vm444_vm1, %v18791_v26  ;;  %10469 = vst.msk [vmem:[#allocation2 + $0xf0] sm:$0xff] %vm444_vm1, %v18791_v26  ;;  %v5058_v50 = vmul.f32 %v19066_v10, %v16603_v0  ;;  %v17136_v22 = vld [vmem:[#allocation2 + $0x101] sm:$0xff] }
 0x376   : > { %19067 = vst [vmem:[#allocation40_spill] sm:$0xff] %v17136_v22  ;;  %19068 = vst [vmem:[#allocation126_spill] sm:$0xff] %v17138_v16  ;;  %v17140_v41 = vld [vmem:[#allocation2 + $0xfa] sm:$0xff] }
 0x377   : > { %19069 = vst [vmem:[#allocation127_spill] sm:$0xff] %v17140_v41  ;;  %8825 = vst.msk [vmem:[#allocation2 + $0xf8] sm:$0xff] %vm444_vm1, %v18791_v26  ;;  %13501 = vmatprep.mubr.msk.f32.mxu1 %vm4991_vm0, %v5058_v50  ;;  %v5064_v50 = vmul.f32 %v15518_v48, %v16707_v29  ;;  %v5066_v41 = vmul.f32 %v15531_v24, %v16743_v7  ;;  %v19076_v16 = vld [vmem:[#allocation55_spill] sm:$0xff] }
 0x378   : > { %8826 = vst.msk [vmem:[#allocation2 + $0x100] sm:$0xff] %vm444_vm1, %v18791_v26  ;;  %8827 = vst.msk [vmem:[#allocation2 + $0x108] sm:$0xff] %vm444_vm1, %v18791_v26  ;;  %13502 = vmatmul.mubr.msk.f32.gmra.mrb[18].mxu1 %vm4991_vm0, %v16626_v18 }
 0x379   : > { %10470 = vst.msk [vmem:[#allocation2 + $0xf8] sm:$0xff] %vm444_vm1, %v18791_v26  ;;  %10471 = vst.msk [vmem:[#allocation2 + $0x100] sm:$0xff] %vm444_vm1, %v18791_v26  ;;  %13504 = vmatprep.mubr.msk.f32.mxu1 %vm4991_vm0, %v5060_v17  ;;  %v5068_v17 = vmul.f32 %v15544_v42, %v16779_v3 }
 0x37a   : > { %10472 = vst.msk [vmem:[#allocation2 + $0x108] sm:$0xff] %vm444_vm1, %v18791_v26 }
 0x37c   : > { %13505 = vmatmul.mubr.msk.f32.gmra.mrb[20].mxu1 %vm4991_vm0, %v16662_v51 }
 0x37d   : > { %13507 = vmatprep.mubr.msk.f32.mxu1 %vm4991_vm0, %v5062_v36  ;;  %v17183_v36 = vpop.f32.mrb[32].mxu0 }
 0x37e   : > { %19070 = vst [vmem:[#allocation128_spill] sm:$0xff] %v17183_v36  ;;  %v17186_v26 = vpop.f32.mrb[33].mxu0  ;;  %v19075_v36 = vld [vmem:[#allocation18_spill] sm:$0xff] }
 0x37f   : > { %19071 = vst [vmem:[#allocation129_spill] sm:$0xff] %v17186_v26  ;;  %v5076_v26 = vmul.f32 %v15596_v8, %v16940_v15 }
 0x380   : > { %13508 = vmatmul.mubr.msk.f32.gmra.mrb[22].mxu1 %vm4991_vm0, %v16698_v23 }
 0x381   : > { %13510 = vmatprep.mubr.msk.f32.mxu1 %vm4991_vm0, %v5064_v50  ;;  %v5070_v50 = vmul.f32 %v15557_v20, %v16819_v44 }
 0x384   : > { %13511 = vmatmul.mubr.msk.f32.gmra.mrb[24].mxu1 %vm4991_vm0, %v16734_v31 }
 0x385   : > { %13513 = vmatprep.mubr.msk.f32.mxu1 %vm4991_vm0, %v5066_v41  ;;  %v5072_v41 = vmul.f32 %v15570_v21, %v16864_v33 }
 0x388   : > { %13514 = vmatmul.mubr.msk.f32.gmra.mrb[26].mxu1 %vm4991_vm0, %v16770_v25 }
 0x389   : > { %13516 = vmatprep.mubr.msk.f32.mxu1 %vm4991_vm0, %v5068_v17  ;;  %v5074_v17 = vmul.f32 %v15583_v13, %v16906_v61 }
 0x38c   : > { %13517 = vmatmul.mubr.msk.f32.gmra.mrb[28].mxu1 %vm4991_vm0, %v16810_v30 }
 0x38d   : > { %13519 = vmatprep.mubr.msk.f32.mxu1 %vm4991_vm0, %v5070_v50  ;;  %v5078_v50 = vmul.f32 %v15609_v2, %v16962_v6 }
 0x390   : > { %13520 = vmatmul.mubr.msk.f32.gmra.mrb[30].mxu1 %vm4991_vm0, %v16855_v45 }
 0x391   : > { %13522 = vmatprep.mubr.msk.f32.mxu1 %vm4991_vm0, %v5072_v41  ;;  %v5080_v41 = vmul.f32 %v15622_v62, %v16996_v63 }
 0x394   : > { %13523 = vmatmul.mubr.msk.f32.gmra.mrb[0].mxu1 %vm4991_vm0, %v16897_v9 }
 0x395   : > { %13525 = vmatprep.mubr.msk.f32.mxu1 %vm4991_vm0, %v5074_v17  ;;  %v5082_v17 = vmul.f32 %v15635_v55, %v17028_v12 }
 0x398   : > { %13526 = vmatmul.mubr.msk.f32.gmra.mrb[2].mxu1 %vm4991_vm0, %v16934_v35 }
 0x399   : > { %13528 = vmatprep.mubr.msk.f32.mxu1 %vm4991_vm0, %v5076_v26  ;;  %v5084_v26 = vmul.f32 %v18918_v39, %v17059_v59 }
 0x39c   : > { %13529 = vmatmul.mubr.msk.f32.gmra.mrb[4].mxu1 %vm4991_vm0, %v16948_v58 }
 0x39d   : > { %13531 = vmatprep.mubr.msk.f32.mxu1 %vm4991_vm0, %v5078_v50  ;;  %v5086_v50 = vmul.f32 %v18920_v52, %v17092_v54 }
 0x3a0   : > { %13532 = vmatmul.mubr.msk.f32.gmra.mrb[6].mxu1 %vm4991_vm0, %v16982_v28 }
 0x3a1   : > { %13534 = vmatprep.mubr.msk.f32.mxu1 %vm4991_vm0, %v5080_v41  ;;  %v5797_v41 = vmul.f32 %v18936_v56, %v16596_v53  ;;  %v19073_v53 = vld [vmem:[#allocation52_spill] sm:$0xff]  ;;  %v19079_v56 = vld [vmem:[#allocation58_spill] sm:$0xff] }
 0x3a4   : > { %13535 = vmatmul.mubr.msk.f32.gmra.mrb[8].mxu1 %vm4991_vm0, %v17014_v1 }
 0x3a5   : > { %13537 = vmatprep.mubr.msk.f32.mxu1 %vm4991_vm0, %v5082_v17  ;;  %v6632_v17 = vld [vmem:[%s18529_s3 + $0x20] sm:$0xff] }
 0x3a8   : > { %13538 = vmatmul.mubr.msk.f32.gmra.mrb[10].mxu1 %vm4991_vm0, %v17046_v34 }
 0x3a9   : > { %13540 = vmatprep.mubr.msk.f32.mxu1 %vm4991_vm0, %v5084_v26  ;;  %v5799_v26 = vmul.f32 %v18937_v47, %v16628_v49  ;;  %v19077_v47 = vld [vmem:[#allocation53_spill] sm:$0xff] }
 0x3ac   : > { %13541 = vmatmul.mubr.msk.f32.gmra.mrb[12].mxu1 %vm4991_vm0, %v17086_v4 }
 0x3ad   : > { %13543 = vmatprep.mubr.msk.f32.mxu1 %vm4991_vm0, %v5086_v50 }
 0x3b0   : > { %13544 = vmatmul.mubr.msk.f32.gmra.mrb[14].mxu1 %vm4991_vm0, %v17107_v43 }
 0x3b1   : > { %13548 = vmatprep.mubr.msk.f32.mxu1 %vm4991_vm0, %v16566_v46  ;;  %v19072_v46 = vld [vmem:[#allocation32_spill] sm:$0xff] }
 0x3b2   : > { %v5801_v50 = vmul.f32 %v19073_v53, %v19072_v46  ;;  %v19082_v53 = vld [vmem:[#allocation61_spill] sm:$0xff] }
 0x3b4   : > { %13549 = vmatmul.mubr.msk.f32.vlgmr.msra.gmra.mrb[16].mxu1 %vm4991_vm0, %v5797_v41  ;;  %v19074_v41 = vld [vmem:[#allocation33_spill] sm:$0xff] }
 0x3b5   : > { %13551 = vmatprep.mubr.msk.f32.mxu1 %vm4991_vm0, %v16607_v14  ;;  %13597 = vmatpush3.msra.mxu1 %v17112_v57  ;;  %v5803_v57 = vmul.f32 %v19076_v16, %v19075_v36  ;;  %v19085_v16 = vld [vmem:[#allocation64_spill] sm:$0xff] }
 0x3b6   : > { %13646 = vmatprep.subr.mxu1 %v6632_v17 }
 0x3b8   : > { %13552 = vmatmul.mubr.msk.f32.gmra.mrb[18].mxu1 %vm4991_vm0, %v5799_v26  ;;  %v19078_v26 = vld [vmem:[#allocation46_spill] sm:$0xff] }
 0x3b9   : > { %13554 = vmatprep.mubr.msk.f32.mxu1 %vm4991_vm0, %v16637_v60  ;;  %v5805_v49 = vmul.f32 %v19079_v56, %v19078_v26  ;;  %v19080_v60 = vld [vmem:[#allocation92_spill] sm:$0xff]  ;;  %v19088_v56 = vld [vmem:[#allocation67_spill] sm:$0xff] }
 0x3bc   : > { %13555 = vmatmul.mubr.msk.f32.gmra.mrb[20].mxu1 %vm4991_vm0, %v5801_v50  ;;  %v19081_v50 = vld [vmem:[#allocation7_spill] sm:$0xff] }
 0x3bd   : > { %13557 = vmatprep.mubr.msk.f32.mxu1 %vm4991_vm0, %v19074_v41  ;;  %v5807_v46 = vmul.f32 %v19082_v53, %v19081_v50  ;;  %v19083_v41 = vld [vmem:[#allocation8_spill] sm:$0xff]  ;;  %v19091_v53 = vld [vmem:[#allocation70_spill] sm:$0xff] }
 0x3c0   : > { %13558 = vmatmul.mubr.msk.f32.gmra.mrb[22].mxu1 %vm4991_vm0, %v5803_v57  ;;  %v19084_v57 = vld [vmem:[#allocation13_spill] sm:$0xff] }
 0x3c1   : > { %13560 = vmatprep.mubr.msk.f32.mxu1 %vm4991_vm0, %v19077_v47  ;;  %v5809_v36 = vmul.f32 %v19085_v16, %v19084_v57  ;;  %v19086_v47 = vld [vmem:[#allocation14_spill] sm:$0xff] }
 0x3c4   : > { %13561 = vmatmul.mubr.msk.f32.gmra.mrb[24].mxu1 %vm4991_vm0, %v5805_v49  ;;  %v19087_v49 = vld [vmem:[#allocation95_spill] sm:$0xff] }
 0x3c5   : > { %13563 = vmatprep.mubr.msk.f32.mxu1 %vm4991_vm0, %v19080_v60  ;;  %v5811_v26 = vmul.f32 %v19088_v56, %v19087_v49  ;;  %v19089_v60 = vld [vmem:[#allocation59_spill] sm:$0xff]  ;;  %v19096_v56 = vld [vmem:[#allocation76_spill] sm:$0xff] }
 0x3c8   : > { %13564 = vmatmul.mubr.msk.f32.gmra.mrb[26].mxu1 %vm4991_vm0, %v5807_v46  ;;  %v19090_v46 = vld [vmem:[#allocation68_spill] sm:$0xff] }
 0x3c9   : > { %13566 = vmatprep.mubr.msk.f32.mxu1 %vm4991_vm0, %v19083_v41  ;;  %v5813_v50 = vmul.f32 %v19091_v53, %v19090_v46  ;;  %v19092_v41 = vld [vmem:[#allocation69_spill] sm:$0xff]  ;;  %v19099_v53 = vld [vmem:[#allocation79_spill] sm:$0xff] }
 0x3cc   : > { %13567 = vmatmul.mubr.msk.f32.gmra.mrb[28].mxu1 %vm4991_vm0, %v5809_v36  ;;  %v19093_v36 = vld [vmem:[#allocation73_spill] sm:$0xff] }
 0x3cd   : > { %13569 = vmatprep.mubr.msk.f32.mxu1 %vm4991_vm0, %v19086_v47  ;;  %v5815_v16 = vmul.f32 %v19093_v36, %v16936_v19  ;;  %v19094_v47 = vld [vmem:[#allocation78_spill] sm:$0xff] }
 0x3ce   : > { %v19102_v36 = vld [vmem:[#allocation82_spill] sm:$0xff] }
 0x3d0   : > { %13570 = vmatmul.mubr.msk.f32.gmra.mrb[30].mxu1 %vm4991_vm0, %v5811_v26  ;;  %v19095_v26 = vld [vmem:[#allocation87_spill] sm:$0xff] }
 0x3d1   : > { %13572 = vmatprep.mubr.msk.f32.mxu1 %vm4991_vm0, %v19089_v60  ;;  %v5817_v49 = vmul.f32 %v19096_v56, %v19095_v26  ;;  %v19097_v60 = vld [vmem:[#allocation88_spill] sm:$0xff]  ;;  %v19105_v56 = vld [vmem:[#allocation85_spill] sm:$0xff] }
 0x3d4   : > { %13573 = vmatmul.mubr.msk.f32.gmra.mrb[0].mxu1 %vm4991_vm0, %v5813_v50  ;;  %v19098_v50 = vld [vmem:[#allocation98_spill] sm:$0xff] }
 0x3d5   : > { %13575 = vmatprep.mubr.msk.f32.mxu1 %vm4991_vm0, %v19092_v41  ;;  %v5819_v46 = vmul.f32 %v19099_v53, %v19098_v50  ;;  %v19100_v41 = vld [vmem:[#allocation99_spill] sm:$0xff]  ;;  %v19108_v53 = vld [vmem:[#allocation86_spill] sm:$0xff] }
 0x3d8   : > { %13576 = vmatmul.mubr.msk.f32.gmra.mrb[2].mxu1 %vm4991_vm0, %v5815_v16  ;;  %v19101_v16 = vld [vmem:[#allocation104_spill] sm:$0xff] }
 0x3d9   : > { %13578 = vmatprep.mubr.msk.f32.mxu1 %vm4991_vm0, %v19094_v47  ;;  %v5821_v19 = vmul.f32 %v19102_v36, %v19101_v16  ;;  %v19103_v47 = vld [vmem:[#allocation105_spill] sm:$0xff] }
 0x3dc   : > { %13579 = vmatmul.mubr.msk.f32.gmra.mrb[4].mxu1 %vm4991_vm0, %v5817_v49  ;;  %v19104_v49 = vld [vmem:[#allocation110_spill] sm:$0xff] }
 0x3dd   : > { %13581 = vmatprep.mubr.msk.f32.mxu1 %vm4991_vm0, %v19097_v60  ;;  %v5823_v26 = vmul.f32 %v19105_v56, %v19104_v49  ;;  %v19106_v60 = vld [vmem:[#allocation111_spill] sm:$0xff] }
 0x3e0   : > { %13582 = vmatmul.mubr.msk.f32.gmra.mrb[6].mxu1 %vm4991_vm0, %v5819_v46  ;;  %v19107_v46 = vld [vmem:[#allocation116_spill] sm:$0xff] }
 0x3e1   : > { %13584 = vmatprep.mubr.msk.f32.mxu1 %vm4991_vm0, %v19100_v41  ;;  %v5825_v50 = vmul.f32 %v19108_v53, %v19107_v46  ;;  %v19109_v41 = vld [vmem:[#allocation117_spill] sm:$0xff] }
 0x3e4   : > { %13585 = vmatmul.mubr.msk.f32.gmra.mrb[8].mxu1 %vm4991_vm0, %v5821_v19  ;;  %v19110_v19 = vld [vmem:[#allocation89_spill] sm:$0xff] }
 0x3e5   : > { %13587 = vmatprep.mubr.msk.f32.mxu1 %vm4991_vm0, %v19103_v47  ;;  %v5827_v36 = vmul.f32 %v19110_v19, %v17124_v32  ;;  %v19111_v47 = vld [vmem:[#allocation37_spill] sm:$0xff] }
 0x3e6   : > { %v6214_v16 = vmul.f32 %v19111_v47, %v16603_v0  ;;  %v6218_v0 = vmul.f32 %v15485_v27, %v16671_v37 }
 0x3e8   : > { %13588 = vmatmul.mubr.msk.f32.gmra.mrb[10].mxu1 %vm4991_vm0, %v5823_v26  ;;  %v6216_v26 = vmul.f32 %v19066_v10, %v16635_v5 }
 0x3e9   : > { %13590 = vmatprep.mubr.msk.f32.mxu1 %vm4991_vm0, %v19106_v60 }
 0x3ec   : > { %13591 = vmatmul.mubr.msk.f32.gmra.mrb[12].mxu1 %vm4991_vm0, %v5825_v50  ;;  %v17327_v50 = vld [vmem:[%s18529_s3 + $0x28] sm:$0xff] }
 0x3ed   : > { %13593 = vmatprep.mubr.msk.f32.mxu1 %vm4991_vm0, %v19109_v41 }
 0x3f0   : > { %13594 = vmatmul.mubr.msk.f32.gmra.mrb[14].mxu1 %vm4991_vm0, %v5827_v36  ;;  %v6220_v36 = vmul.f32 %v15503_v40, %v16707_v29 }
 0x3f1   : > { %13598 = vmatprep.mubr.msk.f32.mxu1 %vm4991_vm0, %v6214_v16  ;;  %v6226_v16 = vmul.f32 %v15544_v42, %v16819_v44 }
 0x3f4   : > { %13599 = vmatmul.mubr.msk.f32.vlgmr.msra.gmra.mrb[16].mxu1 %vm4991_vm0, %v16626_v18  ;;  %v6222_v18 = vmul.f32 %v15518_v48, %v16743_v7 }
 0x3f5   : > { %13601 = vmatprep.mubr.msk.f32.mxu1 %vm4991_vm0, %v6216_v26  ;;  %13647 = vmatpush3.msra.mxu1 %v6632_v17  ;;  %v6224_v17 = vmul.f32 %v15531_v24, %v16779_v3  ;;  %v17358_v26 = vpop.f32.mrb[34].mxu0 }
 0x3f6   : > { %13696 = vmatprep.subr.mxu1 %v17327_v50  ;;  %19112 = vst [vmem:[#allocation110_spill] sm:$0xff] %v17358_v26 }
 0x3f8   : > { %13602 = vmatmul.mubr.msk.f32.gmra.mrb[18].mxu1 %vm4991_vm0, %v16662_v51 }
 0x3f9   : > { %13604 = vmatprep.mubr.msk.f32.mxu1 %vm4991_vm0, %v6218_v0  ;;  %v6228_v0 = vmul.f32 %v15557_v20, %v16864_v33 }
 0x3fc   : > { %13605 = vmatmul.mubr.msk.f32.gmra.mrb[20].mxu1 %vm4991_vm0, %v16698_v23 }
 0x3fd   : > { %13607 = vmatprep.mubr.msk.f32.mxu1 %vm4991_vm0, %v6220_v36  ;;  %v17362_v36 = vpop.f32.mrb[35].mxu0 }
 0x3fe   : > { %19113 = vst [vmem:[#allocation85_spill] sm:$0xff] %v17362_v36  ;;  %v6232_v36 = vmul.f32 %v15583_v13, %v16940_v15 }
 0x400   : > { %13608 = vmatmul.mubr.msk.f32.gmra.mrb[22].mxu1 %vm4991_vm0, %v16734_v31 }
 0x401   : > { %13610 = vmatprep.mubr.msk.f32.mxu1 %vm4991_vm0, %v6222_v18  ;;  %v17367_v18 = vpop.f32.mrb[36].mxu0 }
 0x402   : > { %19114 = vst [vmem:[#allocation116_spill] sm:$0xff] %v17367_v18  ;;  %v17371_v42 = vpop.f32.mrb[37].mxu0 }
 0x403   : > { %19115 = vst [vmem:[#allocation86_spill] sm:$0xff] %v17371_v42  ;;  %v6234_v42 = vmul.f32 %v15596_v8, %v16962_v6 }
 0x404   : > { %13611 = vmatmul.mubr.msk.f32.gmra.mrb[24].mxu1 %vm4991_vm0, %v16770_v25 }
 0x405   : > { %13613 = vmatprep.mubr.msk.f32.mxu1 %vm4991_vm0, %v6224_v17  ;;  %v6230_v17 = vmul.f32 %v15570_v21, %v16906_v61 }
 0x408   : > { %13614 = vmatmul.mubr.msk.f32.gmra.mrb[26].mxu1 %vm4991_vm0, %v16810_v30 }
 0x409   : > { %13616 = vmatprep.mubr.msk.f32.mxu1 %vm4991_vm0, %v6226_v16  ;;  %v17376_v16 = vpop.f32.mrb[38].mxu0 }
 0x40a   : > { %19116 = vst [vmem:[#allocation117_spill] sm:$0xff] %v17376_v16  ;;  %v17380_v26 = vpop.f32.mrb[39].mxu0 }
 0x40b   : > { %19117 = vst [vmem:[#allocation89_spill] sm:$0xff] %v17380_v26  ;;  %v6236_v26 = vmul.f32 %v15609_v2, %v16996_v63 }
 0x40c   : > { %13617 = vmatmul.mubr.msk.f32.gmra.mrb[28].mxu1 %vm4991_vm0, %v16855_v45 }
 0x40d   : > { %13619 = vmatprep.mubr.msk.f32.mxu1 %vm4991_vm0, %v6228_v0  ;;  %v17385_v0 = vpop.f32.mrb[40].mxu0 }
 0x40e   : > { %19118 = vst [vmem:[#allocation37_spill] sm:$0xff] %v17385_v0  ;;  %v17389_v18 = vpop.f32.mrb[41].mxu0 }
 0x40f   : > { %19119 = vst [vmem:[#allocation130_spill] sm:$0xff] %v17389_v18  ;;  %v6238_v18 = vmul.f32 %v15622_v62, %v17028_v12 }
 0x410   : > { %13620 = vmatmul.mubr.msk.f32.gmra.mrb[30].mxu1 %vm4991_vm0, %v16897_v9 }
 0x411   : > { %13622 = vmatprep.mubr.msk.f32.mxu1 %vm4991_vm0, %v6230_v17  ;;  %v17394_v17 = vpop.f32.mrb[42].mxu0 }
 0x412   : > { %19120 = vst [vmem:[#allocation131_spill] sm:$0xff] %v17394_v17  ;;  %v17398_v16 = vpop.f32.mrb[43].mxu0 }
 0x413   : > { %19121 = vst [vmem:[#allocation132_spill] sm:$0xff] %v17398_v16  ;;  %v6240_v16 = vmul.f32 %v15635_v55, %v17059_v59 }
 0x414   : > { %13623 = vmatmul.mubr.msk.f32.gmra.mrb[0].mxu1 %vm4991_vm0, %v16934_v35 }
 0x415   : > { %13625 = vmatprep.mubr.msk.f32.mxu1 %vm4991_vm0, %v6232_v36  ;;  %v17403_v36 = vpop.f32.mrb[44].mxu0 }
 0x416   : > { %19122 = vst [vmem:[#allocation133_spill] sm:$0xff] %v17403_v36  ;;  %v17407_v0 = vpop.f32.mrb[45].mxu0  ;;  %v19132_v36 = vld [vmem:[#allocation36_spill] sm:$0xff] }
 0x417   : > { %19123 = vst [vmem:[#allocation134_spill] sm:$0xff] %v17407_v0  ;;  %v19130_v0 = vld [vmem:[#allocation27_spill] sm:$0xff] }
 0x418   : > { %13626 = vmatmul.mubr.msk.f32.gmra.mrb[2].mxu1 %vm4991_vm0, %v16948_v58 }
 0x419   : > { %13628 = vmatprep.mubr.msk.f32.mxu1 %vm4991_vm0, %v6234_v42  ;;  %v17412_v42 = vpop.f32.mrb[46].mxu0 }
 0x41a   : > { %19124 = vst [vmem:[#allocation135_spill] sm:$0xff] %v17412_v42  ;;  %v17416_v17 = vpop.f32.mrb[47].mxu0  ;;  %v19127_v42 = vld [vmem:[#allocation21_spill] sm:$0xff] }
 0x41b   : > { %19125 = vst [vmem:[#allocation136_spill] sm:$0xff] %v17416_v17  ;;  %v7468_v17 = vld [vmem:[%s18529_s3 + $0x30] sm:$0xff] }
 0x41c   : > { %13629 = vmatmul.mubr.msk.f32.gmra.mrb[4].mxu1 %vm4991_vm0, %v16982_v28 }
 0x41d   : > { %13631 = vmatprep.mubr.msk.f32.mxu1 %vm4991_vm0, %v6236_v26  ;;  %v6242_v26 = vmul.f32 %v18918_v39, %v17092_v54 }
 0x420   : > { %13632 = vmatmul.mubr.msk.f32.gmra.mrb[6].mxu1 %vm4991_vm0, %v17014_v1 }
 0x421   : > { %13634 = vmatprep.mubr.msk.f32.mxu1 %vm4991_vm0, %v6238_v18  ;;  %v6244_v18 = vmul.f32 %v18920_v52, %v17126_v11  ;;  %v19165_v52 = vld [vmem:[#allocation53_spill] sm:$0xff] }
 0x424   : > { %13635 = vmatmul.mubr.msk.f32.gmra.mrb[8].mxu1 %vm4991_vm0, %v17046_v34 }
 0x425   : > { %13637 = vmatprep.mubr.msk.f32.mxu1 %vm4991_vm0, %v6240_v16  ;;  %v19126_v16 = vld [vmem:[#allocation20_spill] sm:$0xff] }
 0x428   : > { %13638 = vmatmul.mubr.msk.f32.gmra.mrb[10].mxu1 %vm4991_vm0, %v17086_v4 }
 0x429   : > { %13640 = vmatprep.mubr.msk.f32.mxu1 %vm4991_vm0, %v6242_v26  ;;  %v19128_v26 = vld [vmem:[#allocation22_spill] sm:$0xff] }
 0x42c   : > { %13641 = vmatmul.mubr.msk.f32.gmra.mrb[12].mxu1 %vm4991_vm0, %v17107_v43 }
 0x42d   : > { %13643 = vmatprep.mubr.msk.f32.mxu1 %vm4991_vm0, %v6244_v18  ;;  %v19129_v18 = vld [vmem:[#allocation23_spill] sm:$0xff] }
 0x430   : > { %13644 = vmatmul.mubr.msk.f32.gmra.mrb[14].mxu1 %vm4991_vm0, %v17128_v38  ;;  %v19133_v38 = vld [vmem:[#allocation19_spill] sm:$0xff] }
 0x431   : > { %13648 = vmatprep.mubr.msk.f32.mxu1 %vm4991_vm0, %v19126_v16  ;;  %v19131_v16 = vld [vmem:[#allocation30_spill] sm:$0xff] }
 0x434   : > { %13649 = vmatmul.mubr.msk.f32.vlgmr.msra.gmra.mrb[16].mxu1 %vm4991_vm0, %v19127_v42  ;;  %v19134_v42 = vld [vmem:[#allocation56_spill] sm:$0xff] }
 0x435   : > { %13651 = vmatprep.mubr.msk.f32.mxu1 %vm4991_vm0, %v19128_v26  ;;  %13697 = vmatpush3.msra.mxu1 %v17327_v50  ;;  %v19135_v50 = vld [vmem:[#allocation60_spill] sm:$0xff] }
 0x436   : > { %13746 = vmatprep.subr.mxu1 %v7468_v17  ;;  %v19136_v26 = vld [vmem:[#allocation48_spill] sm:$0xff] }
 0x438   : > { %13652 = vmatmul.mubr.msk.f32.gmra.mrb[18].mxu1 %vm4991_vm0, %v19129_v18  ;;  %v19137_v18 = vld [vmem:[#allocation6_spill] sm:$0xff] }
 0x439   : > { %13654 = vmatprep.mubr.msk.f32.mxu1 %vm4991_vm0, %v19130_v0  ;;  %v19138_v0 = vld [vmem:[#allocation10_spill] sm:$0xff] }
 0x43c   : > { %13655 = vmatmul.mubr.msk.f32.gmra.mrb[20].mxu1 %vm4991_vm0, %v19131_v16  ;;  %v19139_v16 = vld [vmem:[#allocation12_spill] sm:$0xff] }
 0x43d   : > { %13657 = vmatprep.mubr.msk.f32.mxu1 %vm4991_vm0, %v19132_v36  ;;  %v19140_v36 = vld [vmem:[#allocation16_spill] sm:$0xff] }
 0x440   : > { %13658 = vmatmul.mubr.msk.f32.gmra.mrb[22].mxu1 %vm4991_vm0, %v19133_v38  ;;  %v19141_v38 = vld [vmem:[#allocation94_spill] sm:$0xff] }
 0x441   : > { %13660 = vmatprep.mubr.msk.f32.mxu1 %vm4991_vm0, %v19134_v42  ;;  %v19142_v42 = vld [vmem:[#allocation63_spill] sm:$0xff] }
 0x444   : > { %13661 = vmatmul.mubr.msk.f32.gmra.mrb[24].mxu1 %vm4991_vm0, %v19135_v50  ;;  %v19143_v50 = vld [vmem:[#allocation66_spill] sm:$0xff] }
 0x445   : > { %13663 = vmatprep.mubr.msk.f32.mxu1 %vm4991_vm0, %v19136_v26  ;;  %v19144_v26 = vld [vmem:[#allocation72_spill] sm:$0xff] }
 0x448   : > { %13664 = vmatmul.mubr.msk.f32.gmra.mrb[26].mxu1 %vm4991_vm0, %v19137_v18  ;;  %v19145_v18 = vld [vmem:[#allocation75_spill] sm:$0xff] }
 0x449   : > { %13666 = vmatprep.mubr.msk.f32.mxu1 %vm4991_vm0, %v19138_v0  ;;  %v19146_v0 = vld [vmem:[#allocation83_spill] sm:$0xff] }
 0x44c   : > { %13667 = vmatmul.mubr.msk.f32.gmra.mrb[28].mxu1 %vm4991_vm0, %v19139_v16  ;;  %v19147_v16 = vld [vmem:[#allocation84_spill] sm:$0xff] }
 0x44d   : > { %13669 = vmatprep.mubr.msk.f32.mxu1 %vm4991_vm0, %v19140_v36  ;;  %v19148_v36 = vld [vmem:[#allocation96_spill] sm:$0xff] }
 0x450   : > { %13670 = vmatmul.mubr.msk.f32.gmra.mrb[30].mxu1 %vm4991_vm0, %v19141_v38  ;;  %v19149_v38 = vld [vmem:[#allocation97_spill] sm:$0xff] }
 0x451   : > { %13672 = vmatprep.mubr.msk.f32.mxu1 %vm4991_vm0, %v19142_v42  ;;  %v19150_v42 = vld [vmem:[#allocation102_spill] sm:$0xff] }
 0x454   : > { %13673 = vmatmul.mubr.msk.f32.gmra.mrb[0].mxu1 %vm4991_vm0, %v19143_v50  ;;  %v19151_v50 = vld [vmem:[#allocation103_spill] sm:$0xff] }
 0x455   : > { %13675 = vmatprep.mubr.msk.f32.mxu1 %vm4991_vm0, %v19144_v26  ;;  %v19152_v26 = vld [vmem:[#allocation108_spill] sm:$0xff] }
 0x458   : > { %13676 = vmatmul.mubr.msk.f32.gmra.mrb[2].mxu1 %vm4991_vm0, %v19145_v18  ;;  %v19153_v18 = vld [vmem:[#allocation109_spill] sm:$0xff] }
 0x459   : > { %13678 = vmatprep.mubr.msk.f32.mxu1 %vm4991_vm0, %v19146_v0  ;;  %v19154_v0 = vld [vmem:[#allocation113_spill] sm:$0xff] }
 0x45c   : > { %13679 = vmatmul.mubr.msk.f32.gmra.mrb[4].mxu1 %vm4991_vm0, %v19147_v16  ;;  %v19155_v16 = vld [vmem:[#allocation114_spill] sm:$0xff] }
 0x45d   : > { %13681 = vmatprep.mubr.msk.f32.mxu1 %vm4991_vm0, %v19148_v36  ;;  %v19156_v36 = vld [vmem:[#allocation122_spill] sm:$0xff] }
 0x460   : > { %13682 = vmatmul.mubr.msk.f32.gmra.mrb[6].mxu1 %vm4991_vm0, %v19149_v38  ;;  %v19157_v38 = vld [vmem:[#allocation24_spill] sm:$0xff] }
 0x461   : > { %13684 = vmatprep.mubr.msk.f32.mxu1 %vm4991_vm0, %v19150_v42  ;;  %v19158_v42 = vld [vmem:[#allocation49_spill] sm:$0xff] }
 0x464   : > { %13685 = vmatmul.mubr.msk.f32.gmra.mrb[8].mxu1 %vm4991_vm0, %v19151_v50  ;;  %v7019_v50 = vmul.f32 %v19158_v42, %v19157_v38  ;;  %v19163_v38 = vld [vmem:[#allocation18_spill] sm:$0xff]  ;;  %v19164_v42 = vld [vmem:[#allocation52_spill] sm:$0xff] }
 0x465   : > { %13687 = vmatprep.mubr.msk.f32.mxu1 %vm4991_vm0, %v19152_v26  ;;  %v7854_v26 = vld [vmem:[%s18529_s3 + $0x38] sm:$0xff] }
 0x468   : > { %13688 = vmatmul.mubr.msk.f32.gmra.mrb[10].mxu1 %vm4991_vm0, %v19153_v18  ;;  %v19159_v18 = vld [vmem:[#allocation25_spill] sm:$0xff] }
 0x469   : > { %13690 = vmatprep.mubr.msk.f32.mxu1 %vm4991_vm0, %v19154_v0  ;;  %v19160_v0 = vld [vmem:[#allocation32_spill] sm:$0xff] }
 0x46c   : > { %13691 = vmatmul.mubr.msk.f32.gmra.mrb[12].mxu1 %vm4991_vm0, %v19155_v16  ;;  %v19161_v16 = vld [vmem:[#allocation51_spill] sm:$0xff] }
 0x46d   : > { %13693 = vmatprep.mubr.msk.f32.mxu1 %vm4991_vm0, %v17136_v22  ;;  %v7021_v22 = vmul.f32 %v19161_v16, %v19160_v0  ;;  %v19168_v16 = vld [vmem:[#allocation92_spill] sm:$0xff]  ;;  %v19170_v0 = vld [vmem:[#allocation58_spill] sm:$0xff] }
 0x470   : > { %13694 = vmatmul.mubr.msk.f32.gmra.mrb[14].mxu1 %vm4991_vm0, %v19156_v36  ;;  %v7023_v36 = vmul.f32 %v19164_v42, %v19163_v38 }
 0x471   : > { %13698 = vmatprep.mubr.msk.f32.mxu1 %vm4991_vm0, %v16607_v14  ;;  %v19162_v14 = vld [vmem:[#allocation33_spill] sm:$0xff] }
 0x474   : > { %13699 = vmatmul.mubr.msk.f32.vlgmr.msra.gmra.mrb[16].mxu1 %vm4991_vm0, %v7019_v50  ;;  %v19166_v50 = vld [vmem:[#allocation46_spill] sm:$0xff] }
 0x475   : > { %13701 = vmatprep.mubr.msk.f32.mxu1 %vm4991_vm0, %v19159_v18  ;;  %13747 = vmatpush3.msra.mxu1 %v7468_v17  ;;  %v19167_v18 = vld [vmem:[#allocation55_spill] sm:$0xff] }
 0x476   : > { %13796 = vmatprep.subr.mxu1 %v7854_v26  ;;  %v7025_v17 = vmul.f32 %v19167_v18, %v19166_v50  ;;  %v19175_v18 = vld [vmem:[#allocation64_spill] sm:$0xff] }
 0x478   : > { %13702 = vmatmul.mubr.msk.f32.gmra.mrb[18].mxu1 %vm4991_vm0, %v7021_v22  ;;  %v19169_v22 = vld [vmem:[#allocation7_spill] sm:$0xff] }
 0x479   : > { %13704 = vmatprep.mubr.msk.f32.mxu1 %vm4991_vm0, %v19162_v14  ;;  %v7027_v43 = vmul.f32 %v19170_v0, %v19169_v22  ;;  %v19171_v14 = vld [vmem:[#allocation8_spill] sm:$0xff]  ;;  %v19178_v0 = vld [vmem:[#allocation67_spill] sm:$0xff] }
 0x47c   : > { %13705 = vmatmul.mubr.msk.f32.gmra.mrb[20].mxu1 %vm4991_vm0, %v7023_v36  ;;  %v19172_v36 = vld [vmem:[#allocation61_spill] sm:$0xff] }
 0x47d   : > { %13707 = vmatprep.mubr.msk.f32.mxu1 %vm4991_vm0, %v19165_v52  ;;  %v7029_v42 = vmul.f32 %v19172_v36, %v19084_v57  ;;  %v19173_v52 = vld [vmem:[#allocation14_spill] sm:$0xff] }
 0x47e   : > { %v19181_v36 = vld [vmem:[#allocation70_spill] sm:$0xff] }
 0x480   : > { %13708 = vmatmul.mubr.msk.f32.gmra.mrb[22].mxu1 %vm4991_vm0, %v7025_v17  ;;  %v19174_v17 = vld [vmem:[#allocation95_spill] sm:$0xff] }
 0x481   : > { %13710 = vmatprep.mubr.msk.f32.mxu1 %vm4991_vm0, %v19168_v16  ;;  %v7031_v50 = vmul.f32 %v19175_v18, %v19174_v17  ;;  %v19176_v16 = vld [vmem:[#allocation59_spill] sm:$0xff]  ;;  %v19184_v18 = vld [vmem:[#allocation73_spill] sm:$0xff] }
 0x484   : > { %13711 = vmatmul.mubr.msk.f32.gmra.mrb[24].mxu1 %vm4991_vm0, %v7027_v43  ;;  %v19177_v43 = vld [vmem:[#allocation68_spill] sm:$0xff] }
 0x485   : > { %13713 = vmatprep.mubr.msk.f32.mxu1 %vm4991_vm0, %v19171_v14  ;;  %v7033_v22 = vmul.f32 %v19178_v0, %v19177_v43  ;;  %v19179_v14 = vld [vmem:[#allocation69_spill] sm:$0xff]  ;;  %v19187_v0 = vld [vmem:[#allocation76_spill] sm:$0xff] }
 0x488   : > { %13714 = vmatmul.mubr.msk.f32.gmra.mrb[26].mxu1 %vm4991_vm0, %v7029_v42  ;;  %v19180_v42 = vld [vmem:[#allocation77_spill] sm:$0xff] }
 0x489   : > { %13716 = vmatprep.mubr.msk.f32.mxu1 %vm4991_vm0, %v19173_v52  ;;  %v7035_v57 = vmul.f32 %v19181_v36, %v19180_v42  ;;  %v19182_v52 = vld [vmem:[#allocation78_spill] sm:$0xff]  ;;  %v19190_v36 = vld [vmem:[#allocation79_spill] sm:$0xff] }
 0x48c   : > { %13717 = vmatmul.mubr.msk.f32.gmra.mrb[28].mxu1 %vm4991_vm0, %v7031_v50  ;;  %v19183_v50 = vld [vmem:[#allocation87_spill] sm:$0xff] }
 0x48d   : > { %13719 = vmatprep.mubr.msk.f32.mxu1 %vm4991_vm0, %v19176_v16  ;;  %v7037_v17 = vmul.f32 %v19184_v18, %v19183_v50  ;;  %v19185_v16 = vld [vmem:[#allocation88_spill] sm:$0xff] }
 0x490   : > { %13720 = vmatmul.mubr.msk.f32.gmra.mrb[30].mxu1 %vm4991_vm0, %v7033_v22  ;;  %v19186_v22 = vld [vmem:[#allocation98_spill] sm:$0xff] }
 0x491   : > { %13722 = vmatprep.mubr.msk.f32.mxu1 %vm4991_vm0, %v19179_v14  ;;  %v7039_v43 = vmul.f32 %v19187_v0, %v19186_v22  ;;  %v19188_v14 = vld [vmem:[#allocation99_spill] sm:$0xff] }
 0x494   : > { %13723 = vmatmul.mubr.msk.f32.gmra.mrb[0].mxu1 %vm4991_vm0, %v7035_v57  ;;  %v19189_v57 = vld [vmem:[#allocation104_spill] sm:$0xff] }
 0x495   : > { %13725 = vmatprep.mubr.msk.f32.mxu1 %vm4991_vm0, %v19182_v52  ;;  %v7041_v42 = vmul.f32 %v19190_v36, %v19189_v57  ;;  %v19191_v52 = vld [vmem:[#allocation105_spill] sm:$0xff]  ;;  %v19193_v36 = vld [vmem:[#allocation126_spill] sm:$0xff] }
 0x498   : > { %13726 = vmatmul.mubr.msk.f32.gmra.mrb[2].mxu1 %vm4991_vm0, %v7037_v17  ;;  %v19192_v17 = vld [vmem:[#allocation82_spill] sm:$0xff] }
 0x499   : > { %13728 = vmatprep.mubr.msk.f32.mxu1 %vm4991_vm0, %v19185_v16  ;;  %v7043_v18 = vmul.f32 %v19192_v17, %v19104_v49 }
 0x49c   : > { %13729 = vmatmul.mubr.msk.f32.gmra.mrb[4].mxu1 %vm4991_vm0, %v7039_v43  ;;  %v7045_v43 = vmul.f32 %v19105_v56, %v19107_v46  ;;  %v19218_v46 = vld [vmem:[#allocation90_spill] sm:$0xff] }
 0x49d   : > { %13731 = vmatprep.mubr.msk.f32.mxu1 %vm4991_vm0, %v19188_v14 }
 0x4a0   : > { %13732 = vmatmul.mubr.msk.f32.gmra.mrb[6].mxu1 %vm4991_vm0, %v7041_v42  ;;  %v7047_v42 = vmul.f32 %v19108_v53, %v17124_v32  ;;  %v17592_v32 = vld [vmem:[%s18529_s3 + $0x40] sm:$0xff] }
 0x4a1   : > { %13734 = vmatprep.mubr.msk.f32.mxu1 %vm4991_vm0, %v19191_v52 }
 0x4a4   : > { %13735 = vmatmul.mubr.msk.f32.gmra.mrb[8].mxu1 %vm4991_vm0, %v7043_v18  ;;  %v19194_v18 = vld [vmem:[#allocation123_spill] sm:$0xff] }
 0x4a5   : > { %13737 = vmatprep.mubr.msk.f32.mxu1 %vm4991_vm0, %v19106_v60  ;;  %v7049_v17 = vmul.f32 %v19110_v19, %v19194_v18  ;;  %v7436_v60 = vmul.f32 %v19111_v47, %v16635_v5  ;;  %v7440_v47 = vmul.f32 %v15485_v27, %v16707_v29  ;;  %v7442_v5 = vmul.f32 %v15503_v40, %v16743_v7  ;;  %v19195_v40 = vld [vmem:[#allocation41_spill] sm:$0xff]  ;;  %v7435_v7 = vld [vmem:[#allocation2 + $0x118] sm:$0xff] }
 0x4a6   : > { %v7446_v27 = vmul.f32 %v15531_v24, %v16819_v44  ;;  %v7452_v24 = vmul.f32 %v15570_v21, %v16940_v15  ;;  %v7458_v21 = vmul.f32 %v15609_v2, %v17028_v12  ;;  %v7464_v2 = vmul.f32 %v18918_v39, %v17126_v11  ;;  %v17671_v39 = vld [vmem:[#allocation2 + $0x11a] sm:$0xff]  ;;  %v19201_v44 = vld [vmem:[#allocation29_spill] sm:$0xff]  ;;  %v19212_v12 = vld [vmem:[#allocation62_spill] sm:$0xff] }
 0x4a7   : > { %v19203_v15 = vld [vmem:[#allocation39_spill] sm:$0xff]  ;;  %v19213_v11 = vld [vmem:[#allocation65_spill] sm:$0xff] }
 0x4a8   : > { %13738 = vmatmul.mubr.msk.f32.gmra.mrb[10].mxu1 %vm4991_vm0, %v7045_v43  ;;  %v19221_v43 = vld [vmem:[#allocation101_spill] sm:$0xff] }
 0x4a9   : > { %13740 = vmatprep.mubr.msk.f32.mxu1 %vm4991_vm0, %v19109_v41  ;;  %v7438_v41 = vmul.f32 %v19066_v10, %v16671_v37  ;;  %v7454_v37 = vmul.f32 %v15583_v13, %v16962_v6  ;;  %v7460_v13 = vmul.f32 %v15622_v62, %v17059_v59  ;;  %v7434_v62 = vld [vmem:[#allocation2 + $0x110] sm:$0xff]  ;;  %v19207_v6 = vld [vmem:[#allocation93_spill] sm:$0xff]  ;;  %v19214_v59 = vld [vmem:[#allocation71_spill] sm:$0xff] }
 0x4aa   : > { %v19216_v10 = vld [vmem:[#allocation80_spill] sm:$0xff] }
 0x4ac   : > { %13741 = vmatmul.mubr.msk.f32.gmra.mrb[12].mxu1 %vm4991_vm0, %v7047_v42  ;;  %v19222_v42 = vld [vmem:[#allocation106_spill] sm:$0xff] }
 0x4ad   : > { %13743 = vmatprep.mubr.msk.f32.mxu1 %vm4991_vm0, %v19193_v36 }
 0x4b0   : > { %13744 = vmatmul.mubr.msk.f32.gmra.mrb[14].mxu1 %vm4991_vm0, %v7049_v17  ;;  %v19220_v17 = vld [vmem:[#allocation100_spill] sm:$0xff] }
 0x4b1   : > { %13748 = vmatprep.mubr.msk.f32.mxu1 %vm4991_vm0, %v7436_v60  ;;  %v7444_v60 = vmul.f32 %v15518_v48, %v16779_v3  ;;  %v7450_v48 = vmul.f32 %v15557_v20, %v16906_v61  ;;  %v7456_v20 = vmul.f32 %v15596_v8, %v16996_v63  ;;  %v7462_v8 = vmul.f32 %v15635_v55, %v17092_v54  ;;  %v7852_v55 = vld [vmem:[#allocation2 + $0x111] sm:$0xff]  ;;  %v19208_v54 = vld [vmem:[#allocation9_spill] sm:$0xff] }
 0x4b2   : > { %v19199_v3 = vmov 0.0   ;;  %v19204_v61 = vld [vmem:[#allocation54_spill] sm:$0xff]  ;;  %v19210_v63 = vld [vmem:[#allocation15_spill] sm:$0xff] }
 0x4b4   : > { %13749 = vmatmul.mubr.msk.f32.vlgmr.msra.gmra.mrb[16].mxu1 %vm4991_vm0, %v16662_v51  ;;  %v7448_v51 = vmul.f32 %v19195_v40, %v16864_v33  ;;  %v19202_v33 = vld [vmem:[#allocation35_spill] sm:$0xff]  ;;  %v19229_v40 = vld [vmem:[#allocation122_spill] sm:$0xff] }
 0x4b5   : > { %13751 = vmatprep.mubr.msk.f32.mxu1 %vm4991_vm0, %v7438_v41  ;;  %13797 = vmatpush3.msra.mxu1 %v7854_v26  ;;  %v19219_v26 = vld [vmem:[#allocation91_spill] sm:$0xff] }
 0x4b6   : > { %13846 = vmatprep.subr.mxu1 %v17592_v32  ;;  %v19223_v41 = vld [vmem:[#allocation107_spill] sm:$0xff] }
 0x4b8   : > { %13752 = vmatmul.mubr.msk.f32.gmra.mrb[18].mxu1 %vm4991_vm0, %v16698_v23  ;;  %v19197_v23 = vld [vmem:[#allocation44_spill] sm:$0xff] }
 0x4b9   : > { %13754 = vmatprep.mubr.msk.f32.mxu1 %vm4991_vm0, %v7440_v47  ;;  %v7466_v29 = vmul.f32 %v19197_v23, %v7434_v62  ;;  %v19225_v47 = vld [vmem:[#allocation115_spill] sm:$0xff]  ;;  %v19238_v23 = vld [vmem:[#allocation92_spill] sm:$0xff] }
 0x4bc   : > { %13755 = vmatmul.mubr.msk.f32.gmra.mrb[20].mxu1 %vm4991_vm0, %v16734_v31  ;;  %v17666_v31 = vld [vmem:[#allocation2 + $0x112] sm:$0xff] }
 0x4bd   : > { %13757 = vmatprep.mubr.msk.f32.mxu1 %vm4991_vm0, %v7442_v5  ;;  %8828 = vst.msk [vmem:[#allocation2 + $0x110] sm:$0xff] %vm444_vm1, %v19199_v3  ;;  %v19226_v5 = vld [vmem:[#allocation118_spill] sm:$0xff] }
 0x4be   : > { %10473 = vst.msk [vmem:[#allocation2 + $0x110] sm:$0xff] %vm444_vm1, %v19199_v3 }
 0x4c0   : > { %13758 = vmatmul.mubr.msk.f32.gmra.mrb[22].mxu1 %vm4991_vm0, %v16770_v25  ;;  %v7853_v25 = vld [vmem:[#allocation2 + $0x119] sm:$0xff] }
 0x4c1   : > { %13760 = vmatprep.mubr.msk.f32.mxu1 %vm4991_vm0, %v7444_v60  ;;  %8829 = vst.msk [vmem:[#allocation2 + $0x118] sm:$0xff] %vm444_vm1, %v19199_v3  ;;  %v19227_v60 = vld [vmem:[#allocation124_spill] sm:$0xff] }
 0x4c2   : > { %8830 = vst.msk [vmem:[#allocation2 + $0x120] sm:$0x3] %vm481_vm9, %v19199_v3 }
 0x4c3   : > { %10474 = vst.msk [vmem:[#allocation2 + $0x118] sm:$0xff] %vm444_vm1, %v19199_v3 }
 0x4c4   : > { %13761 = vmatmul.mubr.msk.f32.gmra.mrb[24].mxu1 %vm4991_vm0, %v16810_v30  ;;  %v19198_v30 = vld [vmem:[#allocation125_spill] sm:$0xff]  ;;  %10475 = vst.msk [vmem:[#allocation2 + $0x120] sm:$0x3] %vm481_vm9, %v19199_v3 }
 0x4c5   : > { %13763 = vmatprep.mubr.msk.f32.mxu1 %vm4991_vm0, %v7446_v27  ;;  %v19228_v27 = vld [vmem:[#allocation40_spill] sm:$0xff] }
 0x4c8   : > { %13764 = vmatmul.mubr.msk.f32.gmra.mrb[26].mxu1 %vm4991_vm0, %v16855_v45  ;;  %v19196_v45 = vld [vmem:[#allocation121_spill] sm:$0xff] }
 0x4c9   : > { %13766 = vmatprep.mubr.msk.f32.mxu1 %vm4991_vm0, %v7448_v51  ;;  %v19230_v51 = vld [vmem:[#allocation25_spill] sm:$0xff] }
 0x4cc   : > { %13767 = vmatmul.mubr.msk.f32.gmra.mrb[28].mxu1 %vm4991_vm0, %v16897_v9  ;;  %v19200_v9 = vld [vmem:[#allocation26_spill] sm:$0xff] }
 0x4cd   : > { %13769 = vmatprep.mubr.msk.f32.mxu1 %vm4991_vm0, %v7450_v48  ;;  %v19231_v48 = vld [vmem:[#allocation32_spill] sm:$0xff] }
 0x4d0   : > { %13770 = vmatmul.mubr.msk.f32.gmra.mrb[30].mxu1 %vm4991_vm0, %v16934_v35  ;;  %v19206_v35 = vld [vmem:[#allocation42_spill] sm:$0xff] }
 0x4d1   : > { %13772 = vmatprep.mubr.msk.f32.mxu1 %vm4991_vm0, %v7452_v24  ;;  %v19232_v24 = vld [vmem:[#allocation49_spill] sm:$0xff] }
 0x4d4   : > { %13773 = vmatmul.mubr.msk.f32.gmra.mrb[0].mxu1 %vm4991_vm0, %v16948_v58  ;;  %v19205_v58 = vld [vmem:[#allocation57_spill] sm:$0xff] }
 0x4d5   : > { %13775 = vmatprep.mubr.msk.f32.mxu1 %vm4991_vm0, %v7454_v37  ;;  %v8241_v37 = vmul.f32 %v19232_v24, %v19231_v48 }
 0x4d8   : > { %13776 = vmatmul.mubr.msk.f32.gmra.mrb[2].mxu1 %vm4991_vm0, %v16982_v28  ;;  %v19209_v28 = vld [vmem:[#allocation11_spill] sm:$0xff] }
 0x4d9   : > { %13778 = vmatprep.mubr.msk.f32.mxu1 %vm4991_vm0, %v7456_v20  ;;  %v19233_v20 = vld [vmem:[#allocation33_spill] sm:$0xff] }
 0x4dc   : > { %13779 = vmatmul.mubr.msk.f32.gmra.mrb[4].mxu1 %vm4991_vm0, %v17014_v1  ;;  %v19211_v1 = vld [vmem:[#allocation17_spill] sm:$0xff] }
 0x4dd   : > { %13781 = vmatprep.mubr.msk.f32.mxu1 %vm4991_vm0, %v7458_v21  ;;  %v19234_v21 = vld [vmem:[#allocation51_spill] sm:$0xff] }
 0x4e0   : > { %13782 = vmatmul.mubr.msk.f32.gmra.mrb[6].mxu1 %vm4991_vm0, %v17046_v34  ;;  %v19215_v34 = vld [vmem:[#allocation74_spill] sm:$0xff] }
 0x4e1   : > { %13784 = vmatprep.mubr.msk.f32.mxu1 %vm4991_vm0, %v7460_v13  ;;  %v8243_v13 = vmul.f32 %v19234_v21, %v19163_v38  ;;  %v19242_v38 = vld [vmem:[#allocation13_spill] sm:$0xff] }
 0x4e4   : > { %13785 = vmatmul.mubr.msk.f32.gmra.mrb[8].mxu1 %vm4991_vm0, %v17086_v4  ;;  %v19217_v4 = vld [vmem:[#allocation81_spill] sm:$0xff] }
 0x4e5   : > { %13787 = vmatprep.mubr.msk.f32.mxu1 %vm4991_vm0, %v7462_v8  ;;  %v19235_v8 = vld [vmem:[#allocation53_spill] sm:$0xff] }
 0x4e8   : > { %13788 = vmatmul.mubr.msk.f32.gmra.mrb[10].mxu1 %vm4991_vm0, %v19196_v45  ;;  %v19237_v45 = vld [vmem:[#allocation52_spill] sm:$0xff] }
 0x4e9   : > { %13790 = vmatprep.mubr.msk.f32.mxu1 %vm4991_vm0, %v7464_v2  ;;  %v19236_v2 = vld [vmem:[#allocation46_spill] sm:$0xff] }
 0x4ea   : > { %v8245_v62 = vmul.f32 %v19237_v45, %v19236_v2 }
 0x4ec   : > { %13791 = vmatmul.mubr.msk.f32.gmra.mrb[12].mxu1 %vm4991_vm0, %v19198_v30  ;;  %v19240_v30 = vld [vmem:[#allocation55_spill] sm:$0xff] }
 0x4ed   : > { %13793 = vmatprep.mubr.msk.f32.mxu1 %vm4991_vm0, %v7466_v29  ;;  %v19239_v29 = vld [vmem:[#allocation7_spill] sm:$0xff] }
 0x4f0   : > { %13794 = vmatmul.mubr.msk.f32.gmra.mrb[14].mxu1 %vm4991_vm0, %v7435_v7  ;;  %v19241_v7 = vld [vmem:[#allocation8_spill] sm:$0xff] }
 0x4f1   : > { %13798 = vmatprep.mubr.msk.f32.mxu1 %vm4991_vm0, %v19200_v9 }
 0x4f4   : > { %13799 = vmatmul.mubr.msk.f32.vlgmr.msra.gmra.mrb[16].mxu1 %vm4991_vm0, %v19201_v44  ;;  %v19244_v44 = vld [vmem:[#allocation14_spill] sm:$0xff] }
 0x4f5   : > { %13801 = vmatprep.mubr.msk.f32.mxu1 %vm4991_vm0, %v19202_v33  ;;  %13847 = vmatpush3.msra.mxu1 %v17592_v32  ;;  %v19224_v32 = vld [vmem:[#allocation112_spill] sm:$0xff]  ;;  %v19245_v33 = vld [vmem:[#allocation95_spill] sm:$0xff] }
 0x4f8   : > { %13802 = vmatmul.mubr.msk.f32.gmra.mrb[18].mxu1 %vm4991_vm0, %v19203_v15  ;;  %v19246_v15 = vld [vmem:[#allocation61_spill] sm:$0xff] }
 0x4f9   : > { %13804 = vmatprep.mubr.msk.f32.mxu1 %vm4991_vm0, %v19204_v61  ;;  %v8251_v61 = vmul.f32 %v19246_v15, %v19245_v33  ;;  %v19271_v15 = vld [vmem:[#allocation130_spill] sm:$0xff] }
 0x4fc   : > { %13805 = vmatmul.mubr.msk.f32.gmra.mrb[20].mxu1 %vm4991_vm0, %v19205_v58  ;;  %v19247_v58 = vld [vmem:[#allocation59_spill] sm:$0xff] }
 0x4fd   : > { %13807 = vmatprep.mubr.msk.f32.mxu1 %vm4991_vm0, %v19206_v35  ;;  %v19248_v35 = vld [vmem:[#allocation68_spill] sm:$0xff] }
 0x500   : > { %13808 = vmatmul.mubr.msk.f32.gmra.mrb[22].mxu1 %vm4991_vm0, %v19207_v6  ;;  %v19249_v6 = vld [vmem:[#allocation64_spill] sm:$0xff] }
 0x501   : > { %13810 = vmatprep.mubr.msk.f32.mxu1 %vm4991_vm0, %v19208_v54  ;;  %v8253_v54 = vmul.f32 %v19249_v6, %v19248_v35  ;;  %v19272_v6 = vld [vmem:[#allocation131_spill] sm:$0xff] }
 0x504   : > { %13811 = vmatmul.mubr.msk.f32.gmra.mrb[24].mxu1 %vm4991_vm0, %v19209_v28  ;;  %v19250_v28 = vld [vmem:[#allocation69_spill] sm:$0xff] }
 0x505   : > { %13813 = vmatprep.mubr.msk.f32.mxu1 %vm4991_vm0, %v19210_v63  ;;  %v19251_v63 = vld [vmem:[#allocation77_spill] sm:$0xff] }
 0x508   : > { %13814 = vmatmul.mubr.msk.f32.gmra.mrb[26].mxu1 %vm4991_vm0, %v19211_v1  ;;  %v19252_v1 = vld [vmem:[#allocation67_spill] sm:$0xff] }
 0x509   : > { %13816 = vmatprep.mubr.msk.f32.mxu1 %vm4991_vm0, %v19212_v12  ;;  %v8255_v12 = vmul.f32 %v19252_v1, %v19251_v63  ;;  %v19273_v63 = vld [vmem:[#allocation132_spill] sm:$0xff] }
 0x50c   : > { %13817 = vmatmul.mubr.msk.f32.gmra.mrb[28].mxu1 %vm4991_vm0, %v19213_v11  ;;  %v19253_v11 = vld [vmem:[#allocation78_spill] sm:$0xff] }
 0x50d   : > { %13819 = vmatprep.mubr.msk.f32.mxu1 %vm4991_vm0, %v19214_v59  ;;  %v19254_v59 = vld [vmem:[#allocation70_spill] sm:$0xff] }
 0x510   : > { %13820 = vmatmul.mubr.msk.f32.gmra.mrb[30].mxu1 %vm4991_vm0, %v19215_v34  ;;  %v8257_v34 = vmul.f32 %v19254_v59, %v19183_v50  ;;  %v19256_v50 = vld [vmem:[#allocation79_spill] sm:$0xff]  ;;  %v19274_v59 = vld [vmem:[#allocation133_spill] sm:$0xff] }
 0x511   : > { %13822 = vmatprep.mubr.msk.f32.mxu1 %vm4991_vm0, %v19216_v10  ;;  %v19255_v10 = vld [vmem:[#allocation73_spill] sm:$0xff] }
 0x514   : > { %13823 = vmatmul.mubr.msk.f32.gmra.mrb[0].mxu1 %vm4991_vm0, %v19217_v4  ;;  %v8259_v4 = vmul.f32 %v19255_v10, %v19186_v22  ;;  %v19258_v22 = vld [vmem:[#allocation119_spill] sm:$0xff] }
 0x515   : > { %13825 = vmatprep.mubr.msk.f32.mxu1 %vm4991_vm0, %v19218_v46  ;;  %v8261_v46 = vmul.f32 %v19187_v0, %v19189_v57  ;;  %v19261_v0 = vld [vmem:[#allocation127_spill] sm:$0xff] }
 0x516   : > { %v8267_v57 = vmul.f32 %v19105_v56, %v19261_v0  ;;  %v8627_v56 = vld [vmem:[%s18531_s5 + $0x8] sm:$0xff] }
 0x517   : > { %8713 = vmatprep.mubr.f32.mxu0 %v8627_v56 }
 0x518   : > { %13826 = vmatmul.mubr.msk.f32.gmra.mrb[2].mxu1 %vm4991_vm0, %v19219_v26  ;;  %v8263_v26 = vmul.f32 %v19256_v50, %v19104_v49  ;;  %v8271_v49 = vmul.f32 %v19110_v19, %v17671_v39 }
 0x519   : > { %13828 = vmatprep.mubr.msk.f32.mxu1 %vm4991_vm0, %v19220_v17  ;;  %v19259_v17 = vld [vmem:[#allocation82_spill] sm:$0xff] }
 0x51c   : > { %13829 = vmatmul.mubr.msk.f32.gmra.mrb[4].mxu1 %vm4991_vm0, %v19221_v43  ;;  %v8265_v43 = vmul.f32 %v19259_v17, %v19258_v22 }
 0x51d   : > { %13831 = vmatprep.mubr.msk.f32.mxu1 %vm4991_vm0, %v19222_v42 }
 0x520   : > { %13832 = vmatmul.mubr.msk.f32.gmra.mrb[6].mxu1 %vm4991_vm0, %v19223_v41  ;;  %v19263_v41 = vld [vmem:[#allocation129_spill] sm:$0xff] }
 0x521   : > { %13834 = vmatprep.mubr.msk.f32.mxu1 %vm4991_vm0, %v19224_v32 }
 0x524   : > { %13835 = vmatmul.mubr.msk.f32.gmra.mrb[8].mxu1 %vm4991_vm0, %v19225_v47 }
 0x525   : > { %13837 = vmatprep.mubr.msk.f32.mxu1 %vm4991_vm0, %v19226_v5 }
 0x528   : > { %13838 = vmatmul.mubr.msk.f32.gmra.mrb[10].mxu1 %vm4991_vm0, %v19227_v60  ;;  %v19264_v60 = vld [vmem:[#allocation110_spill] sm:$0xff] }
 0x529   : > { %13840 = vmatprep.mubr.msk.f32.mxu1 %vm4991_vm0, %v19228_v27 }
 0x52c   : > { %13841 = vmatmul.mubr.msk.f32.gmra.mrb[12].mxu1 %vm4991_vm0, %v19229_v40 }
 0x52d   : > { %13843 = vmatprep.mubr.msk.f32.mxu1 %vm4991_vm0, %v7852_v55  ;;  %v8247_v55 = vmul.f32 %v19240_v30, %v19239_v29 }
 0x530   : > { %13844 = vmatmul.mubr.msk.f32.gmra.mrb[14].mxu1 %vm4991_vm0, %v7853_v25  ;;  %v19243_v25 = vld [vmem:[#allocation58_spill] sm:$0xff] }
 0x531   : > { %13848 = vmatprep.mubr.msk.f32.mxu1 %vm4991_vm0, %v19230_v51  ;;  %v8249_v9 = vmul.f32 %v19243_v25, %v19242_v38  ;;  %v19265_v51 = vld [vmem:[#allocation85_spill] sm:$0xff] }
 0x534   : > { %13849 = vmatmul.mubr.msk.f32.vlgmr.msra.gmra.mrb[16].mxu1 %vm4991_vm0, %v8241_v37 }
 0x535   : > { %13851 = vmatprep.mubr.msk.f32.mxu1 %vm4991_vm0, %v19233_v20  ;;  %v19266_v20 = vld [vmem:[#allocation116_spill] sm:$0xff] }
 0x538   : > { %13852 = vmatmul.mubr.msk.f32.gmra.mrb[18].mxu1 %vm4991_vm0, %v8243_v13 }
 0x539   : > { %13854 = vmatprep.mubr.msk.f32.mxu1 %vm4991_vm0, %v19235_v8  ;;  %v19267_v8 = vld [vmem:[#allocation86_spill] sm:$0xff] }
 0x53c   : > { %13855 = vmatmul.mubr.msk.f32.gmra.mrb[20].mxu1 %vm4991_vm0, %v8245_v62 }
 0x53d   : > { %13857 = vmatprep.mubr.msk.f32.mxu1 %vm4991_vm0, %v19238_v23  ;;  %v19268_v23 = vld [vmem:[#allocation117_spill] sm:$0xff] }
 0x540   : > { %13858 = vmatmul.mubr.msk.f32.gmra.mrb[22].mxu1 %vm4991_vm0, %v8247_v55  ;;  %v19269_v55 = vld [vmem:[#allocation89_spill] sm:$0xff] }
 0x541   : > { %13860 = vmatprep.mubr.msk.f32.mxu1 %vm4991_vm0, %v19241_v7 }
 0x544   : > { %13861 = vmatmul.mubr.msk.f32.gmra.mrb[24].mxu1 %vm4991_vm0, %v8249_v9  ;;  %v19270_v9 = vld [vmem:[#allocation37_spill] sm:$0xff] }
 0x545   : > { %13863 = vmatprep.mubr.msk.f32.mxu1 %vm4991_vm0, %v19244_v44 }
 0x548   : > { %13864 = vmatmul.mubr.msk.f32.gmra.mrb[26].mxu1 %vm4991_vm0, %v8251_v61 }
 0x549   : > { %13866 = vmatprep.mubr.msk.f32.mxu1 %vm4991_vm0, %v19247_v58 }
 0x54c   : > { %13867 = vmatmul.mubr.msk.f32.gmra.mrb[28].mxu1 %vm4991_vm0, %v8253_v54 }
 0x54d   : > { %13869 = vmatprep.mubr.msk.f32.mxu1 %vm4991_vm0, %v19250_v28 }
 0x550   : > { %13870 = vmatmul.mubr.msk.f32.gmra.mrb[30].mxu1 %vm4991_vm0, %v8255_v12 }
 0x551   : > { %13872 = vmatprep.mubr.msk.f32.mxu1 %vm4991_vm0, %v19253_v11 }
 0x554   : > { %13873 = vmatmul.mubr.msk.f32.gmra.mrb[0].mxu1 %vm4991_vm0, %v8257_v34 }
 0x555   : > { %13875 = vmatprep.mubr.msk.f32.mxu1 %vm4991_vm0, %v19185_v16  ;;  %v19257_v16 = vld [vmem:[#allocation111_spill] sm:$0xff] }
 0x558   : > { %13876 = vmatmul.mubr.msk.f32.gmra.mrb[2].mxu1 %vm4991_vm0, %v8259_v4  ;;  %v19275_v4 = vld [vmem:[#allocation134_spill] sm:$0xff] }
 0x559   : > { %13878 = vmatprep.mubr.msk.f32.mxu1 %vm4991_vm0, %v19188_v14  ;;  %v19260_v14 = vld [vmem:[#allocation120_spill] sm:$0xff] }
 0x55c   : > { %13879 = vmatmul.mubr.msk.f32.gmra.mrb[4].mxu1 %vm4991_vm0, %v8261_v46 }
 0x55d   : > { %13881 = vmatprep.mubr.msk.f32.mxu1 %vm4991_vm0, %v19191_v52  ;;  %v8269_v52 = vmul.f32 %v19108_v53, %v19194_v18  ;;  %v9010_v53 = vld [vmem:[%s18532_s6 + $0x18] sm:$0xff] }
 0x560   : > { %13882 = vmatmul.mubr.msk.f32.gmra.mrb[6].mxu1 %vm4991_vm0, %v8263_v26 }
 0x561   : > { %13884 = vmatprep.mubr.msk.f32.mxu1 %vm4991_vm0, %v19257_v16  ;;  %v19276_v16 = vld [vmem:[#allocation135_spill] sm:$0xff] }
 0x564   : > { %13885 = vmatmul.mubr.msk.f32.gmra.mrb[8].mxu1 %vm4991_vm0, %v8265_v43  ;;  %v19277_v43 = vld [vmem:[#allocation136_spill] sm:$0xff] }
 0x565   : > { %13887 = vmatprep.mubr.msk.f32.mxu1 %vm4991_vm0, %v19260_v14 }
 0x568   : > { %13888 = vmatmul.mubr.msk.f32.gmra.mrb[10].mxu1 %vm4991_vm0, %v8267_v57 }
 0x569   : > { %13890 = vmatprep.mubr.msk.f32.mxu1 %vm4991_vm0, %v19193_v36  ;;  %v9009_v36 = vld [vmem:[%s18532_s6 + $0x10] sm:$0xff] }
 0x56a   : > { %v14161_v18 = vpack.c.bf16 %v9010_v53, %v9009_v36 }
 0x56c   : > { %13891 = vmatmul.mubr.msk.f32.gmra.mrb[12].mxu1 %vm4991_vm0, %v8269_v52  ;;  %14162 = vmatprep.subr.bf16.mxu1 %v14161_v18 }
 0x56d   : > { %13893 = vmatprep.mubr.msk.f32.mxu1 %vm4991_vm0, %v17666_v31  ;;  %14164 = vmatpush3.bf16.msra.mxu1 %v14161_v18  ;;  %v19262_v31 = vld [vmem:[#allocation128_spill] sm:$0xff] }
 0x570   : > { %13894 = vmatmul.mubr.msk.f32.gmra.mrb[14].mxu1 %vm4991_vm0, %v8271_v49 }
 0x607   : > { %v13850_v19 = vpop.f32.mrb[16].mxu1 }
 0x608   : > { %v14254_v39 = vadd.f32 %v13850_v19, %v19262_v31  ;;  %v8435_v42 = vpop.f32.mrb[17].mxu1 }
 0x609   : > { %v14255_v32 = vadd.f32 %v8435_v42, %v19263_v41 }
 0x60b   : > { %v14131_v47 = vpack.c.bf16 %v14254_v39, %v14255_v32  ;;  %v13853_v5 = vpop.f32.mrb[18].mxu1 }
 0x60c   : > { %v14256_v27 = vadd.f32 %v13853_v5, %v19264_v60  ;;  %v8445_v40 = vpop.f32.mrb[19].mxu1 }
 0x60d   : > { %v14257_v48 = vadd.f32 %v8445_v40, %v19265_v51 }
 0x60f   : > { %v14135_v24 = vpack.c.bf16 %v14256_v27, %v14257_v48  ;;  %v13856_v37 = vpop.f32.mrb[20].mxu1 }
 0x610   : > { %v14258_v21 = vadd.f32 %v13856_v37, %v19266_v20  ;;  %v8455_v13 = vpop.f32.mrb[21].mxu1 }
 0x611   : > { %v14259_v2 = vadd.f32 %v8455_v13, %v19267_v8  ;;  %v8626_v13 = vld [vmem:[%s18531_s5] sm:$0xff]  ;;  %v8629_v8 = vld [vmem:[%s18531_s5 + $0x18] sm:$0xff] }
 0x613   : > { %v14139_v45 = vpack.c.bf16 %v14258_v21, %v14259_v2  ;;  %v13859_v62 = vpop.f32.mrb[22].mxu1  ;;  %v8628_v2 = vld [vmem:[%s18531_s5 + $0x10] sm:$0xff] }
 0x614   : > { %v14260_v29 = vadd.f32 %v13859_v62, %v19268_v23  ;;  %v8465_v30 = vpop.f32.mrb[23].mxu1  ;;  %v8630_v62 = vld [vmem:[%s18531_s5 + $0x20] sm:$0xff]  ;;  %v8633_v23 = vld [vmem:[%s18531_s5 + $0x38] sm:$0xff] }
 0x615   : > { %v14261_v7 = vadd.f32 %v8465_v30, %v19269_v55  ;;  %v8635_v30 = vld [vmem:[%s18531_s5 + $0x48] sm:$0xff]  ;;  %v8634_v55 = vld [vmem:[%s18531_s5 + $0x40] sm:$0xff] }
 0x617   : > { %v14143_v38 = vpack.c.bf16 %v14260_v29, %v14261_v7  ;;  %v13862_v25 = vpop.f32.mrb[24].mxu1  ;;  %v8632_v29 = vld [vmem:[%s18531_s5 + $0x30] sm:$0xff]  ;;  %v8637_v7 = vld [vmem:[%s18531_s5 + $0x58] sm:$0xff] }
 0x618   : > { %v14262_v44 = vadd.f32 %v13862_v25, %v19270_v9  ;;  %v8475_v33 = vpop.f32.mrb[25].mxu1  ;;  %v8639_v25 = vld [vmem:[%s18531_s5 + $0x68] sm:$0xff]  ;;  %v8638_v9 = vld [vmem:[%s18531_s5 + $0x60] sm:$0xff] }
 0x619   : > { %v14263_v61 = vadd.f32 %v8475_v33, %v19271_v15  ;;  %v8640_v33 = vld [vmem:[%s18531_s5 + $0x70] sm:$0xff]  ;;  %v9001_v15 = vld [vmem:[#allocation2 + $0x1] sm:$0xff] }
 0x61a   : > { %13900 = vmatprep.mubr.msk.f32.mxu1 %vm444_vm1, %v9001_v15 }
 0x61b   : > { %v14147_v58 = vpack.c.bf16 %v14262_v44, %v14263_v61  ;;  %v13865_v35 = vpop.f32.mrb[26].mxu1  ;;  %v8641_v44 = vld [vmem:[%s18531_s5 + $0x78] sm:$0xff]  ;;  %v8999_v61 = vld [vmem:[%s18532_s6] sm:$0xff] }
 0x61c   : > { %v14264_v54 = vadd.f32 %v13865_v35, %v19272_v6  ;;  %v8485_v28 = vpop.f32.mrb[27].mxu1 }
 0x61d   : > { %v14265_v1 = vadd.f32 %v8485_v28, %v19273_v63 }
 0x61f   : > { %v14151_v12 = vpack.c.bf16 %v14264_v54, %v14265_v1  ;;  %v13868_v11 = vpop.f32.mrb[28].mxu1  ;;  %v17910_v54 = vld [vmem:[%s18530_s4] ss:$0 sm:$0xff] }
 0x620   : > { %v14266_v34 = vadd.f32 %v13868_v11, %v19274_v59  ;;  %v8495_v10 = vpop.f32.mrb[29].mxu1 }
 0x621   : > { %v14267_v46 = vadd.f32 %v8495_v10, %v19275_v4 }
 0x623   : > { %v14155_v50 = vpack.c.bf16 %v14266_v34, %v14267_v46  ;;  %v13871_v26 = vpop.f32.mrb[30].mxu1 }
 0x624   : > { %v14268_v22 = vadd.f32 %v13871_v26, %v19276_v16  ;;  %v8505_v17 = vpop.f32.mrb[31].mxu1 }
 0x625   : > { %v14269_v14 = vadd.f32 %v8505_v17, %v19277_v43 }
 0x627   : > { %v14159_v0 = vpack.c.bf16 %v14268_v22, %v14269_v14  ;;  %v13874_v57 = vpop.f32.mrb[0].mxu1 }
 0x628   : > { %v8515_v52 = vpop.f32.mrb[1].mxu1 }
 0x629   : > { %v14129_v49 = vpack.c.bf16 %v13874_v57, %v8515_v52 }
 0x62b   : > { %v13877_v56 = vpop.f32.mrb[2].mxu1  ;;  %14130 = vmatprep.subr.bf16.mxu0 %v14129_v49 }
 0x62c   : > { %v8525_v36 = vpop.f32.mrb[3].mxu1  ;;  %14132 = vmatpush3.bf16.msra.mxu0 %v14131_v47 }
 0x62d   : > { %v14133_v53 = vpack.c.bf16 %v13877_v56, %v8525_v36 }
 0x62f   : > { %v13880_v18 = vpop.f32.mrb[4].mxu1  ;;  %14134 = vmatprep.subr.bf16.mxu0 %v14133_v53 }
 0x630   : > { %v8535_v19 = vpop.f32.mrb[5].mxu1  ;;  %14136 = vmatpush3.bf16.msra.mxu0 %v14135_v24 }
 0x631   : > { %v14137_v31 = vpack.c.bf16 %v13880_v18, %v8535_v19 }
 0x633   : > { %v13883_v39 = vpop.f32.mrb[6].mxu1  ;;  %14138 = vmatprep.subr.bf16.mxu0 %v14137_v31 }
 0x634   : > { %v8545_v42 = vpop.f32.mrb[7].mxu1  ;;  %14140 = vmatpush3.bf16.msra.mxu0 %v14139_v45  ;;  %v8631_v45 = vld [vmem:[%s18531_s5 + $0x28] sm:$0xff] }
 0x635   : > { %v14141_v41 = vpack.c.bf16 %v13883_v39, %v8545_v42 }
 0x637   : > { %v13886_v32 = vpop.f32.mrb[8].mxu1  ;;  %14142 = vmatprep.subr.bf16.mxu0 %v14141_v41 }
 0x638   : > { %v8555_v5 = vpop.f32.mrb[9].mxu1  ;;  %14144 = vmatpush3.bf16.msra.mxu0 %v14143_v38  ;;  %v8636_v38 = vld [vmem:[%s18531_s5 + $0x50] sm:$0xff] }
 0x639   : > { %v14145_v60 = vpack.c.bf16 %v13886_v32, %v8555_v5 }
 0x63b   : > { %v13889_v27 = vpop.f32.mrb[10].mxu1  ;;  %14146 = vmatprep.subr.bf16.mxu0 %v14145_v60 }
 0x63c   : > { %v8565_v40 = vpop.f32.mrb[11].mxu1  ;;  %14148 = vmatpush3.bf16.msra.mxu0 %v14147_v58  ;;  %v9000_v58 = vld [vmem:[%s18532_s6 + $0x8] sm:$0xff] }
 0x63d   : > { %v14149_v47 = vpack.c.bf16 %v13889_v27, %v8565_v40  ;;  %v17904_v35 = vpack.c.bf16 %v9000_v58, %v8999_v61  ;;  %v19278_v61 = vld [vmem:[#allocation43_spill] sm:$0xff] }
 0x63e   : > { %v8850_v58 = vand.u32 7, %v19278_v61 }
 0x63f   : > { %v13892_v51 = vpop.f32.mrb[12].mxu1  ;;  %14150 = vmatprep.subr.bf16.mxu0 %v14149_v47  ;;  %14166 = vmatprep.subr.bf16.mxu1 %v17904_v35 }
 0x640   : > { %v8575_v48 = vpop.f32.mrb[13].mxu1  ;;  %14152 = vmatpush3.bf16.msra.mxu0 %v14151_v12  ;;  %vm8936_vm2 = vcmp.gt.s32.totalorder %v8850_v58, 0  ;;  %vm8960_vm11 = vcmp.lt.s32.totalorder %v8850_v58, 7 }
 0x641   : > { %v14153_v24 = vpack.c.bf16 %v13892_v51, %v8575_v48 }
 0x643   : > { %v13895_v37 = vpop.f32.mrb[14].mxu1  ;;  %14154 = vmatprep.subr.bf16.mxu0 %v14153_v24 }
 0x644   : > { %v8585_v20 = vpop.f32.mrb[15].mxu1  ;;  %14156 = vmatpush3.bf16.msra.mxu0 %v14155_v50 }
 0x645   : > { %v14157_v21 = vpack.c.bf16 %v13895_v37, %v8585_v20 }
 0x647   : > { %14158 = vmatprep.subr.bf16.mxu0 %v14157_v21  ;;  %v9285_v21 = vld [vmem:[%s18532_s6 + $0x20] sm:$0xff] }
 0x648   : > { %14160 = vmatpush3.bf16.msra.mxu0 %v14159_v0 }
 0x64b   : > { %8714 = vmatmul.mubr.f32.vlgmr.msra.gmra.mrb[48].mxu0 %v8626_v13  ;;  %v9286_v13 = vld [vmem:[%s18532_s6 + $0x28] sm:$0xff] }
 0x64c   : > { %8718 = vmatprep.mubr.f32.mxu0 %v8629_v8 }
 0x64f   : > { %8719 = vmatmul.mubr.f32.gmra.mrb[50].mxu0 %v8628_v2 }
 0x650   : > { %8723 = vmatprep.mubr.f32.mxu0 %v8631_v45 }
 0x653   : > { %8724 = vmatmul.mubr.f32.gmra.mrb[52].mxu0 %v8630_v62 }
 0x654   : > { %8728 = vmatprep.mubr.f32.mxu0 %v8633_v23 }
 0x657   : > { %8729 = vmatmul.mubr.f32.gmra.mrb[54].mxu0 %v8632_v29 }
 0x658   : > { %8733 = vmatprep.mubr.f32.mxu0 %v8635_v30  ;;  %v17927_v30 = vpack.c.bf16 %v9286_v13, %v9285_v21 }
 0x65b   : > { %8734 = vmatmul.mubr.f32.gmra.mrb[56].mxu0 %v8634_v55 }
 0x65c   : > { %8738 = vmatprep.mubr.f32.mxu0 %v8637_v7 }
 0x65f   : > { %8739 = vmatmul.mubr.f32.gmra.mrb[58].mxu0 %v8636_v38 }
 0x660   : > { %8743 = vmatprep.mubr.f32.mxu0 %v8639_v25 }
 0x663   : > { %8744 = vmatmul.mubr.f32.gmra.mrb[60].mxu0 %v8638_v9  ;;  %v17931_v9 = vld [vmem:[#allocation2] sm:$0xff] }
 0x664   : > { %8748 = vmatprep.mubr.f32.mxu0 %v8641_v44 }
 0x667   : > { %8749 = vmatmul.mubr.f32.gmra.mrb[62].mxu0 %v8640_v33 }
 0x71e   : > { %v12833_v6 = vpop.f32.mrb[48].mxu0 }
 0x71f   : > { %v12834_v28 = vpop.f32.mrb[49].mxu0 }
 0x720   : > { %v12835_v63 = vadd.f32 %v12834_v28, %v12833_v6 }
 0x722   : > { %v8716_v1 = vadd.f32 %v12835_v63, %v17910_v54  ;;  %v12836_v12 = vpop.f32.mrb[50].mxu0 }
 0x723   : > { %v12837_v11 = vpop.f32.mrb[51].mxu0 }
 0x724   : > { %v8762_v59 = vmul.f32 0.70710677, %v8716_v1  ;;  %v12838_v34 = vadd.f32 %v12837_v11, %v12836_v12  ;;  %v8754_v53 = vmul.f32 0.5, %v8716_v1 }
 0x726   : > { %14952 = verf.f32 %v8762_v59  ;;  %v8721_v10 = vadd.f32 %v12838_v34, %v17910_v54  ;;  %v12839_v4 = vpop.f32.mrb[52].mxu0 }
 0x727   : > { %v12840_v46 = vpop.f32.mrb[53].mxu0 }
 0x728   : > { %v8763_v50 = vmul.f32 0.70710677, %v8721_v10  ;;  %v12841_v26 = vadd.f32 %v12840_v46, %v12839_v4  ;;  %v8755_v60 = vmul.f32 0.5, %v8721_v10 }
 0x72a   : > { %14954 = verf.f32 %v8763_v50  ;;  %v8726_v16 = vadd.f32 %v12841_v26, %v17910_v54  ;;  %v12842_v22 = vpop.f32.mrb[54].mxu0 }
 0x72b   : > { %v12843_v17 = vpop.f32.mrb[55].mxu0 }
 0x72c   : > { %v8764_v43 = vmul.f32 0.70710677, %v8726_v16  ;;  %v12844_v14 = vadd.f32 %v12843_v17, %v12842_v22  ;;  %v8756_v8 = vmul.f32 0.5, %v8726_v16  ;;  %v17961_v16 = vsel %vm8936_vm2, 1.0, %v19199_v3 }
 0x72e   : > { %14956 = verf.f32 %v8764_v43  ;;  %v8731_v0 = vadd.f32 %v12844_v14, %v17910_v54  ;;  %v12845_v57 = vpop.f32.mrb[56].mxu0 }
 0x72f   : > { %v12846_v52 = vpop.f32.mrb[57].mxu0 }
 0x730   : > { %v14953_v49 = vpop.eup %14952  ;;  %v8765_v56 = vmul.f32 0.70710677, %v8731_v0  ;;  %v12847_v36 = vadd.f32 %v12846_v52, %v12845_v57  ;;  %v8757_v33 = vmul.f32 0.5, %v8731_v0  ;;  %v19280_v0 = vld [vmem:[#allocation45_spill] sm:$0xff] }
 0x731   : > { %v8778_v18 = vadd.f32 1.0, %v14953_v49  ;;  %v8864_v57 = vand.u32 7, %v19280_v0  ;;  %v10190_v0 = vld [vmem:[#allocation2 + $0x4a] sm:$0xff] }
 0x732   : > { %14958 = verf.f32 %v8765_v56  ;;  %v8736_v19 = vadd.f32 %v12847_v36, %v17910_v54  ;;  %v12848_v31 = vpop.f32.mrb[58].mxu0 }
 0x733   : > { %v8786_v39 = vmul.f32 %v8778_v18, %v8754_v53  ;;  %v12849_v42 = vpop.f32.mrb[59].mxu0  ;;  %v19281_v53 = vld [vmem:[#allocation28_spill] sm:$0xff]  ;;  %vm8938_vm12 = vcmp.gt.s32.totalorder %v8864_v57, 0  ;;  %vm8962_vm3 = vcmp.lt.s32.totalorder %v8864_v57, 7  ;;  %v9440_v57 = vld [vmem:[%s18532_s6 + $0x30] sm:$0xff] }
 0x734   : > { %v14955_v41 = vpop.eup %14954  ;;  %v8766_v32 = vmul.f32 0.70710677, %v8736_v19  ;;  %v12850_v5 = vadd.f32 %v12849_v42, %v12848_v31  ;;  %v8758_v34 = vmul.f32 0.5, %v8736_v19  ;;  %v8843_v18 = vand.u32 7, %v19281_v53  ;;  %v9588_v53 = vld [vmem:[%s18532_s6 + $0x48] sm:$0xff] }
 0x735   : > { %8831 = vst.msk [vmem:[#allocation2 + $0x9] sm:$0xff] %vm444_vm1, %v8786_v39  ;;  %v8779_v27 = vadd.f32 1.0, %v14955_v41  ;;  %v18017_v21 = vsel %vm8938_vm12, 1.0, %v19199_v3 }
 0x736   : > { %14960 = verf.f32 %v8766_v32  ;;  %v8741_v40 = vadd.f32 %v12850_v5, %v17910_v54  ;;  %v12851_v47 = vpop.f32.mrb[60].mxu0  ;;  %v17991_v32 = vsel %vm8960_vm11, 1.0, %v19199_v3  ;;  %v19282_v5 = vld [vmem:[#allocation34_spill] sm:$0xff]  ;;  %vm18012_vm14 = vcmp.gt.s32.totalorder %v8843_v18, 0 }
 0x737   : > { %v8787_v51 = vmul.f32 %v8779_v27, %v8755_v60  ;;  %v12852_v48 = vpop.f32.mrb[61].mxu0  ;;  %v8871_v60 = vand.u32 7, %v19282_v5  ;;  %vm8959_vm2 = vcmp.lt.s32.totalorder %v8843_v18, 7  ;;  %v9587_v18 = vld [vmem:[%s18532_s6 + $0x40] sm:$0xff] }
 0x738   : > { %v14957_v24 = vpop.eup %14956  ;;  %v8767_v37 = vmul.f32 0.70710677, %v8741_v40  ;;  %v12853_v20 = vadd.f32 %v12852_v48, %v12851_v47  ;;  %v8759_v43 = vmul.f32 0.5, %v8741_v40  ;;  %v18197_v61 = vsel %vm8959_vm2, 1.0, %v19199_v3 }
 0x739   : > { %8832 = vst.msk [vmem:[#allocation2 + $0x11] sm:$0xff] %vm444_vm1, %v8787_v51  ;;  %v8780_v2 = vadd.f32 1.0, %v14957_v24  ;;  %vm8939_vm15 = vcmp.gt.s32.totalorder %v8871_v60, 0  ;;  %vm18072_vm6 = vcmp.lt.s32.totalorder %v8871_v60, 7 }
 0x73a   : > { %14962 = verf.f32 %v8767_v37  ;;  %v8746_v45 = vadd.f32 %v12853_v20, %v17910_v54  ;;  %v12854_v62 = vpop.f32.mrb[62].mxu0  ;;  %v18116_v27 = vsel %vm18072_vm6, 1.0, %v19199_v3 }
 0x73b   : > { %v8788_v23 = vmul.f32 %v8780_v2, %v8756_v8  ;;  %v12855_v29 = vpop.f32.mrb[63].mxu0 }
 0x73c   : > { %v14959_v55 = vpop.eup %14958  ;;  %v8768_v7 = vmul.f32 0.70710677, %v8746_v45  ;;  %v12856_v38 = vadd.f32 %v12855_v29, %v12854_v62  ;;  %v17929_v25 = vld [vmem:[#allocation2 + $0x9] sm:$0xff]  ;;  %v8760_v42 = vmul.f32 0.5, %v8746_v45  ;;  %v19287_v45 = vld [vmem:[#allocation47_spill] sm:$0xff] }
 0x73d   : > { %v17933_v44 = vld [vmem:[#allocation2 + $0x2] sm:$0xff]  ;;  %8833 = vst.msk [vmem:[#allocation2 + $0x19] sm:$0xff] %vm444_vm1, %v8788_v23  ;;  %v8781_v15 = vadd.f32 1.0, %v14959_v55  ;;  %13901 = vmatmul.mubr.msk.f32.vlgmr.msra.gmra.mrb[32].mxu1 %vm444_vm1, %v17929_v25  ;;  %v8878_v62 = vand.u32 7, %v19287_v45  ;;  %v19288_v23 = vld [vmem:[#allocation50_spill] sm:$0xff] }
 0x73e   : > { %10439 = vst.msk [vmem:[#allocation2] sm:$0xff] %vm444_vm1, %v19199_v3  ;;  %14964 = verf.f32 %v8768_v7  ;;  %v8751_v6 = vadd.f32 %v12856_v38, %v17910_v54  ;;  %14168 = vmatpush3.bf16.msra.mxu1 %v17904_v35  ;;  %v17946_v11 = vld [vmem:[#allocation2 + $0x8] sm:$0xff]  ;;  %v19279_v35 = vld [vmem:[#allocation31_spill] sm:$0xff]  ;;  %v8892_v29 = vand.u32 7, %v19288_v23 }
 0x73f   : > { %v8789_v28 = vmul.f32 %v8781_v15, %v8757_v33  ;;  %14170 = vmatprep.subr.bf16.mxu1 %v17927_v30  ;;  %v8857_v54 = vand.u32 7, %v19279_v35  ;;  %v18046_v15 = vsel %vm18012_vm14, 1.0, %v19199_v3  ;;  %vm18062_vm5 = vcmp.gt.s32.totalorder %v8878_v62, 0 }
 0x740   : > { %v14961_v63 = vpop.eup %14960  ;;  %v8769_v1 = vmul.f32 0.70710677, %v8751_v6  ;;  %v17944_v12 = vld [vmem:[#allocation2 + $0x11] sm:$0xff]  ;;  %v8761_v48 = vmul.f32 0.5, %v8751_v6  ;;  %vm8966_vm4 = vcmp.lt.s32.totalorder %v8892_v29, 7  ;;  %v8991_v6 = vmul.f32 %v18046_v15, %v17931_v9 }
 0x741   : > { %v17948_v59 = vld [vmem:[#allocation2 + $0xa] sm:$0xff]  ;;  %8834 = vst.msk [vmem:[#allocation2 + $0x21] sm:$0xff] %vm444_vm1, %v8789_v28  ;;  %v8782_v10 = vadd.f32 1.0, %v14961_v63  ;;  %13903 = vmatprep.mubr.msk.f32.mxu1 %vm444_vm1, %v17944_v12  ;;  %vm8937_vm10 = vcmp.gt.s32.totalorder %v8857_v54, 0  ;;  %vm17996_vm13 = vcmp.lt.s32.totalorder %v8857_v54, 7  ;;  %v18068_v9 = vsel %vm8962_vm3, 1.0, %v19199_v3 }
 0x742   : > { %10440 = vst.msk [vmem:[#allocation2 + $0x8] sm:$0xff] %vm444_vm1, %v19199_v3  ;;  %14966 = verf.f32 %v8769_v1  ;;  %v17956_v46 = vld [vmem:[#allocation2 + $0x10] sm:$0xff]  ;;  %v17981_v19 = vsel %vm8937_vm10, 1.0, %v19199_v3  ;;  %v18031_v55 = vsel %vm17996_vm13, 1.0, %v19199_v3  ;;  %v18060_v1 = vsel %vm8939_vm15, 1.0, %v19199_v3 }
 0x743   : > { %v8790_v4 = vmul.f32 %v8782_v10, %v8758_v34  ;;  %v19291_v10 = vld [vmem:[#allocation38_spill] sm:$0xff]  ;;  %v18111_v60 = vsel %vm18062_vm5, 1.0, %v19199_v3  ;;  %vm8942_vm8 = vcmp.gt.s32.totalorder %v8892_v29, 0  ;;  %vm8964_vm9 = vcmp.lt.s32.totalorder %v8878_v62, 7 }
 0x744   : > { %v14963_v50 = vpop.eup %14962  ;;  %v17958_v26 = vld [vmem:[#allocation2 + $0x19] sm:$0xff]  ;;  %v8885_v35 = vand.u32 7, %v19291_v10  ;;  %v8993_v45 = vmul.f32 %v17981_v19, %v17956_v46  ;;  %vm10347_vm10 = vcmask 523264   ;;  %vm15038_vm15 = vmmov 0  }
 0x745   : > { %v17963_v22 = vld [vmem:[#allocation2 + $0x18] sm:$0xff]  ;;  %8835 = vst.msk [vmem:[#allocation2 + $0x29] sm:$0xff] %vm444_vm1, %v8790_v4  ;;  %v8783_v14 = vadd.f32 1.0, %v14963_v50  ;;  %13904 = vmatmul.mubr.msk.f32.gmra.mrb[34].mxu1 %vm444_vm1, %v17958_v26  ;;  %v18077_v4 = vsel %vm8966_vm4, 1.0, %v19199_v3  ;;  %vm11386_vm3 = vcmask 257024  }
 0x746   : > { %v17965_v17 = vld [vmem:[#allocation2 + $0x12] sm:$0xff]  ;;  %v17975_v52 = vmul.f32 %v17961_v16, %v17963_v22  ;;  %vm8941_vm7 = vcmp.gt.s32.totalorder %v8885_v35, 0  ;;  %vm18131_vm0 = vcmp.lt.s32.totalorder %v8885_v35, 7 }
 0x747   : > { %10441 = vst.msk [vmem:[#allocation2 + $0x10] sm:$0xff] %vm444_vm1, %v19199_v3  ;;  %v8791_v49 = vmul.f32 %v8783_v14, %v8759_v43  ;;  %v18083_v43 = vld [vmem:[#allocation2 + $0x49] sm:$0xff]  ;;  %v18138_v62 = vsel %vm8941_vm7, 1.0, %v19199_v3 }
 0x748   : > { %v14965_v56 = vpop.eup %14964  ;;  %v17977_v36 = vld [vmem:[#allocation2 + $0x21] sm:$0xff]  ;;  %10449 = vst.msk [vmem:[#allocation2 + $0x50] sm:$0xff] %vm444_vm1, %v19199_v3 }
 0x749   : > { %v17983_v31 = vld [vmem:[#allocation2 + $0x20] sm:$0xff]  ;;  %8836 = vst.msk [vmem:[#allocation2 + $0x31] sm:$0xff] %vm444_vm1, %v8791_v49  ;;  %v8784_v41 = vadd.f32 1.0, %v14965_v56  ;;  %13906 = vmatprep.mubr.msk.f32.mxu1 %vm444_vm1, %v17977_v36  ;;  %v9441_v49 = vld [vmem:[%s18532_s6 + $0x38] sm:$0xff]  ;;  %v18096_v56 = vmul.f32 %v18077_v4, %v10190_v0  ;;  %v18166_v0 = vsel %vm18131_vm0, 1.0, %v19199_v3 }
 0x74a   : > { %v17985_v39 = vld [vmem:[#allocation2 + $0x1a] sm:$0xff]  ;;  %v18002_v40 = vmul.f32 %v17981_v19, %v17983_v31  ;;  %v8995_v20 = vmul.f32 %v18060_v1, %v17983_v31 }
 0x74b   : > { %10442 = vst.msk [vmem:[#allocation2 + $0x18] sm:$0xff] %vm444_vm1, %v19199_v3  ;;  %v18006_v47 = vmul.f32 %v17991_v32, %v17985_v39  ;;  %v8792_v51 = vmul.f32 %v8784_v41, %v8760_v42 }
 0x74c   : > { %v14967_v24 = vpop.eup %14966  ;;  %v18008_v37 = vld [vmem:[#allocation2 + $0x29] sm:$0xff] }
 0x74d   : > { %v18019_v13 = vld [vmem:[#allocation2 + $0x28] sm:$0xff]  ;;  %8837 = vst.msk [vmem:[#allocation2 + $0x39] sm:$0xff] %vm444_vm1, %v8792_v51  ;;  %v8785_v2 = vadd.f32 1.0, %v14967_v24  ;;  %13907 = vmatmul.mubr.msk.f32.gmra.mrb[36].mxu1 %vm444_vm1, %v18008_v37  ;;  %v8992_v24 = vmul.f32 %v17961_v16, %v17946_v11 }
 0x74e   : > { %v18021_v8 = vld [vmem:[#allocation2 + $0x22] sm:$0xff]  ;;  %v18037_v7 = vmul.f32 %v18017_v21, %v18019_v13 }
 0x74f   : > { %10443 = vst.msk [vmem:[#allocation2 + $0x20] sm:$0xff] %vm444_vm1, %v19199_v3  ;;  %v18041_v38 = vmul.f32 %v18031_v55, %v18021_v8  ;;  %v8793_v33 = vmul.f32 %v8785_v2, %v8761_v48  ;;  %v14173_v2 = vpack.c.bf16 %v9441_v49, %v9440_v57 }
 0x750   : > { %v18048_v58 = vld [vmem:[#allocation2 + $0x31] sm:$0xff] }
 0x751   : > { %v18052_v28 = vld [vmem:[#allocation2 + $0x30] sm:$0xff]  ;;  %8838 = vst.msk [vmem:[#allocation2 + $0x41] sm:$0xff] %vm444_vm1, %v8793_v33  ;;  %13909 = vmatprep.mubr.msk.f32.mxu1 %vm444_vm1, %v18048_v58  ;;  %v18146_v33 = vsel %vm8942_vm8, 1.0, %v19199_v3 }
 0x752   : > { %v18054_v63 = vld [vmem:[#allocation2 + $0x2a] sm:$0xff]  ;;  %v18081_v50 = vmul.f32 %v18060_v1, %v18052_v28 }
 0x753   : > { %10444 = vst.msk [vmem:[#allocation2 + $0x28] sm:$0xff] %vm444_vm1, %v19199_v3  ;;  %v18087_v14 = vmul.f32 %v18068_v9, %v18054_v63 }
 0x754   : > { %v18100_v42 = vld [vmem:[#allocation2 + $0x39] sm:$0xff] }
 0x755   : > { %v18102_v41 = vld [vmem:[#allocation2 + $0x38] sm:$0xff]  ;;  %13910 = vmatmul.mubr.msk.f32.gmra.mrb[38].mxu1 %vm444_vm1, %v18100_v42 }
 0x756   : > { %v18104_v5 = vld [vmem:[#allocation2 + $0x32] sm:$0xff]  ;;  %13916 = vmatprep.mubr.msk.f32.mxu1 %vm444_vm1, %v8991_v6  ;;  %v18123_v51 = vmul.f32 %v18111_v60, %v18102_v41  ;;  %v18149_v6 = vsel %vm8964_vm9, 1.0, %v19199_v3 }
 0x757   : > { %10445 = vst.msk [vmem:[#allocation2 + $0x30] sm:$0xff] %vm444_vm1, %v19199_v3  ;;  %v18127_v48 = vmul.f32 %v18116_v27, %v18104_v5 }
 0x758   : > { %v18140_v23 = vld [vmem:[#allocation2 + $0x3a] sm:$0xff]  ;;  %v18153_v10 = vld [vmem:[#allocation2 + $0x42] sm:$0xff] }
 0x759   : > { %v18142_v29 = vld [vmem:[#allocation2 + $0x40] sm:$0xff]  ;;  %13917 = vmatmul.mubr.msk.f32.vlgmr.msra.gmra.mrb[32].mxu1 %vm444_vm1, %v8992_v24  ;;  %v9888_v54 = vld [vmem:[#allocation2 + $0x48] sm:$0xff]  ;;  %10446 = vst.msk [vmem:[#allocation2 + $0x38] sm:$0xff] %vm444_vm1, %v19199_v3  ;;  %v18173_v49 = vmul.f32 %v18149_v6, %v18140_v23  ;;  %v18183_v24 = vmul.f32 %v18166_v0, %v18153_v10 }
 0x75a   : > { %v18151_v34 = vld [vmem:[#allocation2 + $0x41] sm:$0xff]  ;;  %v18157_v35 = vmul.f32 %v18138_v62, %v18142_v29  ;;  %13919 = vmatprep.mubr.msk.f32.mxu1 %vm444_vm1, %v8993_v45  ;;  %14172 = vmatpush3.bf16.msra.mxu1 %v17927_v30  ;;  %v18169_v57 = vmul.f32 %v18146_v33, %v9888_v54  ;;  %v8994_v30 = vmul.f32 %v18017_v21, %v17963_v22 }
 0x75b   : > { %10447 = vst.msk [vmem:[#allocation2 + $0x40] sm:$0xff] %vm444_vm1, %v19199_v3  ;;  %10448 = vst.msk [vmem:[#allocation2 + $0x48] sm:$0xff] %vm444_vm1, %v19199_v3  ;;  %14174 = vmatprep.subr.bf16.mxu1 %v14173_v2  ;;  %v8996_v45 = vmul.f32 %v18111_v60, %v18019_v13  ;;  %v8997_v54 = vmul.f32 %v18138_v62, %v18052_v28  ;;  %v9279_v3 = vmul.f32 %v18031_v55, %v17965_v17 }
 0x75d   : > { %13920 = vmatmul.mubr.msk.f32.gmra.mrb[34].mxu1 %vm444_vm1, %v8994_v30  ;;  %v8998_v30 = vmul.f32 %v18146_v33, %v18102_v41 }
 0x75e   : > { %13922 = vmatprep.mubr.msk.f32.mxu1 %vm444_vm1, %v8995_v20  ;;  %v9277_v20 = vmul.f32 %v18197_v61, %v17933_v44  ;;  %v9280_v44 = vmul.f32 %v18068_v9, %v17985_v39 }
 0x761   : > { %13923 = vmatmul.mubr.msk.f32.gmra.mrb[36].mxu1 %vm444_vm1, %v8996_v45  ;;  %v9278_v45 = vmul.f32 %v17991_v32, %v17948_v59 }
 0x762   : > { %13925 = vmatprep.mubr.msk.f32.mxu1 %vm444_vm1, %v8997_v54  ;;  %v14177_v54 = vpack.c.bf16 %v9588_v53, %v9587_v18  ;;  %v9282_v53 = vmul.f32 %v18149_v6, %v18054_v63  ;;  %v9742_v18 = vld [vmem:[%s18532_s6 + $0x50] sm:$0xff] }
 0x765   : > { %13926 = vmatmul.mubr.msk.f32.gmra.mrb[38].mxu1 %vm444_vm1, %v8998_v30  ;;  %v9281_v30 = vmul.f32 %v18116_v27, %v18021_v8 }
 0x766   : > { %13932 = vmatprep.mubr.msk.f32.mxu1 %vm444_vm1, %v9277_v20  ;;  %v9283_v20 = vmul.f32 %v18166_v0, %v18104_v5 }
 0x769   : > { %13933 = vmatmul.mubr.msk.f32.vlgmr.msra.gmra.mrb[32].mxu1 %vm444_vm1, %v9278_v45  ;;  %v9743_v45 = vld [vmem:[%s18532_s6 + $0x58] sm:$0xff] }
 0x76a   : > { %13935 = vmatprep.mubr.msk.f32.mxu1 %vm444_vm1, %v9279_v3  ;;  %14176 = vmatpush3.bf16.msra.mxu1 %v14173_v2  ;;  %v9284_v3 = vmul.f32 %v18077_v4, %v18140_v23  ;;  %v9432_v2 = vmul.f32 %v18046_v15, %v17946_v11  ;;  %v9435_v11 = vmul.f32 %v18017_v21, %v17983_v31  ;;  %v9897_v31 = vld [vmem:[%s18532_s6 + $0x60] sm:$0xff]  ;;  %v9898_v21 = vld [vmem:[%s18532_s6 + $0x68] sm:$0xff] }
 0x76b   : > { %14178 = vmatprep.subr.bf16.mxu1 %v14177_v54 }
 0x76d   : > { %13936 = vmatmul.mubr.msk.f32.gmra.mrb[34].mxu1 %vm444_vm1, %v9280_v44  ;;  %v9433_v44 = vmul.f32 %v17961_v16, %v17956_v46  ;;  %v9437_v16 = vmul.f32 %v18111_v60, %v18052_v28  ;;  %v10044_v28 = vld [vmem:[%s18532_s6 + $0x70] sm:$0xff] }
 0x76e   : > { %13938 = vmatprep.mubr.msk.f32.mxu1 %vm444_vm1, %v9281_v30  ;;  %v14181_v30 = vpack.c.bf16 %v9743_v45, %v9742_v18  ;;  %v19296_v18 = vld [vmem:[#allocation28_spill] sm:$0xff] }
 0x76f   : > { %v10482_v45 = vand.u32 3, %v19296_v18 }
 0x771   : > { %13939 = vmatmul.mubr.msk.f32.gmra.mrb[36].mxu1 %vm444_vm1, %v9282_v53  ;;  %v9434_v53 = vmul.f32 %v17981_v19, %v17963_v22  ;;  %v9438_v22 = vmul.f32 %v18138_v62, %v18102_v41  ;;  %v9439_v19 = vmul.f32 %v18146_v33, %v18142_v29  ;;  %v9735_v41 = vmul.f32 %v17991_v32, %v17965_v17 }
 0x772   : > { %13941 = vmatprep.mubr.msk.f32.mxu1 %vm444_vm1, %v9283_v20  ;;  %v9436_v20 = vmul.f32 %v18060_v1, %v18019_v13  ;;  %v14185_v13 = vpack.c.bf16 %v9898_v21, %v9897_v31  ;;  %v10045_v1 = vld [vmem:[%s18532_s6 + $0x78] sm:$0xff]  ;;  %v9737_v62 = vmul.f32 %v18068_v9, %v18021_v8  ;;  %v9738_v29 = vmul.f32 %v18116_v27, %v18054_v63  ;;  %v10199_v63 = vld [vmem:[%s18532_s6 + $0x80] sm:$0xff]  ;;  %v10200_v9 = vld [vmem:[%s18532_s6 + $0x88] sm:$0xff] }
 0x773   : > { %v14189_v60 = vpack.c.bf16 %v10045_v1, %v10044_v28  ;;  %v9739_v32 = vmul.f32 %v18149_v6, %v18104_v5  ;;  %v9741_v8 = vmul.f32 %v18077_v4, %v18153_v10  ;;  %v14193_v5 = vpack.c.bf16 %v10200_v9, %v10199_v63  ;;  %v10339_v4 = vld [vmem:[%s18534_s8 + $0x8] sm:$0xff]  ;;  %v10779_v1 = vld [vmem:[%s18535_s9 + $0x30] sm:$0xff] }
 0x774   : > { %vm10502_vm11 = vcmp.gt.s32.totalorder %v10482_v45, 0  ;;  %vm10508_vm13 = vcmp.lt.s32.totalorder %v10482_v45, 3  ;;  %v10867_v63 = vld [vmem:[%s18535_s9 + $0x48] sm:$0xff] }
 0x775   : > { %13942 = vmatmul.mubr.msk.f32.gmra.mrb[38].mxu1 %vm444_vm1, %v9284_v3 }
 0x776   : > { %13948 = vmatprep.mubr.msk.f32.mxu1 %vm444_vm1, %v9432_v2 }
 0x779   : > { %13949 = vmatmul.mubr.msk.f32.vlgmr.msra.gmra.mrb[32].mxu1 %vm444_vm1, %v9433_v44  ;;  %v10690_v44 = vld [vmem:[%s18535_s9 + $0x20] sm:$0xff] }
 0x77a   : > { %13951 = vmatprep.mubr.msk.f32.mxu1 %vm444_vm1, %v9434_v53  ;;  %14180 = vmatpush3.bf16.msra.mxu1 %v14177_v54  ;;  %v19297_v53 = vmov 0.0  }
 0x77b   : > { %14182 = vmatprep.subr.bf16.mxu1 %v14181_v30 }
 0x77d   : > { %13952 = vmatmul.mubr.msk.f32.gmra.mrb[34].mxu1 %vm444_vm1, %v9435_v11  ;;  %v18404_v11 = vsel %vm10502_vm11, 1.0, %v19297_v53 }
 0x77e   : > { %13954 = vmatprep.mubr.msk.f32.mxu1 %vm444_vm1, %v9436_v20  ;;  %v19298_v20 = vld [vmem:[#allocation43_spill] sm:$0xff] }
 0x781   : > { %13955 = vmatmul.mubr.msk.f32.gmra.mrb[36].mxu1 %vm444_vm1, %v9437_v16  ;;  %v10489_v16 = vand.u32 3, %v19298_v20 }
 0x782   : > { %13957 = vmatprep.mubr.msk.f32.mxu1 %vm444_vm1, %v9438_v22 }
 0x783   : > { %vm10503_vm12 = vcmp.gt.s32.totalorder %v10489_v16, 0  ;;  %vm10509_vm14 = vcmp.lt.s32.totalorder %v10489_v16, 3 }
 0x785   : > { %13958 = vmatmul.mubr.msk.f32.gmra.mrb[38].mxu1 %vm444_vm1, %v9439_v19 }
 0x786   : > { %13964 = vmatprep.mubr.msk.f32.mxu1 %vm444_vm1, %v17929_v25  ;;  %v9734_v25 = vmul.f32 %v18197_v61, %v17948_v59  ;;  %v9736_v59 = vmul.f32 %v18031_v55, %v17985_v39  ;;  %v9740_v39 = vmul.f32 %v18166_v0, %v18140_v23  ;;  %v9889_v55 = vmul.f32 %v18046_v15, %v17956_v46 }
 0x789   : > { %13965 = vmatmul.mubr.msk.f32.vlgmr.msra.gmra.mrb[32].mxu1 %vm444_vm1, %v17944_v12 }
 0x78a   : > { %13967 = vmatprep.mubr.msk.f32.mxu1 %vm444_vm1, %v17958_v26  ;;  %14184 = vmatpush3.bf16.msra.mxu1 %v14181_v30  ;;  %v10691_v30 = vld [vmem:[%s18535_s9 + $0x28] sm:$0xff] }
 0x78b   : > { %14186 = vmatprep.subr.bf16.mxu1 %v14185_v13  ;;  %v14221_v21 = vpack.c.bf16 %v10691_v30, %v10690_v44 }
 0x78d   : > { %13968 = vmatmul.mubr.msk.f32.gmra.mrb[34].mxu1 %vm444_vm1, %v17977_v36 }
 0x78e   : > { %13970 = vmatprep.mubr.msk.f32.mxu1 %vm444_vm1, %v18008_v37 }
 0x791   : > { %13971 = vmatmul.mubr.msk.f32.gmra.mrb[36].mxu1 %vm444_vm1, %v18048_v58 }
 0x792   : > { %13973 = vmatprep.mubr.msk.f32.mxu1 %vm444_vm1, %v18100_v42 }
 0x795   : > { %13974 = vmatmul.mubr.msk.f32.gmra.mrb[38].mxu1 %vm444_vm1, %v18151_v34 }
 0x796   : > { %13980 = vmatprep.mubr.msk.f32.mxu1 %vm444_vm1, %v9734_v25  ;;  %v12179_v25 = vsel %vm10503_vm12, 1.0, %v19297_v53 }
 0x799   : > { %13981 = vmatmul.mubr.msk.f32.vlgmr.msra.gmra.mrb[32].mxu1 %vm444_vm1, %v9735_v41  ;;  %v10780_v41 = vld [vmem:[%s18535_s9 + $0x38] sm:$0xff] }
 0x79a   : > { %13983 = vmatprep.mubr.msk.f32.mxu1 %vm444_vm1, %v9736_v59  ;;  %14188 = vmatpush3.bf16.msra.mxu1 %v14185_v13 }
 0x79b   : > { %14190 = vmatprep.subr.bf16.mxu1 %v14189_v60 }
 0x79d   : > { %13984 = vmatmul.mubr.msk.f32.gmra.mrb[34].mxu1 %vm444_vm1, %v9737_v62 }
 0x79e   : > { %13986 = vmatprep.mubr.msk.f32.mxu1 %vm444_vm1, %v9738_v29  ;;  %v14225_v29 = vpack.c.bf16 %v10780_v41, %v10779_v1 }
 0x7a1   : > { %13987 = vmatmul.mubr.msk.f32.gmra.mrb[36].mxu1 %vm444_vm1, %v9739_v32 }
 0x7a2   : > { %13989 = vmatprep.mubr.msk.f32.mxu1 %vm444_vm1, %v9740_v39  ;;  %v12181_v39 = vsel %vm10509_vm14, 1.0, %v19297_v53 }
 0x7a5   : > { %13990 = vmatmul.mubr.msk.f32.gmra.mrb[38].mxu1 %vm444_vm1, %v9741_v8 }
 0x7a6   : > { %13996 = vmatprep.mubr.msk.f32.mxu1 %vm444_vm1, %v9889_v55  ;;  %v10866_v55 = vld [vmem:[%s18535_s9 + $0x40] sm:$0xff] }
 0x7a9   : > { %13997 = vmatmul.mubr.msk.f32.vlgmr.msra.gmra.mrb[32].mxu1 %vm444_vm1, %v17975_v52 }
 0x7aa   : > { %13999 = vmatprep.mubr.msk.f32.mxu1 %vm444_vm1, %v18002_v40  ;;  %14192 = vmatpush3.bf16.msra.mxu1 %v14189_v60  ;;  %v12180_v60 = vsel %vm10508_vm13, 1.0, %v19297_v53 }
 0x7ab   : > { %14194 = vmatprep.subr.bf16.mxu1 %v14193_v5 }
 0x7ad   : > { %14000 = vmatmul.mubr.msk.f32.gmra.mrb[34].mxu1 %vm444_vm1, %v18037_v7 }
 0x7ae   : > { %14002 = vmatprep.mubr.msk.f32.mxu1 %vm444_vm1, %v18081_v50  ;;  %v10522_v50 = vld [vmem:[%s18535_s9 + $0x10] sm:$0xff] }
 0x7b1   : > { %14003 = vmatmul.mubr.msk.f32.gmra.mrb[36].mxu1 %vm444_vm1, %v18123_v51  ;;  %v12175_v51 = vld [vmem:[%s18533_s7] ss:$0 sm:$0xff] }
 0x7b2   : > { %14005 = vmatprep.mubr.msk.f32.mxu1 %vm444_vm1, %v18157_v35 }
 0x7b5   : > { %14006 = vmatmul.mubr.msk.f32.gmra.mrb[38].mxu1 %vm444_vm1, %v18169_v57 }
 0x7b6   : > { %14012 = vmatprep.mubr.msk.f32.mxu1 %vm444_vm1, %v17944_v12  ;;  %v10191_v12 = vmul.f32 %v18197_v61, %v17965_v17  ;;  %v10338_v61 = vld [vmem:[%s18534_s8] sm:$0xff] }
 0x7b7   : > { %14056 = vmatprep.mubr.msk.f32.mxu0 %vm10347_vm10, %v10338_v61 }
 0x7b9   : > { %14013 = vmatmul.mubr.msk.f32.vlgmr.msra.gmra.mrb[32].mxu1 %vm444_vm1, %v17958_v26 }
 0x7ba   : > { %14015 = vmatprep.mubr.msk.f32.mxu1 %vm444_vm1, %v17977_v36  ;;  %14196 = vmatpush3.bf16.msra.mxu1 %v14193_v5 }
 0x7bd   : > { %14016 = vmatmul.mubr.msk.f32.gmra.mrb[34].mxu1 %vm444_vm1, %v18008_v37 }
 0x7be   : > { %14018 = vmatprep.mubr.msk.f32.mxu1 %vm444_vm1, %v18048_v58 }
 0x7c1   : > { %14019 = vmatmul.mubr.msk.f32.gmra.mrb[36].mxu1 %vm444_vm1, %v18100_v42  ;;  %v10519_v42 = vld [vmem:[%s18535_s9 + $0x8] sm:$0xff] }
 0x7c2   : > { %14021 = vmatprep.mubr.msk.f32.mxu1 %vm444_vm1, %v18151_v34 }
 0x7c5   : > { %14022 = vmatmul.mubr.msk.f32.gmra.mrb[38].mxu1 %vm444_vm1, %v18083_v43  ;;  %v10523_v43 = vld [vmem:[%s18535_s9 + $0x18] sm:$0xff] }
 0x7c6   : > { %14028 = vmatprep.mubr.msk.f32.mxu1 %vm444_vm1, %v10191_v12  ;;  %v14229_v12 = vpack.c.bf16 %v10867_v63, %v10866_v55 }
 0x7c9   : > { %14029 = vmatmul.mubr.msk.f32.vlgmr.msra.gmra.mrb[32].mxu1 %vm444_vm1, %v18006_v47 }
 0x7ca   : > { %14031 = vmatprep.mubr.msk.f32.mxu1 %vm444_vm1, %v18041_v38 }
 0x7cd   : > { %14032 = vmatmul.mubr.msk.f32.gmra.mrb[34].mxu1 %vm444_vm1, %v18087_v14  ;;  %v14213_v14 = vpack.c.bf16 %v10523_v43, %v10522_v50  ;;  %v11131_v50 = vld [vmem:[%s18535_s9 + $0x70] sm:$0xff]  ;;  %v11132_v43 = vld [vmem:[%s18535_s9 + $0x78] sm:$0xff] }
 0x7ce   : > { %14034 = vmatprep.mubr.msk.f32.mxu1 %vm444_vm1, %v18127_v48 }
 0x7d1   : > { %14035 = vmatmul.mubr.msk.f32.gmra.mrb[36].mxu1 %vm444_vm1, %v18173_v49 }
 0x7d2   : > { %14037 = vmatprep.mubr.msk.f32.mxu1 %vm444_vm1, %v18183_v24 }
 0x7d5   : > { %14038 = vmatmul.mubr.msk.f32.gmra.mrb[38].mxu1 %vm444_vm1, %v18096_v56  ;;  %v10518_v56 = vld [vmem:[%s18535_s9] sm:$0xff] }
 0x7d6   : > { %v14217_v27 = vpack.c.bf16 %v10519_v42, %v10518_v56  ;;  %v14241_v56 = vpack.c.bf16 %v11132_v43, %v11131_v50 }
 0x89c   : > { %v14030_v46 = vpop.f32.mrb[32].mxu1 }
 0x89d   : > { %v10291_v26 = vpop.f32.mrb[33].mxu1 }
 0x89e   : > { %v14197_v17 = vpack.c.bf16 %v14030_v46, %v10291_v26  ;;  %v10955_v26 = vld [vmem:[%s18535_s9 + $0x50] sm:$0xff] }
 0x8a0   : > { %v14033_v52 = vpop.f32.mrb[34].mxu1  ;;  %14198 = vmatprep.subr.bf16.mxu0 %v14197_v17 }
 0x8a1   : > { %v10301_v36 = vpop.f32.mrb[35].mxu1  ;;  %14200 = vmatpush3.bf16.msra.mxu0 %v14197_v17  ;;  %v10956_v17 = vld [vmem:[%s18535_s9 + $0x58] sm:$0xff] }
 0x8a2   : > { %v14201_v40 = vpack.c.bf16 %v14033_v52, %v10301_v36  ;;  %v14233_v36 = vpack.c.bf16 %v10956_v17, %v10955_v26 }
 0x8a4   : > { %v14036_v47 = vpop.f32.mrb[36].mxu1  ;;  %14202 = vmatprep.subr.bf16.mxu0 %v14201_v40 }
 0x8a5   : > { %v10311_v37 = vpop.f32.mrb[37].mxu1  ;;  %14204 = vmatpush3.bf16.msra.mxu0 %v14201_v40 }
 0x8a6   : > { %v14205_v7 = vpack.c.bf16 %v14036_v47, %v10311_v37  ;;  %v11044_v47 = vld [vmem:[%s18535_s9 + $0x60] sm:$0xff]  ;;  %v11045_v37 = vld [vmem:[%s18535_s9 + $0x68] sm:$0xff] }
 0x8a8   : > { %v14039_v38 = vpop.f32.mrb[38].mxu1  ;;  %14206 = vmatprep.subr.bf16.mxu0 %v14205_v7 }
 0x8a9   : > { %v10321_v15 = vpop.f32.mrb[39].mxu1  ;;  %14208 = vmatpush3.bf16.msra.mxu0 %v14205_v7 }
 0x8aa   : > { %v14209_v58 = vpack.c.bf16 %v14039_v38, %v10321_v15  ;;  %v14237_v38 = vpack.c.bf16 %v11045_v37, %v11044_v47 }
 0x8ac   : > { %14210 = vmatprep.subr.bf16.mxu0 %v14209_v58 }
 0x8ad   : > { %14212 = vmatpush3.bf16.msra.mxu0 %v14209_v58 }
 0x8ae   : > { %14214 = vmatprep.subr.bf16.mxu0 %v14213_v14 }
 0x8b0   : > { %14057 = vmatmul.mubr.msk.f32.vlgmr.msra.gmra.mrb[64].mxu0 %vm10347_vm10, %v10339_v4 }
 0x8b1   : > { %14216 = vmatpush3.bf16.msra.mxu0 %v14213_v14 }
 0x8b2   : > { %14218 = vmatprep.subr.bf16.mxu0 %v14217_v27 }
 0x983   : > { %v14058_v48 = vpop.f32.mrb[64].mxu0 }
 0x984   : > { %v10426_v23 = vadd.f32 %v14058_v48, %v12175_v51  ;;  %v10420_v33 = vpop.f32.mrb[65].mxu0  ;;  %v11221_v48 = vld [vmem:[%s18535_s9 + $0x88] sm:$0xff] }
 0x985   : > { %v10421_v6 = vadd.f32 %v12175_v51, %v10420_v33  ;;  %v11220_v51 = vld [vmem:[%s18535_s9 + $0x80] sm:$0xff] }
 0x986   : > { %v10432_v34 = vmul.f32 0.70710677, %v10426_v23  ;;  %v10430_v57 = vmul.f32 0.5, %v10426_v23  ;;  %v14245_v33 = vpack.c.bf16 %v11221_v48, %v11220_v51 }
 0x987   : > { %v10431_v10 = vmul.f32 0.70710677, %v10421_v6  ;;  %v10429_v24 = vmul.f32 0.5, %v10421_v6 }
 0x988   : > { %14968 = verf.f32 %v10432_v34 }
 0x989   : > { %14970 = verf.f32 %v10431_v10 }
 0x992   : > { %v14969_v35 = vpop.eup %14968 }
 0x993   : > { %v14971_v0 = vpop.eup %14970  ;;  %v10436_v49 = vadd.f32 1.0, %v14969_v35 }
 0x994   : > { %v10435_v54 = vadd.f32 1.0, %v14971_v0  ;;  %v15037_v0 = vmov 0.0|0.0  }
 0x995   : > { %v10438_v3 = vmul.f32 %v10436_v49, %v10430_v57 }
 0x996   : > { %v10437_v2 = vmul.f32 %v10435_v54, %v10429_v24  ;;  %v11305_v54 = vld [vmem:[%s18537_s11] sm:$0xf] }
 0x997   : > { %10477 = vst.msk [vmem:[#allocation2 + $0xd] sm:$0xff] %vm444_vm1, %v10438_v3  ;;  %v12200_v3 = vld [vmem:[%s18536_s10] ss:$0 sm:$0xff] }
 0x998   : > { %10476 = vst.msk [vmem:[#allocation2 + $0x5] sm:$0xff] %vm444_vm1, %v10437_v2 }
 0x99e   : > { %v10865_v15 = vld [vmem:[#allocation2 + $0xd] sm:$0xff] }
 0x99f   : > { %v10520_v22 = vld [vmem:[#allocation2 + $0x1] sm:$0xff]  ;;  %v18407_v19 = vld [vmem:[#allocation2 + $0x9] sm:$0xff]  ;;  %v11130_v6 = vld [vmem:[#allocation2 + $0x11] sm:$0xff] }
 0x9a0   : > { %v10514_v31 = vld [vmem:[#allocation2] sm:$0xff]  ;;  %14063 = vmatprep.mubr.msk.f32.mxu0 %vm444_vm1, %v10520_v22  ;;  %v10515_v28 = vld [vmem:[#allocation2 + $0x8] sm:$0xff]  ;;  %v11217_v10 = vld [vmem:[#allocation2 + $0x12] sm:$0xff] }
 0x9a1   : > { %v10516_v13 = vmul.f32 %v18404_v11, %v10514_v31  ;;  %14064 = vmatmul.mubr.msk.f32.vlgmr.msra.gmra.mrb[66].mxu0 %vm444_vm1, %v18407_v19  ;;  %v10686_v59 = vld [vmem:[#allocation2 + $0x2] sm:$0xff]  ;;  %v10517_v62 = vmul.f32 %v12179_v25, %v10515_v28  ;;  %v10687_v8 = vld [vmem:[#allocation2 + $0xa] sm:$0xff]  ;;  %v11042_v42 = vmul.f32 %v18404_v11, %v10515_v28  ;;  %v11219_v35 = vmul.f32 %v12181_v39, %v11217_v10 }
 0x9a2   : > { %14220 = vmatpush3.bf16.msra.mxu0 %v14217_v27  ;;  %v10688_v32 = vmul.f32 %v12180_v60, %v10686_v59  ;;  %v10775_v9 = vld [vmem:[#allocation2 + $0x4] sm:$0xff]  ;;  %v10689_v5 = vmul.f32 %v12181_v39, %v10687_v8  ;;  %v10776_v46 = vld [vmem:[#allocation2 + $0xc] sm:$0xff]  ;;  %v11218_v34 = vmul.f32 %v12180_v60, %v10687_v8 }
 0x9a3   : > { %14070 = vmatprep.mubr.msk.f32.mxu0 %vm444_vm1, %v10516_v13  ;;  %14222 = vmatprep.subr.bf16.mxu0 %v14221_v21  ;;  %v10777_v61 = vmul.f32 %v18404_v11, %v10775_v9  ;;  %v10778_v52 = vmul.f32 %v12179_v25, %v10776_v46  ;;  %v10864_v40 = vld [vmem:[#allocation2 + $0x5] sm:$0xff]  ;;  %v10952_v4 = vld [vmem:[#allocation2 + $0xe] sm:$0xff] }
 0x9a4   : > { %v10951_v7 = vld [vmem:[#allocation2 + $0x6] sm:$0xff]  ;;  %v10954_v14 = vmul.f32 %v12181_v39, %v10952_v4  ;;  %v11041_v27 = vld [vmem:[#allocation2 + $0x10] sm:$0xff] }
 0x9a5   : > { %v10953_v58 = vmul.f32 %v12180_v60, %v10951_v7  ;;  %v11043_v23 = vmul.f32 %v12179_v25, %v11041_v27 }
 0x9a9   : > { %14071 = vmatmul.mubr.msk.f32.vlgmr.msra.gmra.mrb[66].mxu0 %vm444_vm1, %v10517_v62 }
 0x9aa   : > { %14077 = vmatprep.mubr.msk.f32.mxu0 %vm444_vm1, %v10688_v32  ;;  %14224 = vmatpush3.bf16.msra.mxu0 %v14221_v21 }
 0x9ab   : > { %14226 = vmatprep.subr.bf16.mxu0 %v14225_v29 }
 0x9b1   : > { %14078 = vmatmul.mubr.msk.f32.vlgmr.msra.gmra.mrb[66].mxu0 %vm444_vm1, %v10689_v5 }
 0x9b2   : > { %14084 = vmatprep.mubr.msk.f32.mxu0 %vm444_vm1, %v10777_v61  ;;  %14228 = vmatpush3.bf16.msra.mxu0 %v14225_v29 }
 0x9b3   : > { %14230 = vmatprep.subr.bf16.mxu0 %v14229_v12 }
 0x9b9   : > { %14085 = vmatmul.mubr.msk.f32.vlgmr.msra.gmra.mrb[66].mxu0 %vm444_vm1, %v10778_v52 }
 0x9ba   : > { %14091 = vmatprep.mubr.msk.f32.mxu0 %vm444_vm1, %v10864_v40  ;;  %14232 = vmatpush3.bf16.msra.mxu0 %v14229_v12 }
 0x9bb   : > { %14234 = vmatprep.subr.bf16.mxu0 %v14233_v36 }
 0x9c1   : > { %14092 = vmatmul.mubr.msk.f32.vlgmr.msra.gmra.mrb[66].mxu0 %vm444_vm1, %v10865_v15 }
 0x9c2   : > { %14098 = vmatprep.mubr.msk.f32.mxu0 %vm444_vm1, %v10953_v58  ;;  %14236 = vmatpush3.bf16.msra.mxu0 %v14233_v36 }
 0x9c3   : > { %14238 = vmatprep.subr.bf16.mxu0 %v14237_v38 }
 0x9c9   : > { %14099 = vmatmul.mubr.msk.f32.vlgmr.msra.gmra.mrb[66].mxu0 %vm444_vm1, %v10954_v14 }
 0x9ca   : > { %14105 = vmatprep.mubr.msk.f32.mxu0 %vm444_vm1, %v11042_v42  ;;  %14240 = vmatpush3.bf16.msra.mxu0 %v14237_v38 }
 0x9cb   : > { %14242 = vmatprep.subr.bf16.mxu0 %v14241_v56 }
 0x9d1   : > { %14106 = vmatmul.mubr.msk.f32.vlgmr.msra.gmra.mrb[66].mxu0 %vm444_vm1, %v11043_v23 }
 0x9d2   : > { %14112 = vmatprep.mubr.msk.f32.mxu0 %vm444_vm1, %v18407_v19  ;;  %14244 = vmatpush3.bf16.msra.mxu0 %v14241_v56 }
 0x9d3   : > { %14246 = vmatprep.subr.bf16.mxu0 %v14245_v33 }
 0x9d9   : > { %14113 = vmatmul.mubr.msk.f32.vlgmr.msra.gmra.mrb[66].mxu0 %vm444_vm1, %v11130_v6 }
 0x9da   : > { %14119 = vmatprep.mubr.msk.f32.mxu0 %vm444_vm1, %v11218_v34  ;;  %14248 = vmatpush3.bf16.msra.mxu0 %v14245_v33 }
 0x9db   : > { %14249 = vmatprep.subr.bf16.mxu0 %v15037_v0 }
 0x9e1   : > { %14120 = vmatmul.mubr.msk.f32.vlgmr.msra.gmra.mrb[66].mxu0 %vm444_vm1, %v11219_v35 }
 0x9e2   : > { %14126 = vmatprep.mubr.msk.f32.mxu0 %vm15038_vm15, %v19297_v53 }
 0xab4   : > { %v14121_v57 = vpop.f32.mrb[66].mxu0 }
 0xab5   : > { %v11294_v49 = vpop.f32.mrb[67].mxu0 }
 0xab6   : > { %v14250_v24 = vpack.c.bf16 %v14121_v57, %v11294_v49 }
 0xab8   : > { %14251 = vmatpush3.bf16.msra.mxu0 %v14250_v24 }
 0xabb   : > { %14127 = vmatmul.mubr.msk.f32.vlgmr.msra.gmra.mrb[68].mxu0 %vm444_vm1, %v11305_v54 }
 0xb8e   : > { %v11382_v2 = vpop.f32.mrb[68].mxu0 }
 0xb8f   : > { %v11383_v18 = vadd.f32 %v12200_v3, %v11382_v2  ;;  %v14128_v45 = vpop.f32.mrb[69].mxu0 }
 0xb91   : > { %11387 = vst.msk [vmem:[%s406_s28] sm:$0xf] %vm11386_vm3, %v11383_v18 }
 0xb92   : > { %14985 = shalt.err (!%p14982_p3)
}
 0xb93   : > { %s14986_s1 = scalar_lea.hbm %s18484_s16, 64  ;;  %s14990_s28 = scalar_lea.hbm %s18538_s12, 128 }
 0xb94   : > { %p14987_p4 = scmp.ne.s32.totalorder %s18484_s16, %s14986_s1  ;;  %p14991_p9 = scmp.lt.u32.totalorder %s18484_s16, %s18538_s12 }
 0xb95   : > { %p14992_p10 = scmp.lt.u32.totalorder %s14990_s28, %s14986_s1  ;;  %p14994_p12 = scmp.lt.u32.totalorder %s14986_s1, %s18484_s16 }
 0xb96   : > { %p14988_p7 = pnand %p14987_p4, %p15143_p5 }
 0xb97   : > { %p14993_p11 = por %p14992_p10, %p14991_p9 }
 0xb98   : > { %p14989_p8 = pneg %p14988_p7 }
 0xb99   : > { %p14995_p13 = por %p14994_p12, %p14993_p11 }
 0xb9b   : > { %p14996_p0 = pnand %p14995_p13, %p14989_p8 }
 0xb9d   : > { %14999 = shalt.err (!%p14996_p0)
}
 0xb9e   : > { %14846 = dma.vmem_to_hbm [thread:$0]  (%p15143_p5), %s18486_s29, 64, %s18484_s16, %s11389_s17  }
 0xb9f PF: > { %p14852_p1 = scmp.ge.s32.totalorder %s15034_s24, 2  ;;  %s11414_s19 = sand.u32 1, %s15022_s21  }
 0xba0   : > { %s11415_s18 = scalar_lea.sflag [#allocation4], %s11414_s19 }
 0xba1   : > { %p14849_p2 = pnand %p14852_p1, %p15147_p6 }
 0xba3   : > { %15017 = dma.done.wait (!%p14849_p2), %s11415_s18, 64  }
 0xba4   : > { %15019 = vsyncadd (!%p14849_p2), %s11415_s18, 4294967232  ;;  %p22_p3 = scmp.ge.s32.totalorder %s15130_s27, 4   ;;  %s19299_s21 = smov %s15026_s22 }
 0xba5   : > { %s19300_s22 = smov %s15030_s23  ;;  %s19301_s23 = smov %s15141_s30 }
 0xba6   : > { %s19302_s24 = smov %s15130_s27  ;;  %24 = sbr.rel (!%p22_p3) target bundleno = 6 (0x6), region = 103 }
 0xbad   :  { %11420 = vsyncpa [#allocation4], 1 }
 0xbae   :  { %11422 = vsyncpa [#allocation4 + $0x1], 1 }

</bundles_post_ra>
